<compile_context>
chip_gen: v7x
topology: tpu7x:2x2x1
jax: 0.10.0
libtpu: 0.0.40
codegen_flags: <defaults>
</compile_context>

<pallas_src>
import jax
import jax.numpy as jnp
from jax.experimental import pallas as pl
from jax.experimental.pallas import tpu as pltpu

# --- hyperparameters from AudioVisualTransformer.__init__ defaults ---
D_MODEL = 32
N_HEAD = 4
N_LAYERS = 3
D_FF = 32               # == D_MODEL (required by the per-layer weight packing below)
HEAD_DIM = D_MODEL // N_HEAD
D_VID = 768             # VideoMAE hidden size
D_AUD = 1024            # wav2vec2-large hidden size
LN_EPS = 1e-5

assert D_FF == D_MODEL, "weight packing assumes dim_feedforward == d_model (module default)"
assert N_HEAD * HEAD_DIM == D_MODEL

# --- small example shapes ---
B = 2                   # video batch
S = 8                   # video token / sequence length
T = B * S


def _layernorm(x, w, b):
    # f32 elementwise (biased variance, eps=1e-5 -> matches nn.LayerNorm defaults)
    mu = jnp.mean(x, axis=-1, keepdims=True)
    var = jnp.mean(jnp.square(x - mu), axis=-1, keepdims=True)
    return (x - mu) * jax.lax.rsqrt(var + LN_EPS) * w + b


def fusion_kernel(vf_ref, wv_ref, arow_ref, mask_ref, wqkv_ref, wrest_ref, vec_ref, o_ref):
    # vf_ref   : (T, D_VID)                 bf16  flattened video tokens
    # wv_ref   : (D_VID, D_MODEL)           bf16  video projection weight
    # arow_ref : (1, D_MODEL)               f32   audio_proj + bv + ba, pre-reduced
    # mask_ref : (N_HEAD, 1, D_MODEL)       f32   per-head lane masks
    # wqkv_ref : (L, D_MODEL, 3*D_MODEL)    bf16  [Wq*scale | Wk | Wv] fused per layer
    # wrest_ref: (L, 3, D_MODEL, D_MODEL)   bf16  [Wout, Wff1, Wff2]
    # vec_ref  : (L, 10, D_MODEL)           f32   [bq*scale, bk, bv, bo, b1, b2, ln1w, ln1b, ln2w, ln2b]
    # o_ref    : (B, D_MODEL)               f32   pooled transformer features
    bf16 = jnp.bfloat16

    # fused video+audio projection; audio term and both biases arrive pre-reduced in arow.
    x = jnp.dot(vf_ref[...], wv_ref[...],
                preferred_element_type=jnp.float32) + arow_ref[...]            # (T, D) f32

    mask = mask_ref[...]                                                       # (H, 1, D) f32

    for l in range(N_LAYERS):
        w_qkv = wqkv_ref[l]                      # (D, 3D)   bf16
        wr = wrest_ref[l]                        # (3, D, D) bf16
        vp = vec_ref[l]                          # (10, D)   f32

        # --- self attention (post-norm nn.TransformerEncoderLayer) ---
        # single fused QKV projection (bf16 MXU, f32 accumulate); scale pre-folded into Wq/bq
        qkv = jnp.dot(x.astype(bf16), w_qkv, preferred_element_type=jnp.float32)   # (T, 3D)
        q2 = qkv[:, 0:D_MODEL] + vp[0:1]
        k2 = qkv[:, D_MODEL:2 * D_MODEL] + vp[1:2]
        v2 = qkv[:, 2 * D_MODEL:3 * D_MODEL] + vp[2:3]

        # stacked heads: masked full-width contraction == per-head contraction (other lanes = 0),
        # and the sum over heads of masked contexts reproduces the multi-head concat exactly.
        qh = (q2.reshape(B, 1, S, D_MODEL) * mask).reshape(B * N_HEAD, S, D_MODEL)
        vh = (v2.reshape(B, 1, S, D_MODEL) * mask).reshape(B * N_HEAD, S, D_MODEL)
        kh = jnp.broadcast_to(k2.reshape(B, 1, S, D_MODEL),
                              (B, N_HEAD, S, D_MODEL)).reshape(B * N_HEAD, S, D_MODEL)

        s = jnp.einsum('gqe,gke->gqk', qh.astype(bf16), kh.astype(bf16),
                       preferred_element_type=jnp.float32)                    # (B*H, S, S)
        s = s - jnp.max(s, axis=-1, keepdims=True)
        p = jnp.exp(s)
        p = p * pl.reciprocal(jnp.sum(p, axis=-1, keepdims=True), approx=True)

        ctx = jnp.einsum('gqk,gke->gqe', p.astype(bf16), vh.astype(bf16),
                         preferred_element_type=jnp.float32)                  # (B*H, S, D)
        attn3 = jnp.sum(ctx.reshape(B, N_HEAD, S, D_MODEL), axis=1)           # (B, S, D) == concat
        attn = attn3.reshape(T, D_MODEL)

        attn = jnp.dot(attn.astype(bf16), wr[0],
                       preferred_element_type=jnp.float32) + vp[3:4]
        x = _layernorm(x + attn, vp[6:7], vp[7:8])

        # --- feed forward ---
        h1 = jnp.maximum(
            jnp.dot(x.astype(bf16), wr[1], preferred_element_type=jnp.float32) + vp[4:5], 0.0)
        h2 = jnp.dot(h1.astype(bf16), wr[2], preferred_element_type=jnp.float32) + vp[5:6]
        x = _layernorm(x + h2, vp[8:9], vp[9:10])

    # mean over sequence (== mean over dim 0 of the torch (S, B, D) layout)
    o_ref[...] = jnp.mean(x.reshape(B, S, D_MODEL), axis=1)                   # (B, D)


@jax.jit
def _avt_core(video_features, audio_features, params):
    # flatten in the wrapper (free in XLA) and cast the big-K projection inputs to bf16
    vf = video_features.reshape(T, D_VID).astype(jnp.bfloat16)
    # audio projection (independent of the token loop) stays in plain XLA; fold in both biases
    a_row = jnp.dot(audio_features, params['wa']) + params['bias_static']     # (1, D_MODEL) f32

    # Whole-array VMEM residency, no grid: footprint ~0.1 MiB << VMEM on v5e/v6e/v7x, and any
    # added grid step would only add per-step overhead at this latency-bound size.
    pooled = pl.pallas_call(
        fusion_kernel,
        out_shape=jax.ShapeDtypeStruct((B, D_MODEL), jnp.float32),
        in_specs=[pl.BlockSpec(memory_space=pltpu.MemorySpace.VMEM)] * 7,
        out_specs=pl.BlockSpec(memory_space=pltpu.MemorySpace.VMEM),
    )(vf, params['wv_bf'], a_row, params['head_mask'],
      params['w_qkv'], params['w_rest'], params['vec_all'])

    # lane-dense (32 x 3) head matmul + bias in XLA (keeps the kernel's store lane-dense)
    return jnp.dot(pooled, params['head_w']) + params['head_b']               # (B, 3)


def audio_visual_transformer(video_features, audio_features, params):
    out = _avt_core(video_features, audio_features, params)
    # single split at the consumer (outside the jitted kernel graph)
    return out[:, 0:1], out[:, 1:2], out[:, 2:3]


def init_params(seed=0):
    key = jax.random.PRNGKey(seed)
    keys = iter(jax.random.split(key, 64))

    def linear(fan_in, fan_out):
        bound = 1.0 / (fan_in ** 0.5)
        w = jax.random.uniform(next(keys), (fan_in, fan_out), jnp.float32, -bound, bound)
        b = jax.random.uniform(next(keys), (1, fan_out), jnp.float32, -bound, bound)
        return w, b

    wv, bv = linear(D_VID, D_MODEL)     # video_projection
    wa, ba = linear(D_AUD, D_MODEL)     # audio_projection

    scale = 1.0 / (HEAD_DIM ** 0.5)
    wqkv_layers, wrest_layers, vec_layers = [], [], []
    for _ in range(N_LAYERS):
        wq, bq = linear(D_MODEL, D_MODEL)
        wk, bk = linear(D_MODEL, D_MODEL)
        wvv, bvv = linear(D_MODEL, D_MODEL)
        wo, bo = linear(D_MODEL, D_MODEL)
        w1, b1 = linear(D_MODEL, D_FF)
        w2, b2 = linear(D_FF, D_MODEL)
        ln1w = jnp.ones((1, D_MODEL), jnp.float32)
        ln1b = jnp.zeros((1, D_MODEL), jnp.float32)
        ln2w = jnp.ones((1, D_MODEL), jnp.float32)
        ln2b = jnp.zeros((1, D_MODEL), jnp.float32)
        # fused QKV weight with 1/sqrt(head_dim) folded into Wq
        wqkv_layers.append(jnp.concatenate([wq * scale, wk, wvv], axis=1))    # (D, 3D)
        wrest_layers.append(jnp.stack([wo, w1, w2], axis=0))                  # (3, D, D)
        vec_layers.append(jnp.concatenate(
            [bq * scale, bk, bvv, bo, b1, b2, ln1w, ln1b, ln2w, ln2b], axis=0))

    w_qkv = jnp.stack(wqkv_layers, axis=0).astype(jnp.bfloat16)   # (L, D, 3D)   bf16
    w_rest = jnp.stack(wrest_layers, axis=0).astype(jnp.bfloat16)  # (L, 3, D, D) bf16
    vec_all = jnp.stack(vec_layers, axis=0)                        # (L, 10, D)   f32

    # three heads (pleasure / arousal / dominance), each Linear(d_model, 1),
    # packed side-by-side into a single (d_model, 3) matrix (applied in the XLA wrapper)
    hws, hbs = [], []
    for _ in range(3):
        w, b = linear(D_MODEL, 1)
        hws.append(w)
        hbs.append(b)
    head_w = jnp.concatenate(hws, axis=-1)       # (D, 3)
    head_b = jnp.concatenate(hbs, axis=-1)       # (1, 3)

    # per-head lane masks, precomputed once (kernel input; avoids in-kernel iota relayouts)
    lane = jnp.arange(D_MODEL)[None, None, :]                      # (1, 1, D)
    head = jnp.arange(N_HEAD)[:, None, None]                       # (H, 1, 1)
    head_mask = ((lane >= head * HEAD_DIM) &
                 (lane < (head + 1) * HEAD_DIM)).astype(jnp.float32)   # (H, 1, D)

    return dict(
        wv_bf=wv.astype(jnp.bfloat16),           # big-K projection weight in bf16
        wa=wa,                                   # stays in the XLA graph (wrapper)
        bias_static=bv + ba,                     # (1, D) pre-added projection biases
        head_mask=head_mask,
        w_qkv=w_qkv,
        w_rest=w_rest,
        vec_all=vec_all,
        head_w=head_w,
        head_b=head_b,
    )


if __name__ == "__main__":
    key = jax.random.PRNGKey(0)
    k_v, k_a = jax.random.split(key)
    # Stand-ins for the pretrained backbone outputs (see TODO at top of file).
    video_features = jax.random.normal(k_v, (B, S, D_VID), jnp.float32)   # ViViT hidden_states[-1]
    audio_features = jax.random.normal(k_a, (1, D_AUD), jnp.float32)      # EmotionModel pooled states

    params = init_params(0)
    pleasure, arousal, dominance = audio_visual_transformer(
        video_features, audio_features, params)
    jax.block_until_ready((pleasure, arousal, dominance))

    assert pleasure.shape == (B, 1)
    assert arousal.shape == (B, 1)
    assert dominance.shape == (B, 1)
    print("KERNEL_OK")
</pallas_src>

<mosaic_0001>
module attributes {stable_mosaic.version = 11 : i64} {
  func.func @fusion_kernel(%arg0: memref<16x768xbf16, #tpu.memory_space<vmem>>, %arg1: memref<768x32xbf16, #tpu.memory_space<vmem>>, %arg2: memref<1x32xf32, #tpu.memory_space<vmem>>, %arg3: memref<4x1x32xf32, #tpu.memory_space<vmem>>, %arg4: memref<3x32x96xbf16, #tpu.memory_space<vmem>>, %arg5: memref<3x3x32x32xbf16, #tpu.memory_space<vmem>>, %arg6: memref<3x10x32xf32, #tpu.memory_space<vmem>>, %arg7: memref<2x32xf32, #tpu.memory_space<vmem>>) attributes {dimension_semantics = [], scalar_prefetch = 0 : i64, scratch_operands = 0 : i64, tpu.core_type = #tpu.core_type<tc>} {
    %c0 = arith.constant 0 : index
    %c0_0 = arith.constant 0 : index
    %0 = vector.load %arg0[%c0, %c0_0] : memref<16x768xbf16, #tpu.memory_space<vmem>>, vector<16x768xbf16>
    %c0_1 = arith.constant 0 : index
    %c0_2 = arith.constant 0 : index
    %1 = vector.load %arg1[%c0_1, %c0_2] : memref<768x32xbf16, #tpu.memory_space<vmem>>, vector<768x32xbf16>
    %cst = arith.constant dense<0.000000e+00> : vector<16x32xf32>
    %2 = tpu.matmul %0, %1, %cst {dimension_numbers = #tpu.dot_dimension_numbers<[1], [0], [0], [1], [0, 0, 1, 1], [], []>} : vector<16x768xbf16>, vector<768x32xbf16>, vector<16x32xf32> -> vector<16x32xf32>
    %c0_3 = arith.constant 0 : index
    %c0_4 = arith.constant 0 : index
    %3 = vector.load %arg2[%c0_3, %c0_4] : memref<1x32xf32, #tpu.memory_space<vmem>>, vector<1x32xf32>
    %4 = vector.broadcast %3 : vector<1x32xf32> to vector<16x32xf32>
    %5 = arith.addf %2, %4 : vector<16x32xf32>
    %c0_5 = arith.constant 0 : index
    %c0_6 = arith.constant 0 : index
    %c0_7 = arith.constant 0 : index
    %6 = vector.load %arg3[%c0_5, %c0_6, %c0_7] : memref<4x1x32xf32, #tpu.memory_space<vmem>>, vector<4x1x32xf32>
    %c0_8 = arith.constant 0 : index
    %c0_9 = arith.constant 0 : index
    %c0_10 = arith.constant 0 : index
    %7 = vector.load %arg4[%c0_8, %c0_9, %c0_10] : memref<3x32x96xbf16, #tpu.memory_space<vmem>>, vector<1x32x96xbf16>
    %8 = vector.shape_cast %7 : vector<1x32x96xbf16> to vector<32x96xbf16>
    %c0_11 = arith.constant 0 : index
    %c0_12 = arith.constant 0 : index
    %c0_13 = arith.constant 0 : index
    %c0_14 = arith.constant 0 : index
    %9 = vector.load %arg5[%c0_11, %c0_12, %c0_13, %c0_14] : memref<3x3x32x32xbf16, #tpu.memory_space<vmem>>, vector<1x3x32x32xbf16>
    %10 = vector.shape_cast %9 : vector<1x3x32x32xbf16> to vector<3x32x32xbf16>
    %c0_15 = arith.constant 0 : index
    %c0_16 = arith.constant 0 : index
    %c0_17 = arith.constant 0 : index
    %11 = vector.load %arg6[%c0_15, %c0_16, %c0_17] : memref<3x10x32xf32, #tpu.memory_space<vmem>>, vector<1x10x32xf32>
    %12 = vector.shape_cast %11 : vector<1x10x32xf32> to vector<10x32xf32>
    %13 = arith.truncf %5 : vector<16x32xf32> to vector<16x32xbf16>
    %cst_18 = arith.constant dense<0.000000e+00> : vector<16x96xf32>
    %14 = tpu.matmul %13, %8, %cst_18 {dimension_numbers = #tpu.dot_dimension_numbers<[1], [0], [0], [1], [0, 0, 1, 1], [], []>} : vector<16x32xbf16>, vector<32x96xbf16>, vector<16x96xf32> -> vector<16x96xf32>
    %15 = vector.extract_strided_slice %14 {offsets = [0, 0], sizes = [16, 32], strides = [1, 1]} : vector<16x96xf32> to vector<16x32xf32>
    %16 = vector.extract_strided_slice %12 {offsets = [0, 0], sizes = [1, 32], strides = [1, 1]} : vector<10x32xf32> to vector<1x32xf32>
    %17 = vector.broadcast %16 : vector<1x32xf32> to vector<16x32xf32>
    %18 = arith.addf %15, %17 : vector<16x32xf32>
    %19 = vector.extract_strided_slice %14 {offsets = [0, 32], sizes = [16, 32], strides = [1, 1]} : vector<16x96xf32> to vector<16x32xf32>
    %20 = vector.extract_strided_slice %12 {offsets = [1, 0], sizes = [1, 32], strides = [1, 1]} : vector<10x32xf32> to vector<1x32xf32>
    %21 = vector.broadcast %20 : vector<1x32xf32> to vector<16x32xf32>
    %22 = arith.addf %19, %21 : vector<16x32xf32>
    %23 = vector.extract_strided_slice %14 {offsets = [0, 64], sizes = [16, 32], strides = [1, 1]} : vector<16x96xf32> to vector<16x32xf32>
    %24 = vector.extract_strided_slice %12 {offsets = [2, 0], sizes = [1, 32], strides = [1, 1]} : vector<10x32xf32> to vector<1x32xf32>
    %25 = vector.broadcast %24 : vector<1x32xf32> to vector<16x32xf32>
    %26 = arith.addf %23, %25 : vector<16x32xf32>
    %27 = vector.shape_cast %18 : vector<16x32xf32> to vector<2x1x8x32xf32>
    %28 = vector.shape_cast %6 : vector<4x1x32xf32> to vector<1x4x1x32xf32>
    %29 = vector.broadcast %27 : vector<2x1x8x32xf32> to vector<2x4x8x32xf32>
    %30 = vector.broadcast %28 : vector<1x4x1x32xf32> to vector<2x4x8x32xf32>
    %31 = arith.mulf %29, %30 : vector<2x4x8x32xf32>
    %32 = vector.shape_cast %31 : vector<2x4x8x32xf32> to vector<8x8x32xf32>
    %33 = vector.shape_cast %26 : vector<16x32xf32> to vector<2x1x8x32xf32>
    %34 = vector.shape_cast %6 : vector<4x1x32xf32> to vector<1x4x1x32xf32>
    %35 = vector.broadcast %33 : vector<2x1x8x32xf32> to vector<2x4x8x32xf32>
    %36 = vector.broadcast %34 : vector<1x4x1x32xf32> to vector<2x4x8x32xf32>
    %37 = arith.mulf %35, %36 : vector<2x4x8x32xf32>
    %38 = vector.shape_cast %37 : vector<2x4x8x32xf32> to vector<8x8x32xf32>
    %39 = vector.shape_cast %22 : vector<16x32xf32> to vector<2x1x8x32xf32>
    %40 = vector.shape_cast %39 : vector<2x1x8x32xf32> to vector<2x1x8x32xf32>
    %41 = vector.broadcast %40 : vector<2x1x8x32xf32> to vector<2x4x8x32xf32>
    %42 = vector.shape_cast %41 : vector<2x4x8x32xf32> to vector<8x8x32xf32>
    %43 = arith.truncf %32 : vector<8x8x32xf32> to vector<8x8x32xbf16>
    %44 = arith.truncf %42 : vector<8x8x32xf32> to vector<8x8x32xbf16>
    "tpu.trace_start"() <{level = 10 : i32, message = "gqe,gke->gqk"}> : () -> ()
    %cst_19 = arith.constant dense<0.000000e+00> : vector<8x8x8xf32>
    %45 = tpu.matmul %43, %44, %cst_19 {dimension_numbers = #tpu.dot_dimension_numbers<[2], [2], [1], [1], [0, 0, 0, 1, 1, 1], [0], [0]>} : vector<8x8x32xbf16>, vector<8x8x32xbf16>, vector<8x8x8xf32> -> vector<8x8x8xf32>
    "tpu.trace_stop"() : () -> ()
    %cst_20 = arith.constant dense<0xFF800000> : vector<8x8xf32>
    %46 = vector.multi_reduction <maximumf>, %45, %cst_20 [2] : vector<8x8x8xf32> to vector<8x8xf32>
    %47 = vector.shape_cast %46 : vector<8x8xf32> to vector<8x8x1xf32>
    %48 = vector.broadcast %47 : vector<8x8x1xf32> to vector<8x8x8xf32>
    %49 = arith.subf %45, %48 : vector<8x8x8xf32>
    %50 = math.exp %49 : vector<8x8x8xf32>
    %cst_21 = arith.constant dense<0.000000e+00> : vector<8x8xf32>
    %51 = vector.multi_reduction <add>, %50, %cst_21 [2] : vector<8x8x8xf32> to vector<8x8xf32>
    %52 = vector.shape_cast %51 : vector<8x8xf32> to vector<8x8x1xf32>
    %53 = tpu.reciprocal %52 {approx = true} : vector<8x8x1xf32> -> vector<8x8x1xf32>
    %54 = vector.broadcast %53 : vector<8x8x1xf32> to vector<8x8x8xf32>
    %55 = arith.mulf %50, %54 : vector<8x8x8xf32>
    %56 = arith.truncf %55 : vector<8x8x8xf32> to vector<8x8x8xbf16>
    %57 = arith.truncf %38 : vector<8x8x32xf32> to vector<8x8x32xbf16>
    "tpu.trace_start"() <{level = 10 : i32, message = "gqk,gke->gqe"}> : () -> ()
    %cst_22 = arith.constant dense<0.000000e+00> : vector<8x8x32xf32>
    %58 = tpu.matmul %56, %57, %cst_22 {dimension_numbers = #tpu.dot_dimension_numbers<[2], [1], [1], [2], [0, 0, 0, 1, 1, 2], [0], [0]>} : vector<8x8x8xbf16>, vector<8x8x32xbf16>, vector<8x8x32xf32> -> vector<8x8x32xf32>
    "tpu.trace_stop"() : () -> ()
    %59 = vector.shape_cast %58 : vector<8x8x32xf32> to vector<2x4x8x32xf32>
    %cst_23 = arith.constant dense<0.000000e+00> : vector<2x8x32xf32>
    %60 = vector.multi_reduction <add>, %59, %cst_23 [1] : vector<2x4x8x32xf32> to vector<2x8x32xf32>
    %61 = vector.shape_cast %60 : vector<2x8x32xf32> to vector<16x32xf32>
    %62 = arith.truncf %61 : vector<16x32xf32> to vector<16x32xbf16>
    %63 = vector.extract_strided_slice %10 {offsets = [0, 0, 0], sizes = [1, 32, 32], strides = [1, 1, 1]} : vector<3x32x32xbf16> to vector<1x32x32xbf16>
    %64 = vector.shape_cast %63 : vector<1x32x32xbf16> to vector<32x32xbf16>
    %cst_24 = arith.constant dense<0.000000e+00> : vector<16x32xf32>
    %65 = tpu.matmul %62, %64, %cst_24 {dimension_numbers = #tpu.dot_dimension_numbers<[1], [0], [0], [1], [0, 0, 1, 1], [], []>} : vector<16x32xbf16>, vector<32x32xbf16>, vector<16x32xf32> -> vector<16x32xf32>
    %66 = vector.extract_strided_slice %12 {offsets = [3, 0], sizes = [1, 32], strides = [1, 1]} : vector<10x32xf32> to vector<1x32xf32>
    %67 = vector.broadcast %66 : vector<1x32xf32> to vector<16x32xf32>
    %68 = arith.addf %65, %67 : vector<16x32xf32>
    %69 = arith.addf %5, %68 : vector<16x32xf32>
    %70 = vector.extract_strided_slice %12 {offsets = [6, 0], sizes = [1, 32], strides = [1, 1]} : vector<10x32xf32> to vector<1x32xf32>
    %71 = vector.extract_strided_slice %12 {offsets = [7, 0], sizes = [1, 32], strides = [1, 1]} : vector<10x32xf32> to vector<1x32xf32>
    %cst_25 = arith.constant dense<0.000000e+00> : vector<16xf32>
    %72 = vector.multi_reduction <add>, %69, %cst_25 [1] : vector<16x32xf32> to vector<16xf32>
    %73 = vector.shape_cast %72 : vector<16xf32> to vector<16x1xf32>
    %cst_26 = arith.constant 3.200000e+01 : f32
    %74 = vector.broadcast %cst_26 : f32 to vector<16x1xf32>
    %75 = arith.divf %73, %74 : vector<16x1xf32>
    %76 = vector.broadcast %75 : vector<16x1xf32> to vector<16x32xf32>
    %77 = arith.subf %69, %76 : vector<16x32xf32>
    %78 = arith.mulf %77, %77 : vector<16x32xf32>
    %cst_27 = arith.constant dense<0.000000e+00> : vector<16xf32>
    %79 = vector.multi_reduction <add>, %78, %cst_27 [1] : vector<16x32xf32> to vector<16xf32>
    %80 = vector.shape_cast %79 : vector<16xf32> to vector<16x1xf32>
    %cst_28 = arith.constant 3.200000e+01 : f32
    %81 = vector.broadcast %cst_28 : f32 to vector<16x1xf32>
    %82 = arith.divf %80, %81 : vector<16x1xf32>
    %83 = vector.broadcast %75 : vector<16x1xf32> to vector<16x32xf32>
    %84 = arith.subf %69, %83 : vector<16x32xf32>
    %cst_29 = arith.constant 9.99999974E-6 : f32
    %85 = vector.broadcast %cst_29 : f32 to vector<16x1xf32>
    %86 = arith.addf %82, %85 : vector<16x1xf32>
    %87 = math.rsqrt %86 : vector<16x1xf32>
    %88 = vector.broadcast %87 : vector<16x1xf32> to vector<16x32xf32>
    %89 = arith.mulf %84, %88 : vector<16x32xf32>
    %90 = vector.broadcast %70 : vector<1x32xf32> to vector<16x32xf32>
    %91 = arith.mulf %89, %90 : vector<16x32xf32>
    %92 = vector.broadcast %71 : vector<1x32xf32> to vector<16x32xf32>
    %93 = arith.addf %91, %92 : vector<16x32xf32>
    %94 = arith.truncf %93 : vector<16x32xf32> to vector<16x32xbf16>
    %95 = vector.extract_strided_slice %10 {offsets = [1, 0, 0], sizes = [1, 32, 32], strides = [1, 1, 1]} : vector<3x32x32xbf16> to vector<1x32x32xbf16>
    %96 = vector.shape_cast %95 : vector<1x32x32xbf16> to vector<32x32xbf16>
    %cst_30 = arith.constant dense<0.000000e+00> : vector<16x32xf32>
    %97 = tpu.matmul %94, %96, %cst_30 {dimension_numbers = #tpu.dot_dimension_numbers<[1], [0], [0], [1], [0, 0, 1, 1], [], []>} : vector<16x32xbf16>, vector<32x32xbf16>, vector<16x32xf32> -> vector<16x32xf32>
    %98 = vector.extract_strided_slice %12 {offsets = [4, 0], sizes = [1, 32], strides = [1, 1]} : vector<10x32xf32> to vector<1x32xf32>
    %99 = vector.broadcast %98 : vector<1x32xf32> to vector<16x32xf32>
    %100 = arith.addf %97, %99 : vector<16x32xf32>
    %cst_31 = arith.constant 0.000000e+00 : f32
    %101 = vector.broadcast %cst_31 : f32 to vector<16x32xf32>
    %102 = arith.maximumf %100, %101 : vector<16x32xf32>
    %103 = arith.truncf %102 : vector<16x32xf32> to vector<16x32xbf16>
    %104 = vector.extract_strided_slice %10 {offsets = [2, 0, 0], sizes = [1, 32, 32], strides = [1, 1, 1]} : vector<3x32x32xbf16> to vector<1x32x32xbf16>
    %105 = vector.shape_cast %104 : vector<1x32x32xbf16> to vector<32x32xbf16>
    %cst_32 = arith.constant dense<0.000000e+00> : vector<16x32xf32>
    %106 = tpu.matmul %103, %105, %cst_32 {dimension_numbers = #tpu.dot_dimension_numbers<[1], [0], [0], [1], [0, 0, 1, 1], [], []>} : vector<16x32xbf16>, vector<32x32xbf16>, vector<16x32xf32> -> vector<16x32xf32>
    %107 = vector.extract_strided_slice %12 {offsets = [5, 0], sizes = [1, 32], strides = [1, 1]} : vector<10x32xf32> to vector<1x32xf32>
    %108 = vector.broadcast %107 : vector<1x32xf32> to vector<16x32xf32>
    %109 = arith.addf %106, %108 : vector<16x32xf32>
    %110 = arith.addf %93, %109 : vector<16x32xf32>
    %111 = vector.extract_strided_slice %12 {offsets = [8, 0], sizes = [1, 32], strides = [1, 1]} : vector<10x32xf32> to vector<1x32xf32>
    %112 = vector.extract_strided_slice %12 {offsets = [9, 0], sizes = [1, 32], strides = [1, 1]} : vector<10x32xf32> to vector<1x32xf32>
    %cst_33 = arith.constant dense<0.000000e+00> : vector<16xf32>
    %113 = vector.multi_reduction <add>, %110, %cst_33 [1] : vector<16x32xf32> to vector<16xf32>
    %114 = vector.shape_cast %113 : vector<16xf32> to vector<16x1xf32>
    %cst_34 = arith.constant 3.200000e+01 : f32
    %115 = vector.broadcast %cst_34 : f32 to vector<16x1xf32>
    %116 = arith.divf %114, %115 : vector<16x1xf32>
    %117 = vector.broadcast %116 : vector<16x1xf32> to vector<16x32xf32>
    %118 = arith.subf %110, %117 : vector<16x32xf32>
    %119 = arith.mulf %118, %118 : vector<16x32xf32>
    %cst_35 = arith.constant dense<0.000000e+00> : vector<16xf32>
    %120 = vector.multi_reduction <add>, %119, %cst_35 [1] : vector<16x32xf32> to vector<16xf32>
    %121 = vector.shape_cast %120 : vector<16xf32> to vector<16x1xf32>
    %cst_36 = arith.constant 3.200000e+01 : f32
    %122 = vector.broadcast %cst_36 : f32 to vector<16x1xf32>
    %123 = arith.divf %121, %122 : vector<16x1xf32>
    %124 = vector.broadcast %116 : vector<16x1xf32> to vector<16x32xf32>
    %125 = arith.subf %110, %124 : vector<16x32xf32>
    %cst_37 = arith.constant 9.99999974E-6 : f32
    %126 = vector.broadcast %cst_37 : f32 to vector<16x1xf32>
    %127 = arith.addf %123, %126 : vector<16x1xf32>
    %128 = math.rsqrt %127 : vector<16x1xf32>
    %129 = vector.broadcast %128 : vector<16x1xf32> to vector<16x32xf32>
    %130 = arith.mulf %125, %129 : vector<16x32xf32>
    %131 = vector.broadcast %111 : vector<1x32xf32> to vector<16x32xf32>
    %132 = arith.mulf %130, %131 : vector<16x32xf32>
    %133 = vector.broadcast %112 : vector<1x32xf32> to vector<16x32xf32>
    %134 = arith.addf %132, %133 : vector<16x32xf32>
    %c1 = arith.constant 1 : index
    %c0_38 = arith.constant 0 : index
    %c0_39 = arith.constant 0 : index
    %135 = vector.load %arg4[%c1, %c0_38, %c0_39] : memref<3x32x96xbf16, #tpu.memory_space<vmem>>, vector<1x32x96xbf16>
    %136 = vector.shape_cast %135 : vector<1x32x96xbf16> to vector<32x96xbf16>
    %c1_40 = arith.constant 1 : index
    %c0_41 = arith.constant 0 : index
    %c0_42 = arith.constant 0 : index
    %c0_43 = arith.constant 0 : index
    %137 = vector.load %arg5[%c1_40, %c0_41, %c0_42, %c0_43] : memref<3x3x32x32xbf16, #tpu.memory_space<vmem>>, vector<1x3x32x32xbf16>
    %138 = vector.shape_cast %137 : vector<1x3x32x32xbf16> to vector<3x32x32xbf16>
    %c1_44 = arith.constant 1 : index
    %c0_45 = arith.constant 0 : index
    %c0_46 = arith.constant 0 : index
    %139 = vector.load %arg6[%c1_44, %c0_45, %c0_46] : memref<3x10x32xf32, #tpu.memory_space<vmem>>, vector<1x10x32xf32>
    %140 = vector.shape_cast %139 : vector<1x10x32xf32> to vector<10x32xf32>
    %141 = arith.truncf %134 : vector<16x32xf32> to vector<16x32xbf16>
    %cst_47 = arith.constant dense<0.000000e+00> : vector<16x96xf32>
    %142 = tpu.matmul %141, %136, %cst_47 {dimension_numbers = #tpu.dot_dimension_numbers<[1], [0], [0], [1], [0, 0, 1, 1], [], []>} : vector<16x32xbf16>, vector<32x96xbf16>, vector<16x96xf32> -> vector<16x96xf32>
    %143 = vector.extract_strided_slice %142 {offsets = [0, 0], sizes = [16, 32], strides = [1, 1]} : vector<16x96xf32> to vector<16x32xf32>
    %144 = vector.extract_strided_slice %140 {offsets = [0, 0], sizes = [1, 32], strides = [1, 1]} : vector<10x32xf32> to vector<1x32xf32>
    %145 = vector.broadcast %144 : vector<1x32xf32> to vector<16x32xf32>
    %146 = arith.addf %143, %145 : vector<16x32xf32>
    %147 = vector.extract_strided_slice %142 {offsets = [0, 32], sizes = [16, 32], strides = [1, 1]} : vector<16x96xf32> to vector<16x32xf32>
    %148 = vector.extract_strided_slice %140 {offsets = [1, 0], sizes = [1, 32], strides = [1, 1]} : vector<10x32xf32> to vector<1x32xf32>
    %149 = vector.broadcast %148 : vector<1x32xf32> to vector<16x32xf32>
    %150 = arith.addf %147, %149 : vector<16x32xf32>
    %151 = vector.extract_strided_slice %142 {offsets = [0, 64], sizes = [16, 32], strides = [1, 1]} : vector<16x96xf32> to vector<16x32xf32>
    %152 = vector.extract_strided_slice %140 {offsets = [2, 0], sizes = [1, 32], strides = [1, 1]} : vector<10x32xf32> to vector<1x32xf32>
    %153 = vector.broadcast %152 : vector<1x32xf32> to vector<16x32xf32>
    %154 = arith.addf %151, %153 : vector<16x32xf32>
    %155 = vector.shape_cast %146 : vector<16x32xf32> to vector<2x1x8x32xf32>
    %156 = vector.shape_cast %6 : vector<4x1x32xf32> to vector<1x4x1x32xf32>
    %157 = vector.broadcast %155 : vector<2x1x8x32xf32> to vector<2x4x8x32xf32>
    %158 = vector.broadcast %156 : vector<1x4x1x32xf32> to vector<2x4x8x32xf32>
    %159 = arith.mulf %157, %158 : vector<2x4x8x32xf32>
    %160 = vector.shape_cast %159 : vector<2x4x8x32xf32> to vector<8x8x32xf32>
    %161 = vector.shape_cast %154 : vector<16x32xf32> to vector<2x1x8x32xf32>
    %162 = vector.shape_cast %6 : vector<4x1x32xf32> to vector<1x4x1x32xf32>
    %163 = vector.broadcast %161 : vector<2x1x8x32xf32> to vector<2x4x8x32xf32>
    %164 = vector.broadcast %162 : vector<1x4x1x32xf32> to vector<2x4x8x32xf32>
    %165 = arith.mulf %163, %164 : vector<2x4x8x32xf32>
    %166 = vector.shape_cast %165 : vector<2x4x8x32xf32> to vector<8x8x32xf32>
    %167 = vector.shape_cast %150 : vector<16x32xf32> to vector<2x1x8x32xf32>
    %168 = vector.shape_cast %167 : vector<2x1x8x32xf32> to vector<2x1x8x32xf32>
    %169 = vector.broadcast %168 : vector<2x1x8x32xf32> to vector<2x4x8x32xf32>
    %170 = vector.shape_cast %169 : vector<2x4x8x32xf32> to vector<8x8x32xf32>
    %171 = arith.truncf %160 : vector<8x8x32xf32> to vector<8x8x32xbf16>
    %172 = arith.truncf %170 : vector<8x8x32xf32> to vector<8x8x32xbf16>
    "tpu.trace_start"() <{level = 10 : i32, message = "gqe,gke->gqk"}> : () -> ()
    %cst_48 = arith.constant dense<0.000000e+00> : vector<8x8x8xf32>
    %173 = tpu.matmul %171, %172, %cst_48 {dimension_numbers = #tpu.dot_dimension_numbers<[2], [2], [1], [1], [0, 0, 0, 1, 1, 1], [0], [0]>} : vector<8x8x32xbf16>, vector<8x8x32xbf16>, vector<8x8x8xf32> -> vector<8x8x8xf32>
    "tpu.trace_stop"() : () -> ()
    %cst_49 = arith.constant dense<0xFF800000> : vector<8x8xf32>
    %174 = vector.multi_reduction <maximumf>, %173, %cst_49 [2] : vector<8x8x8xf32> to vector<8x8xf32>
    %175 = vector.shape_cast %174 : vector<8x8xf32> to vector<8x8x1xf32>
    %176 = vector.broadcast %175 : vector<8x8x1xf32> to vector<8x8x8xf32>
    %177 = arith.subf %173, %176 : vector<8x8x8xf32>
    %178 = math.exp %177 : vector<8x8x8xf32>
    %cst_50 = arith.constant dense<0.000000e+00> : vector<8x8xf32>
    %179 = vector.multi_reduction <add>, %178, %cst_50 [2] : vector<8x8x8xf32> to vector<8x8xf32>
    %180 = vector.shape_cast %179 : vector<8x8xf32> to vector<8x8x1xf32>
    %181 = tpu.reciprocal %180 {approx = true} : vector<8x8x1xf32> -> vector<8x8x1xf32>
    %182 = vector.broadcast %181 : vector<8x8x1xf32> to vector<8x8x8xf32>
    %183 = arith.mulf %178, %182 : vector<8x8x8xf32>
    %184 = arith.truncf %183 : vector<8x8x8xf32> to vector<8x8x8xbf16>
    %185 = arith.truncf %166 : vector<8x8x32xf32> to vector<8x8x32xbf16>
    "tpu.trace_start"() <{level = 10 : i32, message = "gqk,gke->gqe"}> : () -> ()
    %cst_51 = arith.constant dense<0.000000e+00> : vector<8x8x32xf32>
    %186 = tpu.matmul %184, %185, %cst_51 {dimension_numbers = #tpu.dot_dimension_numbers<[2], [1], [1], [2], [0, 0, 0, 1, 1, 2], [0], [0]>} : vector<8x8x8xbf16>, vector<8x8x32xbf16>, vector<8x8x32xf32> -> vector<8x8x32xf32>
    "tpu.trace_stop"() : () -> ()
    %187 = vector.shape_cast %186 : vector<8x8x32xf32> to vector<2x4x8x32xf32>
    %cst_52 = arith.constant dense<0.000000e+00> : vector<2x8x32xf32>
    %188 = vector.multi_reduction <add>, %187, %cst_52 [1] : vector<2x4x8x32xf32> to vector<2x8x32xf32>
    %189 = vector.shape_cast %188 : vector<2x8x32xf32> to vector<16x32xf32>
    %190 = arith.truncf %189 : vector<16x32xf32> to vector<16x32xbf16>
    %191 = vector.extract_strided_slice %138 {offsets = [0, 0, 0], sizes = [1, 32, 32], strides = [1, 1, 1]} : vector<3x32x32xbf16> to vector<1x32x32xbf16>
    %192 = vector.shape_cast %191 : vector<1x32x32xbf16> to vector<32x32xbf16>
    %cst_53 = arith.constant dense<0.000000e+00> : vector<16x32xf32>
    %193 = tpu.matmul %190, %192, %cst_53 {dimension_numbers = #tpu.dot_dimension_numbers<[1], [0], [0], [1], [0, 0, 1, 1], [], []>} : vector<16x32xbf16>, vector<32x32xbf16>, vector<16x32xf32> -> vector<16x32xf32>
    %194 = vector.extract_strided_slice %140 {offsets = [3, 0], sizes = [1, 32], strides = [1, 1]} : vector<10x32xf32> to vector<1x32xf32>
    %195 = vector.broadcast %194 : vector<1x32xf32> to vector<16x32xf32>
    %196 = arith.addf %193, %195 : vector<16x32xf32>
    %197 = arith.addf %134, %196 : vector<16x32xf32>
    %198 = vector.extract_strided_slice %140 {offsets = [6, 0], sizes = [1, 32], strides = [1, 1]} : vector<10x32xf32> to vector<1x32xf32>
    %199 = vector.extract_strided_slice %140 {offsets = [7, 0], sizes = [1, 32], strides = [1, 1]} : vector<10x32xf32> to vector<1x32xf32>
    %cst_54 = arith.constant dense<0.000000e+00> : vector<16xf32>
    %200 = vector.multi_reduction <add>, %197, %cst_54 [1] : vector<16x32xf32> to vector<16xf32>
    %201 = vector.shape_cast %200 : vector<16xf32> to vector<16x1xf32>
    %cst_55 = arith.constant 3.200000e+01 : f32
    %202 = vector.broadcast %cst_55 : f32 to vector<16x1xf32>
    %203 = arith.divf %201, %202 : vector<16x1xf32>
    %204 = vector.broadcast %203 : vector<16x1xf32> to vector<16x32xf32>
    %205 = arith.subf %197, %204 : vector<16x32xf32>
    %206 = arith.mulf %205, %205 : vector<16x32xf32>
    %cst_56 = arith.constant dense<0.000000e+00> : vector<16xf32>
    %207 = vector.multi_reduction <add>, %206, %cst_56 [1] : vector<16x32xf32> to vector<16xf32>
    %208 = vector.shape_cast %207 : vector<16xf32> to vector<16x1xf32>
    %cst_57 = arith.constant 3.200000e+01 : f32
    %209 = vector.broadcast %cst_57 : f32 to vector<16x1xf32>
    %210 = arith.divf %208, %209 : vector<16x1xf32>
    %211 = vector.broadcast %203 : vector<16x1xf32> to vector<16x32xf32>
    %212 = arith.subf %197, %211 : vector<16x32xf32>
    %cst_58 = arith.constant 9.99999974E-6 : f32
    %213 = vector.broadcast %cst_58 : f32 to vector<16x1xf32>
    %214 = arith.addf %210, %213 : vector<16x1xf32>
    %215 = math.rsqrt %214 : vector<16x1xf32>
    %216 = vector.broadcast %215 : vector<16x1xf32> to vector<16x32xf32>
    %217 = arith.mulf %212, %216 : vector<16x32xf32>
    %218 = vector.broadcast %198 : vector<1x32xf32> to vector<16x32xf32>
    %219 = arith.mulf %217, %218 : vector<16x32xf32>
    %220 = vector.broadcast %199 : vector<1x32xf32> to vector<16x32xf32>
    %221 = arith.addf %219, %220 : vector<16x32xf32>
    %222 = arith.truncf %221 : vector<16x32xf32> to vector<16x32xbf16>
    %223 = vector.extract_strided_slice %138 {offsets = [1, 0, 0], sizes = [1, 32, 32], strides = [1, 1, 1]} : vector<3x32x32xbf16> to vector<1x32x32xbf16>
    %224 = vector.shape_cast %223 : vector<1x32x32xbf16> to vector<32x32xbf16>
    %cst_59 = arith.constant dense<0.000000e+00> : vector<16x32xf32>
    %225 = tpu.matmul %222, %224, %cst_59 {dimension_numbers = #tpu.dot_dimension_numbers<[1], [0], [0], [1], [0, 0, 1, 1], [], []>} : vector<16x32xbf16>, vector<32x32xbf16>, vector<16x32xf32> -> vector<16x32xf32>
    %226 = vector.extract_strided_slice %140 {offsets = [4, 0], sizes = [1, 32], strides = [1, 1]} : vector<10x32xf32> to vector<1x32xf32>
    %227 = vector.broadcast %226 : vector<1x32xf32> to vector<16x32xf32>
    %228 = arith.addf %225, %227 : vector<16x32xf32>
    %cst_60 = arith.constant 0.000000e+00 : f32
    %229 = vector.broadcast %cst_60 : f32 to vector<16x32xf32>
    %230 = arith.maximumf %228, %229 : vector<16x32xf32>
    %231 = arith.truncf %230 : vector<16x32xf32> to vector<16x32xbf16>
    %232 = vector.extract_strided_slice %138 {offsets = [2, 0, 0], sizes = [1, 32, 32], strides = [1, 1, 1]} : vector<3x32x32xbf16> to vector<1x32x32xbf16>
    %233 = vector.shape_cast %232 : vector<1x32x32xbf16> to vector<32x32xbf16>
    %cst_61 = arith.constant dense<0.000000e+00> : vector<16x32xf32>
    %234 = tpu.matmul %231, %233, %cst_61 {dimension_numbers = #tpu.dot_dimension_numbers<[1], [0], [0], [1], [0, 0, 1, 1], [], []>} : vector<16x32xbf16>, vector<32x32xbf16>, vector<16x32xf32> -> vector<16x32xf32>
    %235 = vector.extract_strided_slice %140 {offsets = [5, 0], sizes = [1, 32], strides = [1, 1]} : vector<10x32xf32> to vector<1x32xf32>
    %236 = vector.broadcast %235 : vector<1x32xf32> to vector<16x32xf32>
    %237 = arith.addf %234, %236 : vector<16x32xf32>
    %238 = arith.addf %221, %237 : vector<16x32xf32>
    %239 = vector.extract_strided_slice %140 {offsets = [8, 0], sizes = [1, 32], strides = [1, 1]} : vector<10x32xf32> to vector<1x32xf32>
    %240 = vector.extract_strided_slice %140 {offsets = [9, 0], sizes = [1, 32], strides = [1, 1]} : vector<10x32xf32> to vector<1x32xf32>
    %cst_62 = arith.constant dense<0.000000e+00> : vector<16xf32>
    %241 = vector.multi_reduction <add>, %238, %cst_62 [1] : vector<16x32xf32> to vector<16xf32>
    %242 = vector.shape_cast %241 : vector<16xf32> to vector<16x1xf32>
    %cst_63 = arith.constant 3.200000e+01 : f32
    %243 = vector.broadcast %cst_63 : f32 to vector<16x1xf32>
    %244 = arith.divf %242, %243 : vector<16x1xf32>
    %245 = vector.broadcast %244 : vector<16x1xf32> to vector<16x32xf32>
    %246 = arith.subf %238, %245 : vector<16x32xf32>
    %247 = arith.mulf %246, %246 : vector<16x32xf32>
    %cst_64 = arith.constant dense<0.000000e+00> : vector<16xf32>
    %248 = vector.multi_reduction <add>, %247, %cst_64 [1] : vector<16x32xf32> to vector<16xf32>
    %249 = vector.shape_cast %248 : vector<16xf32> to vector<16x1xf32>
    %cst_65 = arith.constant 3.200000e+01 : f32
    %250 = vector.broadcast %cst_65 : f32 to vector<16x1xf32>
    %251 = arith.divf %249, %250 : vector<16x1xf32>
    %252 = vector.broadcast %244 : vector<16x1xf32> to vector<16x32xf32>
    %253 = arith.subf %238, %252 : vector<16x32xf32>
    %cst_66 = arith.constant 9.99999974E-6 : f32
    %254 = vector.broadcast %cst_66 : f32 to vector<16x1xf32>
    %255 = arith.addf %251, %254 : vector<16x1xf32>
    %256 = math.rsqrt %255 : vector<16x1xf32>
    %257 = vector.broadcast %256 : vector<16x1xf32> to vector<16x32xf32>
    %258 = arith.mulf %253, %257 : vector<16x32xf32>
    %259 = vector.broadcast %239 : vector<1x32xf32> to vector<16x32xf32>
    %260 = arith.mulf %258, %259 : vector<16x32xf32>
    %261 = vector.broadcast %240 : vector<1x32xf32> to vector<16x32xf32>
    %262 = arith.addf %260, %261 : vector<16x32xf32>
    %c2 = arith.constant 2 : index
    %c0_67 = arith.constant 0 : index
    %c0_68 = arith.constant 0 : index
    %263 = vector.load %arg4[%c2, %c0_67, %c0_68] : memref<3x32x96xbf16, #tpu.memory_space<vmem>>, vector<1x32x96xbf16>
    %264 = vector.shape_cast %263 : vector<1x32x96xbf16> to vector<32x96xbf16>
    %c2_69 = arith.constant 2 : index
    %c0_70 = arith.constant 0 : index
    %c0_71 = arith.constant 0 : index
    %c0_72 = arith.constant 0 : index
    %265 = vector.load %arg5[%c2_69, %c0_70, %c0_71, %c0_72] : memref<3x3x32x32xbf16, #tpu.memory_space<vmem>>, vector<1x3x32x32xbf16>
    %266 = vector.shape_cast %265 : vector<1x3x32x32xbf16> to vector<3x32x32xbf16>
    %c2_73 = arith.constant 2 : index
    %c0_74 = arith.constant 0 : index
    %c0_75 = arith.constant 0 : index
    %267 = vector.load %arg6[%c2_73, %c0_74, %c0_75] : memref<3x10x32xf32, #tpu.memory_space<vmem>>, vector<1x10x32xf32>
    %268 = vector.shape_cast %267 : vector<1x10x32xf32> to vector<10x32xf32>
    %269 = arith.truncf %262 : vector<16x32xf32> to vector<16x32xbf16>
    %cst_76 = arith.constant dense<0.000000e+00> : vector<16x96xf32>
    %270 = tpu.matmul %269, %264, %cst_76 {dimension_numbers = #tpu.dot_dimension_numbers<[1], [0], [0], [1], [0, 0, 1, 1], [], []>} : vector<16x32xbf16>, vector<32x96xbf16>, vector<16x96xf32> -> vector<16x96xf32>
    %271 = vector.extract_strided_slice %270 {offsets = [0, 0], sizes = [16, 32], strides = [1, 1]} : vector<16x96xf32> to vector<16x32xf32>
    %272 = vector.extract_strided_slice %268 {offsets = [0, 0], sizes = [1, 32], strides = [1, 1]} : vector<10x32xf32> to vector<1x32xf32>
    %273 = vector.broadcast %272 : vector<1x32xf32> to vector<16x32xf32>
    %274 = arith.addf %271, %273 : vector<16x32xf32>
    %275 = vector.extract_strided_slice %270 {offsets = [0, 32], sizes = [16, 32], strides = [1, 1]} : vector<16x96xf32> to vector<16x32xf32>
    %276 = vector.extract_strided_slice %268 {offsets = [1, 0], sizes = [1, 32], strides = [1, 1]} : vector<10x32xf32> to vector<1x32xf32>
    %277 = vector.broadcast %276 : vector<1x32xf32> to vector<16x32xf32>
    %278 = arith.addf %275, %277 : vector<16x32xf32>
    %279 = vector.extract_strided_slice %270 {offsets = [0, 64], sizes = [16, 32], strides = [1, 1]} : vector<16x96xf32> to vector<16x32xf32>
    %280 = vector.extract_strided_slice %268 {offsets = [2, 0], sizes = [1, 32], strides = [1, 1]} : vector<10x32xf32> to vector<1x32xf32>
    %281 = vector.broadcast %280 : vector<1x32xf32> to vector<16x32xf32>
    %282 = arith.addf %279, %281 : vector<16x32xf32>
    %283 = vector.shape_cast %274 : vector<16x32xf32> to vector<2x1x8x32xf32>
    %284 = vector.shape_cast %6 : vector<4x1x32xf32> to vector<1x4x1x32xf32>
    %285 = vector.broadcast %283 : vector<2x1x8x32xf32> to vector<2x4x8x32xf32>
    %286 = vector.broadcast %284 : vector<1x4x1x32xf32> to vector<2x4x8x32xf32>
    %287 = arith.mulf %285, %286 : vector<2x4x8x32xf32>
    %288 = vector.shape_cast %287 : vector<2x4x8x32xf32> to vector<8x8x32xf32>
    %289 = vector.shape_cast %282 : vector<16x32xf32> to vector<2x1x8x32xf32>
    %290 = vector.shape_cast %6 : vector<4x1x32xf32> to vector<1x4x1x32xf32>
    %291 = vector.broadcast %289 : vector<2x1x8x32xf32> to vector<2x4x8x32xf32>
    %292 = vector.broadcast %290 : vector<1x4x1x32xf32> to vector<2x4x8x32xf32>
    %293 = arith.mulf %291, %292 : vector<2x4x8x32xf32>
    %294 = vector.shape_cast %293 : vector<2x4x8x32xf32> to vector<8x8x32xf32>
    %295 = vector.shape_cast %278 : vector<16x32xf32> to vector<2x1x8x32xf32>
    %296 = vector.shape_cast %295 : vector<2x1x8x32xf32> to vector<2x1x8x32xf32>
    %297 = vector.broadcast %296 : vector<2x1x8x32xf32> to vector<2x4x8x32xf32>
    %298 = vector.shape_cast %297 : vector<2x4x8x32xf32> to vector<8x8x32xf32>
    %299 = arith.truncf %288 : vector<8x8x32xf32> to vector<8x8x32xbf16>
    %300 = arith.truncf %298 : vector<8x8x32xf32> to vector<8x8x32xbf16>
    "tpu.trace_start"() <{level = 10 : i32, message = "gqe,gke->gqk"}> : () -> ()
    %cst_77 = arith.constant dense<0.000000e+00> : vector<8x8x8xf32>
    %301 = tpu.matmul %299, %300, %cst_77 {dimension_numbers = #tpu.dot_dimension_numbers<[2], [2], [1], [1], [0, 0, 0, 1, 1, 1], [0], [0]>} : vector<8x8x32xbf16>, vector<8x8x32xbf16>, vector<8x8x8xf32> -> vector<8x8x8xf32>
    "tpu.trace_stop"() : () -> ()
    %cst_78 = arith.constant dense<0xFF800000> : vector<8x8xf32>
    %302 = vector.multi_reduction <maximumf>, %301, %cst_78 [2] : vector<8x8x8xf32> to vector<8x8xf32>
    %303 = vector.shape_cast %302 : vector<8x8xf32> to vector<8x8x1xf32>
    %304 = vector.broadcast %303 : vector<8x8x1xf32> to vector<8x8x8xf32>
    %305 = arith.subf %301, %304 : vector<8x8x8xf32>
    %306 = math.exp %305 : vector<8x8x8xf32>
    %cst_79 = arith.constant dense<0.000000e+00> : vector<8x8xf32>
    %307 = vector.multi_reduction <add>, %306, %cst_79 [2] : vector<8x8x8xf32> to vector<8x8xf32>
    %308 = vector.shape_cast %307 : vector<8x8xf32> to vector<8x8x1xf32>
    %309 = tpu.reciprocal %308 {approx = true} : vector<8x8x1xf32> -> vector<8x8x1xf32>
    %310 = vector.broadcast %309 : vector<8x8x1xf32> to vector<8x8x8xf32>
    %311 = arith.mulf %306, %310 : vector<8x8x8xf32>
    %312 = arith.truncf %311 : vector<8x8x8xf32> to vector<8x8x8xbf16>
    %313 = arith.truncf %294 : vector<8x8x32xf32> to vector<8x8x32xbf16>
    "tpu.trace_start"() <{level = 10 : i32, message = "gqk,gke->gqe"}> : () -> ()
    %cst_80 = arith.constant dense<0.000000e+00> : vector<8x8x32xf32>
    %314 = tpu.matmul %312, %313, %cst_80 {dimension_numbers = #tpu.dot_dimension_numbers<[2], [1], [1], [2], [0, 0, 0, 1, 1, 2], [0], [0]>} : vector<8x8x8xbf16>, vector<8x8x32xbf16>, vector<8x8x32xf32> -> vector<8x8x32xf32>
    "tpu.trace_stop"() : () -> ()
    %315 = vector.shape_cast %314 : vector<8x8x32xf32> to vector<2x4x8x32xf32>
    %cst_81 = arith.constant dense<0.000000e+00> : vector<2x8x32xf32>
    %316 = vector.multi_reduction <add>, %315, %cst_81 [1] : vector<2x4x8x32xf32> to vector<2x8x32xf32>
    %317 = vector.shape_cast %316 : vector<2x8x32xf32> to vector<16x32xf32>
    %318 = arith.truncf %317 : vector<16x32xf32> to vector<16x32xbf16>
    %319 = vector.extract_strided_slice %266 {offsets = [0, 0, 0], sizes = [1, 32, 32], strides = [1, 1, 1]} : vector<3x32x32xbf16> to vector<1x32x32xbf16>
    %320 = vector.shape_cast %319 : vector<1x32x32xbf16> to vector<32x32xbf16>
    %cst_82 = arith.constant dense<0.000000e+00> : vector<16x32xf32>
    %321 = tpu.matmul %318, %320, %cst_82 {dimension_numbers = #tpu.dot_dimension_numbers<[1], [0], [0], [1], [0, 0, 1, 1], [], []>} : vector<16x32xbf16>, vector<32x32xbf16>, vector<16x32xf32> -> vector<16x32xf32>
    %322 = vector.extract_strided_slice %268 {offsets = [3, 0], sizes = [1, 32], strides = [1, 1]} : vector<10x32xf32> to vector<1x32xf32>
    %323 = vector.broadcast %322 : vector<1x32xf32> to vector<16x32xf32>
    %324 = arith.addf %321, %323 : vector<16x32xf32>
    %325 = arith.addf %262, %324 : vector<16x32xf32>
    %326 = vector.extract_strided_slice %268 {offsets = [6, 0], sizes = [1, 32], strides = [1, 1]} : vector<10x32xf32> to vector<1x32xf32>
    %327 = vector.extract_strided_slice %268 {offsets = [7, 0], sizes = [1, 32], strides = [1, 1]} : vector<10x32xf32> to vector<1x32xf32>
    %cst_83 = arith.constant dense<0.000000e+00> : vector<16xf32>
    %328 = vector.multi_reduction <add>, %325, %cst_83 [1] : vector<16x32xf32> to vector<16xf32>
    %329 = vector.shape_cast %328 : vector<16xf32> to vector<16x1xf32>
    %cst_84 = arith.constant 3.200000e+01 : f32
    %330 = vector.broadcast %cst_84 : f32 to vector<16x1xf32>
    %331 = arith.divf %329, %330 : vector<16x1xf32>
    %332 = vector.broadcast %331 : vector<16x1xf32> to vector<16x32xf32>
    %333 = arith.subf %325, %332 : vector<16x32xf32>
    %334 = arith.mulf %333, %333 : vector<16x32xf32>
    %cst_85 = arith.constant dense<0.000000e+00> : vector<16xf32>
    %335 = vector.multi_reduction <add>, %334, %cst_85 [1] : vector<16x32xf32> to vector<16xf32>
    %336 = vector.shape_cast %335 : vector<16xf32> to vector<16x1xf32>
    %cst_86 = arith.constant 3.200000e+01 : f32
    %337 = vector.broadcast %cst_86 : f32 to vector<16x1xf32>
    %338 = arith.divf %336, %337 : vector<16x1xf32>
    %339 = vector.broadcast %331 : vector<16x1xf32> to vector<16x32xf32>
    %340 = arith.subf %325, %339 : vector<16x32xf32>
    %cst_87 = arith.constant 9.99999974E-6 : f32
    %341 = vector.broadcast %cst_87 : f32 to vector<16x1xf32>
    %342 = arith.addf %338, %341 : vector<16x1xf32>
    %343 = math.rsqrt %342 : vector<16x1xf32>
    %344 = vector.broadcast %343 : vector<16x1xf32> to vector<16x32xf32>
    %345 = arith.mulf %340, %344 : vector<16x32xf32>
    %346 = vector.broadcast %326 : vector<1x32xf32> to vector<16x32xf32>
    %347 = arith.mulf %345, %346 : vector<16x32xf32>
    %348 = vector.broadcast %327 : vector<1x32xf32> to vector<16x32xf32>
    %349 = arith.addf %347, %348 : vector<16x32xf32>
    %350 = arith.truncf %349 : vector<16x32xf32> to vector<16x32xbf16>
    %351 = vector.extract_strided_slice %266 {offsets = [1, 0, 0], sizes = [1, 32, 32], strides = [1, 1, 1]} : vector<3x32x32xbf16> to vector<1x32x32xbf16>
    %352 = vector.shape_cast %351 : vector<1x32x32xbf16> to vector<32x32xbf16>
    %cst_88 = arith.constant dense<0.000000e+00> : vector<16x32xf32>
    %353 = tpu.matmul %350, %352, %cst_88 {dimension_numbers = #tpu.dot_dimension_numbers<[1], [0], [0], [1], [0, 0, 1, 1], [], []>} : vector<16x32xbf16>, vector<32x32xbf16>, vector<16x32xf32> -> vector<16x32xf32>
    %354 = vector.extract_strided_slice %268 {offsets = [4, 0], sizes = [1, 32], strides = [1, 1]} : vector<10x32xf32> to vector<1x32xf32>
    %355 = vector.broadcast %354 : vector<1x32xf32> to vector<16x32xf32>
    %356 = arith.addf %353, %355 : vector<16x32xf32>
    %cst_89 = arith.constant 0.000000e+00 : f32
    %357 = vector.broadcast %cst_89 : f32 to vector<16x32xf32>
    %358 = arith.maximumf %356, %357 : vector<16x32xf32>
    %359 = arith.truncf %358 : vector<16x32xf32> to vector<16x32xbf16>
    %360 = vector.extract_strided_slice %266 {offsets = [2, 0, 0], sizes = [1, 32, 32], strides = [1, 1, 1]} : vector<3x32x32xbf16> to vector<1x32x32xbf16>
    %361 = vector.shape_cast %360 : vector<1x32x32xbf16> to vector<32x32xbf16>
    %cst_90 = arith.constant dense<0.000000e+00> : vector<16x32xf32>
    %362 = tpu.matmul %359, %361, %cst_90 {dimension_numbers = #tpu.dot_dimension_numbers<[1], [0], [0], [1], [0, 0, 1, 1], [], []>} : vector<16x32xbf16>, vector<32x32xbf16>, vector<16x32xf32> -> vector<16x32xf32>
    %363 = vector.extract_strided_slice %268 {offsets = [5, 0], sizes = [1, 32], strides = [1, 1]} : vector<10x32xf32> to vector<1x32xf32>
    %364 = vector.broadcast %363 : vector<1x32xf32> to vector<16x32xf32>
    %365 = arith.addf %362, %364 : vector<16x32xf32>
    %366 = arith.addf %349, %365 : vector<16x32xf32>
    %367 = vector.extract_strided_slice %268 {offsets = [8, 0], sizes = [1, 32], strides = [1, 1]} : vector<10x32xf32> to vector<1x32xf32>
    %368 = vector.extract_strided_slice %268 {offsets = [9, 0], sizes = [1, 32], strides = [1, 1]} : vector<10x32xf32> to vector<1x32xf32>
    %cst_91 = arith.constant dense<0.000000e+00> : vector<16xf32>
    %369 = vector.multi_reduction <add>, %366, %cst_91 [1] : vector<16x32xf32> to vector<16xf32>
    %370 = vector.shape_cast %369 : vector<16xf32> to vector<16x1xf32>
    %cst_92 = arith.constant 3.200000e+01 : f32
    %371 = vector.broadcast %cst_92 : f32 to vector<16x1xf32>
    %372 = arith.divf %370, %371 : vector<16x1xf32>
    %373 = vector.broadcast %372 : vector<16x1xf32> to vector<16x32xf32>
    %374 = arith.subf %366, %373 : vector<16x32xf32>
    %375 = arith.mulf %374, %374 : vector<16x32xf32>
    %cst_93 = arith.constant dense<0.000000e+00> : vector<16xf32>
    %376 = vector.multi_reduction <add>, %375, %cst_93 [1] : vector<16x32xf32> to vector<16xf32>
    %377 = vector.shape_cast %376 : vector<16xf32> to vector<16x1xf32>
    %cst_94 = arith.constant 3.200000e+01 : f32
    %378 = vector.broadcast %cst_94 : f32 to vector<16x1xf32>
    %379 = arith.divf %377, %378 : vector<16x1xf32>
    %380 = vector.broadcast %372 : vector<16x1xf32> to vector<16x32xf32>
    %381 = arith.subf %366, %380 : vector<16x32xf32>
    %cst_95 = arith.constant 9.99999974E-6 : f32
    %382 = vector.broadcast %cst_95 : f32 to vector<16x1xf32>
    %383 = arith.addf %379, %382 : vector<16x1xf32>
    %384 = math.rsqrt %383 : vector<16x1xf32>
    %385 = vector.broadcast %384 : vector<16x1xf32> to vector<16x32xf32>
    %386 = arith.mulf %381, %385 : vector<16x32xf32>
    %387 = vector.broadcast %367 : vector<1x32xf32> to vector<16x32xf32>
    %388 = arith.mulf %386, %387 : vector<16x32xf32>
    %389 = vector.broadcast %368 : vector<1x32xf32> to vector<16x32xf32>
    %390 = arith.addf %388, %389 : vector<16x32xf32>
    %391 = vector.shape_cast %390 : vector<16x32xf32> to vector<2x8x32xf32>
    %cst_96 = arith.constant dense<0.000000e+00> : vector<2x32xf32>
    %392 = vector.multi_reduction <add>, %391, %cst_96 [1] : vector<2x8x32xf32> to vector<2x32xf32>
    %cst_97 = arith.constant 8.000000e+00 : f32
    %393 = vector.broadcast %cst_97 : f32 to vector<2x32xf32>
    %394 = arith.divf %392, %393 : vector<2x32xf32>
    %c0_98 = arith.constant 0 : index
    %c0_99 = arith.constant 0 : index
    %395 = vector.load %arg7[%c0_98, %c0_99] : memref<2x32xf32, #tpu.memory_space<vmem>>, vector<2x32xf32>
    tpu.vector_store %arg7[%c0_98, %c0_99], %394 {strides = array<i32>} : memref<2x32xf32, #tpu.memory_space<vmem>>, vector<2x32xf32>,
    return
  }
}

</mosaic_0001>

<bundles_post_ra>
// kernel: _avt_core.1
= control target key start
LH: loop header
LB: loop body
LE: loop exit
PB: predicated region body
PF: predicated region fallthrough
CT: control target
= control target key end

     0   :  { %v5400_v55 = vmov 0.0   ;;  %vm5401_vm0 = vmmov 0   ;;  %v657_v57 = vlaneseq  ;;  %s5402_s21 = smov 32   ;;  %vm612_vm1 = vcmask 261120   ;;  %s5404_s9 = smov 64   ;;  %s6561_s1 = inlined_call_operand.vmem [shape: bf16[768,32], index: 1, kind: input, shape index: {}]   ;;  %s6562_s0 = inlined_call_operand.vmem [shape: bf16[16,768], index: 0, kind: input, shape index: {}]   ;;  %s6563_s4 = inlined_call_operand.vmem [shape: bf16[3,32,96], index: 4, kind: input, shape index: {}]   ;;  %s6564_s6 = inlined_call_operand.vmem [shape: f32[3,10,32], index: 6, kind: input, shape index: {}]   ;;  %s6565_s2 = inlined_call_operand.vmem [shape: f32[1,32], index: 2, kind: input, shape index: {}]   ;;  %s6566_s3 = inlined_call_operand.vmem [shape: f32[4,1,32], index: 3, kind: input, shape index: {}]   ;;  %s6567_s5 = inlined_call_operand.vmem [shape: bf16[3,3,32,32], index: 5, kind: input, shape index: {}]   ;;  %s6568_s7 = inlined_call_operand.vmem [shape: f32[2,32], index: 7, kind: output, shape index: {}]  }
   0x1   :  { %v5195_v0 = vld [vmem:[%s6561_s1 + $0x40] sm:$0xff]   ;;  %v5199_v4 = vld [vmem:[%s6561_s1 + $0x48] sm:$0xff]   ;;  %v5203_v8 = vld [vmem:[%s6561_s1 + $0x50] sm:$0xff]   ;;  %vm1101_vm2 = vcmask 64512   ;;  %vm1212_vm3 = vcmask 1043456   ;;  %vm4420_vm4 = vcmask 1041409  }
   0x2   :  { %v5196_v1 = vld [vmem:[%s6561_s1] sm:$0xff]   ;;  %4608 = vmatprep.subr.bf16.mxu0 %v5195_v0  ;;  %v5200_v5 = vld [vmem:[%s6561_s1 + $0x8] sm:$0xff]   ;;  %v5204_v9 = vld [vmem:[%s6561_s1 + $0x10] sm:$0xff]   ;;  %v5621_v58 = vshrl.u32 %v657_v57, 7  ;;  %vm4423_vm5 = vcmask 254976  }
   0x3   :  { %v5197_v2 = vld [vmem:[%s6561_s1 + $0xc0] sm:$0xff]   ;;  %4609 = vmatpush3.bf16.msra.mxu0 %v5196_v1  ;;  %v5201_v6 = vld [vmem:[%s6561_s1 + $0xc8] sm:$0xff]   ;;  %v5205_v10 = vld [vmem:[%s6561_s1 + $0xd0] sm:$0xff]  }
   0x4   :  { %v5198_v3 = vld [vmem:[%s6561_s1 + $0x80] sm:$0xff]   ;;  %4630 = vmatprep.subr.bf16.mxu1 %v5197_v2  ;;  %4610 = vmatprep.subr.bf16.mxu0 %v5199_v4  ;;  %v5202_v7 = vld [vmem:[%s6561_s1 + $0x88] sm:$0xff]   ;;  %v5206_v11 = vld [vmem:[%s6561_s1 + $0x90] sm:$0xff]   ;;  %v5629_v60 = vsub.s32 1, %v5621_v58 }
   0x5   :  { %4631 = vmatpush3.bf16.msra.mxu1 %v5198_v3  ;;  %v5207_v12 = vld [vmem:[%s6561_s1 + $0x58] sm:$0xff]   ;;  %v5211_v16 = vld [vmem:[%s6561_s1 + $0x60] sm:$0xff]   ;;  %v5215_v20 = vld [vmem:[%s6561_s1 + $0x68] sm:$0xff]  }
   0x6   :  { %4632 = vmatprep.subr.bf16.mxu1 %v5201_v6  ;;  %v5208_v13 = vld [vmem:[%s6561_s1 + $0x18] sm:$0xff]   ;;  %v5212_v17 = vld [vmem:[%s6561_s1 + $0x20] sm:$0xff]   ;;  %v5216_v21 = vld [vmem:[%s6561_s1 + $0x28] sm:$0xff]  }
   0x7   :  { %4611 = vmatpush3.bf16.msra.mxu0 %v5200_v5  ;;  %v5209_v14 = vld [vmem:[%s6561_s1 + $0xd8] sm:$0xff]   ;;  %v5213_v18 = vld [vmem:[%s6561_s1 + $0xe0] sm:$0xff]   ;;  %v5217_v22 = vld [vmem:[%s6561_s1 + $0xe8] sm:$0xff]  }
   0x8   :  { %4612 = vmatprep.subr.bf16.mxu0 %v5203_v8  ;;  %v5210_v15 = vld [vmem:[%s6561_s1 + $0x98] sm:$0xff]   ;;  %v5214_v19 = vld [vmem:[%s6561_s1 + $0xa0] sm:$0xff]   ;;  %v5218_v23 = vld [vmem:[%s6561_s1 + $0xa8] sm:$0xff]  }
   0x9   :  { %4633 = vmatpush3.bf16.msra.mxu1 %v5202_v7  ;;  %v5219_v24 = vld [vmem:[%s6561_s1 + $0x70] sm:$0xff]   ;;  %v5223_v28 = vld [vmem:[%s6561_s1 + $0x78] sm:$0xff]   ;;  %v5230_v34 = vld [vmem:[%s6561_s1 + $0x140] sm:$0xff]  }
   0xa   :  { %4634 = vmatprep.subr.bf16.mxu1 %v5205_v10  ;;  %v5220_v25 = vld [vmem:[%s6561_s1 + $0x30] sm:$0xff]   ;;  %v5224_v29 = vld [vmem:[%s6561_s1 + $0x38] sm:$0xff]   ;;  %v5231_v35 = vld [vmem:[%s6562_s0 + $0x8] ss:$24 sps:$4 sm:$0xff]  }
   0xb   :  { %4613 = vmatpush3.bf16.msra.mxu0 %v5204_v9  ;;  %v5221_v26 = vld [vmem:[%s6561_s1 + $0xf0] sm:$0xff]   ;;  %v5225_v30 = vld [vmem:[%s6561_s1 + $0xf8] sm:$0xff]   ;;  %v5233_v36 = vld [vmem:[%s6562_s0 + $0xc] ss:$24 sps:$4 sm:$0xff]  }
   0xc   :  { %4614 = vmatprep.subr.bf16.mxu0 %v5207_v12  ;;  %v5222_v27 = vld [vmem:[%s6561_s1 + $0xb0] sm:$0xff]   ;;  %v5226_v31 = vld [vmem:[%s6562_s0] ss:$24 sps:$4 sm:$0xff]   ;;  %v5228_v32 = vld [vmem:[%s6562_s0 + $0x4] ss:$24 sps:$4 sm:$0xff]   ;;  %527 = vmatprep.mubr.bf16.mxu1 %v5233_v36 }
   0xd   :  { %4635 = vmatpush3.bf16.msra.mxu1 %v5206_v11  ;;  %v5229_v33 = vld [vmem:[%s6561_s1 + $0xb8] sm:$0xff]   ;;  %486 = vmatprep.mubr.bf16.mxu0 %v5228_v32  ;;  %v5234_v37 = vld [vmem:[%s6561_s1 + $0x100] sm:$0xff]   ;;  %v5235_v38 = vld [vmem:[%s6561_s1 + $0x148] sm:$0xff]  }
   0xe   :  { %4636 = vmatprep.subr.bf16.mxu1 %v5209_v14  ;;  %v5236_v39 = vld [vmem:[%s6561_s1 + $0x108] sm:$0xff]   ;;  %v5237_v40 = vld [vmem:[%s6561_s1 + $0x150] sm:$0xff]   ;;  %v5239_v42 = vld [vmem:[%s6561_s1 + $0x158] sm:$0xff]  }
   0xf   :  { %4615 = vmatpush3.bf16.msra.mxu0 %v5208_v13  ;;  %v5238_v41 = vld [vmem:[%s6561_s1 + $0x110] sm:$0xff]   ;;  %v5240_v43 = vld [vmem:[%s6561_s1 + $0x118] sm:$0xff]   ;;  %v5241_v44 = vld [vmem:[%s6561_s1 + $0x160] sm:$0xff]  }
  0x10   :  { %4616 = vmatprep.subr.bf16.mxu0 %v5211_v16  ;;  %v5242_v45 = vld [vmem:[%s6561_s1 + $0x120] sm:$0xff]   ;;  %v5243_v46 = vld [vmem:[%s6561_s1 + $0x168] sm:$0xff]   ;;  %v5245_v49 = vld [vmem:[%s6561_s1 + $0x170] sm:$0xff]  }
  0x11   :  { %4637 = vmatpush3.bf16.msra.mxu1 %v5210_v15  ;;  %v5251_v47 = vld [vmem:[%s6562_s0 + $0x14] ss:$24 sps:$4 sm:$0xff]   ;;  %v5247_v51 = vld [vmem:[%s6561_s1 + $0x178] sm:$0xff]   ;;  %v5249_v53 = vld [vmem:[%s6562_s0 + $0x10] ss:$24 sps:$4 sm:$0xff]  }
  0x12   :  { %4638 = vmatprep.subr.bf16.mxu1 %v5213_v18  ;;  %v5244_v48 = vld [vmem:[%s6561_s1 + $0x128] sm:$0xff]   ;;  %v5246_v50 = vld [vmem:[%s6561_s1 + $0x130] sm:$0xff]   ;;  %v5248_v52 = vld [vmem:[%s6561_s1 + $0x138] sm:$0xff]  }
  0x13   :  { %4617 = vmatpush3.bf16.msra.mxu0 %v5212_v17  ;;  %v5252_v54 = vld [vmem:[%s6563_s4] sm:$0xff]   ;;  %v5253_v56 = vld [vmem:[%s6563_s4 + $0x8] sm:$0xff]  }
  0x14   :  { %4618 = vmatprep.subr.bf16.mxu0 %v5215_v20  ;;  %v5626_v59 = vld [vmem:[%s6564_s6] sm:$0xff] }
  0x15   :  { %4639 = vmatpush3.bf16.msra.mxu1 %v5214_v19  ;;  %v666_v61 = vrot.slane %v5626_v59, %v5629_v60  ;;  %v4429_v63 = vld [vmem:[%s6565_s2] ss:$0 sm:$0xff]  ;;  %s5403_s2 = smov 96  }
  0x16   :  { %4640 = vmatprep.subr.bf16.mxu1 %v5217_v22  ;;  %v5663_v36 = vld [vmem:[%s6566_s3] ss:$0 sm:$0xff] }
  0x17   :  { %4619 = vmatpush3.bf16.msra.mxu0 %v5216_v21  ;;  %668 = vrot.lane.b32.xlu0 %v666_v61, %s5402_s21 }
  0x18   :  { %4620 = vmatprep.subr.bf16.mxu0 %v5219_v24 }
  0x19   :  { %4641 = vmatpush3.bf16.msra.mxu1 %v5218_v23 }
  0x1a   :  { %4642 = vmatprep.subr.bf16.mxu1 %v5221_v26 }
  0x1b   :  { %4621 = vmatpush3.bf16.msra.mxu0 %v5220_v25 }
  0x1c   :  { %4622 = vmatprep.subr.bf16.mxu0 %v5223_v28 }
  0x1d   :  { %4643 = vmatpush3.bf16.msra.mxu1 %v5222_v27 }
  0x1e   :  { %4644 = vmatprep.subr.bf16.mxu1 %v5225_v30 }
  0x1f   :  { %4623 = vmatpush3.bf16.msra.mxu0 %v5224_v29 }
  0x20   :  { %4652 = vmatprep.subr.bf16.mxu0 %v5230_v34 }
  0x21   :  { %4645 = vmatpush3.bf16.msra.mxu1 %v5229_v33  ;;  %v5655_v33 = vsub.s32 0, %v5621_v58 }
  0x22   :  { %487 = vmatmul.mubr.bf16.vlgmr.msra.gmra.mrb[0].mxu0 %v5226_v31  ;;  %4806 = vmatprep.subr.bf16.mxu1 %v5400_v55 }
  0x23   :  { %4653 = vmatpush3.bf16.msra.mxu0 %v5234_v37  ;;  %568 = vmatprep.mubr.bf16.mxu0 %v5251_v47  ;;  %v660_v34 = vrot.slane %v5626_v59, %v5655_v33  ;;  %v5668_v37 = vld [vmem:[%s6566_s3 + $0x3] ss:$0 sm:$0xff] }
  0x24   :  { %528 = vmatmul.mubr.bf16.vlgmr.msra.gmra.mrb[0].mxu1 %v5231_v35  ;;  %4654 = vmatprep.subr.bf16.mxu0 %v5235_v38 }
  0x25   :  { %4807 = vmatpush3.bf16.msra.mxu1 %v5252_v54  ;;  %4810 = vmatprep.mubr.msk.bf16.mxu1 %vm5401_vm0, %v5400_v55 }
  0x26   :  { %4808 = vmatprep.subr.bf16.mxu1 %v5400_v55 }
  0x27   :  { %4655 = vmatpush3.bf16.msra.mxu0 %v5236_v39 }
  0x28   :  { %4656 = vmatprep.subr.bf16.mxu0 %v5237_v40 }
  0x29   :  { %4809 = vmatpush3.bf16.msra.mxu1 %v5253_v56 }
  0x2a   :  { %4814 = vmatprep.subr.bf16.mxu1 %v5400_v55 }
  0x2b   :  { %4657 = vmatpush3.bf16.msra.mxu0 %v5238_v41 }
  0x2c   :  { %4658 = vmatprep.subr.bf16.mxu0 %v5239_v42 }
  0x2f   :  { %4659 = vmatpush3.bf16.msra.mxu0 %v5240_v43 }
  0x30   :  { %4660 = vmatprep.subr.bf16.mxu0 %v5241_v44 }
  0x33   :  { %4661 = vmatpush3.bf16.msra.mxu0 %v5242_v45 }
  0x34   :  { %4662 = vmatprep.subr.bf16.mxu0 %v5243_v46  ;;  %v5679_v46 = vld [vmem:[%s6566_s3 + $0x1] ss:$0 sm:$0xff] }
  0x37   :  { %4663 = vmatpush3.bf16.msra.mxu0 %v5244_v48 }
  0x38   :  { %4664 = vmatprep.subr.bf16.mxu0 %v5245_v49 }
  0x3b   :  { %4665 = vmatpush3.bf16.msra.mxu0 %v5246_v50 }
  0x3c   :  { %4666 = vmatprep.subr.bf16.mxu0 %v5247_v51 }
  0x3f   :  { %4667 = vmatpush3.bf16.msra.mxu0 %v5248_v52  ;;  %v5695_v52 = vld [vmem:[%s6566_s3 + $0x2] ss:$0 sm:$0xff] }
  0x40   :  { %4832 = vmatprep.subr.bf16.mxu0 %v5400_v55 }
  0x42   :  { %569 = vmatmul.mubr.bf16.vlgmr.msra.gmra.mrb[4].mxu0 %v5249_v53 }
  0x43   :  { %4834 = vmatprep.mubr.msk.bf16.mxu0 %vm5401_vm0, %v5400_v55 }
  0x89   :  { %v669_v24 = vpop.permute.xlu0 %668 }
  0xf5   :  { %v4624_v62 = vpop.f32.mrb[0].mxu0 }
  0xf6   :  { %v4625_v0 = vpop.f32.mrb[1].mxu0 }
  0xf7   :  { %v4626_v1 = vadd.f32 %v4625_v0, %v4624_v62  ;;  %v4627_v2 = vpop.f32.mrb[2].mxu0  ;;  %v4646_v3 = vpop.f32.mrb[0].mxu1 }
  0xf8   :  { %v4628_v4 = vpop.f32.mrb[3].mxu0  ;;  %v4647_v7 = vpop.f32.mrb[1].mxu1 }
  0xf9   :  { %v489_v5 = vadd.f32 %v4626_v1, %v4429_v63  ;;  %v4629_v6 = vadd.f32 %v4628_v4, %v4627_v2  ;;  %v4648_v8 = vadd.f32 %v4647_v7, %v4646_v3  ;;  %v4649_v9 = vpop.f32.mrb[2].mxu1 }
  0xfa   :  { %v4650_v11 = vpop.f32.mrb[3].mxu1 }
  0xfb   :  { %v492_v10 = vadd.f32 %v4629_v6, %v4429_v63  ;;  %v530_v12 = vadd.f32 %v4648_v8, %v489_v5  ;;  %v4651_v13 = vadd.f32 %v4650_v11, %v4649_v9 }
  0xfd   :  { %v533_v14 = vadd.f32 %v4651_v13, %v492_v10 }
 0x115   :  { %v4668_v15 = vpop.f32.mrb[4].mxu0 }
 0x116   :  { %v4669_v16 = vpop.f32.mrb[5].mxu0 }
 0x117   :  { %v4670_v17 = vadd.f32 %v4669_v16, %v4668_v15  ;;  %v4671_v18 = vpop.f32.mrb[6].mxu0 }
 0x118   :  { %v4672_v19 = vpop.f32.mrb[7].mxu0 }
 0x119   :  { %v5637_v20 = vadd.f32 %v4670_v17, %v530_v12  ;;  %v4673_v21 = vadd.f32 %v4672_v19, %v4671_v18 }
 0x11b   :  { %v5639_v22 = vadd.f32 %v4673_v21, %v533_v14 }
 0x11d   :  { %v599_v23 = vpack.c.bf16 %v5639_v22, %v5637_v20 }
 0x11f   :  { %4811 = vmatmul.mubr.msk.bf16.vlgmr.msra.gmra.mrb[4].mxu1 %vm612_vm1, %v599_v23 }
 0x120   :  { %4816 = vmatprep.mubr.msk.bf16.mxu1 %vm5401_vm0, %v5400_v55 }
 0x1f2   :  { %v5646_v25 = vpop.f32.mrb[4].mxu1 }
 0x1f3   :  { %v671_v26 = vadd.f32 %v669_v24, %v5646_v25  ;;  %v4812_v27 = vpop.f32.mrb[5].mxu1  ;;  %v661_v35 = vadd.f32 %v660_v34, %v5646_v25 }
 0x1f4   :  { %v5649_v28 = vpop.f32.mrb[6].mxu1 }
 0x1f5   :  { %v4813_v29 = vpop.f32.mrb[7].mxu1  ;;  %v743_v30 = vpack.c.bf16 %v671_v26, %v671_v26  ;;  %v672_v31 = vadd.f32 %v669_v24, %v5649_v28  ;;  %v707_v40 = vmul.f32 %v5663_v36, %v661_v35  ;;  %v710_v41 = vmul.f32 %v5668_v37, %v661_v35 }
 0x1f6   :  { %v662_v43 = vadd.f32 %v660_v34, %v5649_v28  ;;  %v708_v48 = vmul.f32 %v5679_v46, %v661_v35  ;;  %v709_v53 = vmul.f32 %v5695_v52, %v661_v35 }
 0x1f7   :  { %746 = vrot.lane.b32.xlu0 %v743_v30, %s5403_s2  ;;  %v744_v32 = vpack.c.bf16 %v672_v31, %v672_v31  ;;  %v735_v44 = vpack.c.bf16 %v707_v40, %v707_v40  ;;  %v738_v45 = vpack.c.bf16 %v710_v41, %v710_v41 }
 0x1f8   :  { %v712_v49 = vmul.f32 %v5679_v46, %v662_v43  ;;  %v736_v50 = vpack.c.bf16 %v708_v48, %v708_v48  ;;  %v714_v54 = vmul.f32 %v5668_v37, %v662_v43  ;;  %v737_v56 = vpack.c.bf16 %v709_v53, %v709_v53 }
 0x1f9   :  { %924 = vrot.lane.b32.xlu1 %v744_v32, %s5403_s2  ;;  %v711_v61 = vmul.f32 %v5663_v36, %v662_v43  ;;  %v713_v63 = vmul.f32 %v5695_v52, %v662_v43  ;;  %v5755_v48 = vsub.s32 2, %v5621_v58 }
 0x1fa   :  { %v740_v51 = vpack.c.bf16 %v712_v49, %v712_v49  ;;  %v742_v57 = vpack.c.bf16 %v714_v54, %v714_v54 }
 0x1fb   :  { %v739_v62 = vpack.c.bf16 %v711_v61, %v711_v61  ;;  %v741_v0 = vpack.c.bf16 %v713_v63, %v713_v63  ;;  %v676_v49 = vrot.slane %v5626_v59, %v5755_v48 }
 0x269   :  { %v747_v38 = vpop.permute.xlu0 %746 }
 0x26a   :  { %v752_v39 = vsel %vm612_vm1, %v747_v38, 0 }
 0x26b   :  { %4815 = vmatpush3.bf16.xpose.msra.mxu1 %v752_v39  ;;  %4833 = vmatpush3.bf16.xpose.msra.mxu0 %v752_v39  ;;  %v925_v42 = vpop.permute.xlu1 %924 }
 0x26c   :  { %4820 = vmatprep.subr.bf16.mxu1 %v5400_v55  ;;  %4844 = vmatprep.subr.bf16.mxu0 %v5400_v55  ;;  %v930_v47 = vsel %vm612_vm1, %v925_v42, 0 }
 0x272   :  { %4817 = vmatmul.mubr.msk.bf16.vlgmr.msra.gmra.mrb[8].mxu1 %vm612_vm1, %v735_v44  ;;  %4835 = vmatmul.mubr.msk.bf16.vlgmr.msra.gmra.mrb[8].mxu0 %vm612_vm1, %v738_v45 }
 0x273   :  { %4821 = vmatpush3.bf16.xpose.msra.mxu1 %v752_v39  ;;  %4845 = vmatpush3.bf16.xpose.msra.mxu0 %v930_v47 }
 0x274   :  { %4822 = vmatprep.mubr.msk.bf16.mxu1 %vm5401_vm0, %v5400_v55  ;;  %4846 = vmatprep.mubr.msk.bf16.mxu0 %vm5401_vm0, %v5400_v55 }
 0x275   :  { %4826 = vmatprep.subr.bf16.mxu1 %v5400_v55  ;;  %4856 = vmatprep.subr.bf16.mxu0 %v5400_v55 }
 0x27a   :  { %4823 = vmatmul.mubr.msk.bf16.vlgmr.msra.gmra.mrb[12].mxu1 %vm612_vm1, %v736_v50  ;;  %4847 = vmatmul.mubr.msk.bf16.vlgmr.msra.gmra.mrb[12].mxu0 %vm612_vm1, %v740_v51 }
 0x27b   :  { %4827 = vmatpush3.bf16.xpose.msra.mxu1 %v752_v39  ;;  %4857 = vmatpush3.bf16.xpose.msra.mxu0 %v930_v47 }
 0x27c   :  { %4828 = vmatprep.mubr.msk.bf16.mxu1 %vm5401_vm0, %v5400_v55  ;;  %4858 = vmatprep.mubr.msk.bf16.mxu0 %vm5401_vm0, %v5400_v55 }
 0x27d   :  { %4838 = vmatprep.subr.bf16.mxu1 %v5400_v55  ;;  %4868 = vmatprep.subr.bf16.mxu0 %v5400_v55 }
 0x282   :  { %4829 = vmatmul.mubr.msk.bf16.vlgmr.msra.gmra.mrb[16].mxu1 %vm612_vm1, %v737_v56  ;;  %4859 = vmatmul.mubr.msk.bf16.vlgmr.msra.gmra.mrb[16].mxu0 %vm612_vm1, %v742_v57 }
 0x283   :  { %4839 = vmatpush3.bf16.xpose.msra.mxu1 %v930_v47  ;;  %4840 = vmatprep.mubr.msk.bf16.mxu1 %vm5401_vm0, %v5400_v55 }
 0x284   :  { %4850 = vmatprep.subr.bf16.mxu1 %v5400_v55  ;;  %4870 = vmatprep.mubr.msk.bf16.mxu0 %vm5401_vm0, %v5400_v55 }
 0x28a   :  { %4841 = vmatmul.mubr.msk.bf16.vlgmr.msra.gmra.mrb[20].mxu1 %vm612_vm1, %v739_v62 }
 0x28b   :  { %4851 = vmatpush3.bf16.xpose.msra.mxu1 %v930_v47  ;;  %4852 = vmatprep.mubr.msk.bf16.mxu1 %vm5401_vm0, %v5400_v55 }
 0x28c   :  { %4862 = vmatprep.subr.bf16.mxu1 %v5400_v55 }
 0x292   :  { %4853 = vmatmul.mubr.msk.bf16.vlgmr.msra.gmra.mrb[24].mxu1 %vm612_vm1, %v741_v0 }
 0x293   :  { %4864 = vmatprep.mubr.msk.bf16.mxu1 %vm5401_vm0, %v5400_v55 }
 0x345   :  { %v5723_v1 = vpop.f32.mrb[8].mxu1  ;;  %v5725_v2 = vpop.f32.mrb[8].mxu0 }
 0x346   :  { %v4818_v3 = vpop.f32.mrb[9].mxu1  ;;  %v4836_v4 = vpop.f32.mrb[9].mxu0  ;;  %v1102_v5 = vsel %vm1101_vm2, %v5723_v1, -inf  ;;  %v1111_v10 = vsel %vm1101_vm2, %v5725_v2, -inf }
 0x347   :  { %v920_v6 = vpop.f32.mrb[10].mxu0  ;;  %1103 = vmax.xlane.f32.xlu1 %v1102_v5  ;;  %v791_v7 = vpop.f32.mrb[10].mxu1 }
 0x348   :  { %v4819_v8 = vpop.f32.mrb[11].mxu1  ;;  %v4837_v9 = vpop.f32.mrb[11].mxu0 }
 0x34b   :  { %1112 = vmax.xlane.f32.xlu1 %v1111_v10 }
 0x34d   :  { %v5731_v11 = vpop.f32.mrb[12].mxu1  ;;  %v5733_v12 = vpop.f32.mrb[12].mxu0 }
 0x34e   :  { %v4824_v13 = vpop.f32.mrb[13].mxu1  ;;  %v4848_v14 = vpop.f32.mrb[13].mxu0  ;;  %v1117_v15 = vsel %vm1101_vm2, %v5733_v12, -inf  ;;  %v1105_v16 = vsel %vm1101_vm2, %v5731_v11, -inf }
 0x34f   :  { %v1012_v17 = vpop.f32.mrb[14].mxu0  ;;  %1118 = vmax.xlane.f32.xlu1 %v1117_v15  ;;  %1106 = vmax.xlane.f32.xlu0 %v1105_v16  ;;  %v834_v18 = vpop.f32.mrb[14].mxu1 }
 0x350   :  { %v4825_v19 = vpop.f32.mrb[15].mxu1  ;;  %v4849_v21 = vpop.f32.mrb[15].mxu0 }
 0x355   :  { %v874_v23 = vpop.f32.mrb[16].mxu1  ;;  %v5739_v24 = vpop.f32.mrb[16].mxu0 }
 0x356   :  { %v4830_v26 = vpop.f32.mrb[17].mxu1  ;;  %v4860_v27 = vpop.f32.mrb[17].mxu0  ;;  %v1123_v29 = vsel %vm1101_vm2, %v5739_v24, -inf  ;;  %v1108_v30 = vsel %vm1101_vm2, %v874_v23, -inf }
 0x357   :  { %v1098_v31 = vpop.f32.mrb[18].mxu0  ;;  %1124 = vmax.xlane.f32.xlu1 %v1123_v29  ;;  %1109 = vmax.xlane.f32.xlu0 %v1108_v30  ;;  %v877_v32 = vpop.f32.mrb[18].mxu1 }
 0x358   :  { %v4831_v34 = vpop.f32.mrb[19].mxu1  ;;  %v4861_v35 = vpop.f32.mrb[19].mxu0 }
 0x35d   :  { %v5744_v38 = vpop.f32.mrb[20].mxu1 }
 0x35e   :  { %v4842_v39 = vpop.f32.mrb[21].mxu1  ;;  %v1114_v40 = vsel %vm1101_vm2, %v5744_v38, -inf }
 0x35f   :  { %1115 = vmax.xlane.f32.xlu0 %v1114_v40  ;;  %v969_v41 = vpop.f32.mrb[22].mxu1 }
 0x360   :  { %v4843_v42 = vpop.f32.mrb[23].mxu1 }
 0x365   :  { %v5748_v43 = vpop.f32.mrb[24].mxu1 }
 0x366   :  { %v4854_v44 = vpop.f32.mrb[25].mxu1  ;;  %v1120_v50 = vsel %vm1101_vm2, %v5748_v43, -inf }
 0x367   :  { %v1055_v45 = vpop.f32.mrb[26].mxu1 }
 0x368   :  { %v4855_v47 = vpop.f32.mrb[27].mxu1  ;;  %715 = vrot.lane.b32.xlu1 %v5663_v36, %s5404_s9 }
 0x36c   :  { %717 = vrot.lane.b32.xlu1 %v5679_v46, %s5404_s9 }
 0x370   :  { %721 = vrot.lane.b32.xlu1 %v5668_v37, %s5404_s9 }
 0x375   :  { %678 = vrot.lane.b32.xlu0 %v676_v49, %s5404_s9 }
 0x394   :  { %1121 = vmax.xlane.f32.xlu0 %v1120_v50 }
 0x3aa   :  { %719 = vrot.lane.b32.xlu0 %v5695_v52, %s5404_s9 }
 0x3d4   :  { %v1104_v36 = vpop.xlane.xlu1 %1103 }
 0x3d5   :  { %v1126_v5 = vsub.f32 %v5723_v1, %v1104_v36 }
 0x3d7   :  { %v1134_v6 = vmul.f32 1.442695, %v1126_v5 }
 0x3d8   :  { %v1113_v46 = vpop.xlane.xlu1 %1112 }
 0x3d9   :  { %v1129_v7 = vsub.f32 %v5725_v2, %v1113_v46  ;;  %5276 = vpow2.f32 %v1134_v6 }
 0x3dc   :  { %v1119_v51 = vpop.xlane.xlu1 %1118  ;;  %v1107_v53 = vpop.xlane.xlu0 %1106 }
 0x3dd   :  { %v1127_v8 = vsub.f32 %v5731_v11, %v1107_v53  ;;  %v1131_v9 = vsub.f32 %v5733_v12, %v1119_v51 }
 0x3df   :  { %v1136_v10 = vmul.f32 1.442695, %v1127_v8  ;;  %v1144_v13 = vmul.f32 1.442695, %v1131_v9 }
 0x3e3   :  { %v5783_v16 = vpop.eup %5276 }
 0x3e4   :  { %v5766_v54 = vpop.xlane.xlu1 %1124  ;;  %v1110_v56 = vpop.xlane.xlu0 %1109  ;;  %v1150_v1 = vsel %vm1101_vm2, %v5783_v16, 0.0 }
 0x3e5   :  { %v1128_v14 = vsub.f32 %v874_v23, %v1110_v56  ;;  %v1133_v44 = vsub.f32 %v5739_v24, %v5766_v54 }
 0x3e7   :  { %v1138_v15 = vmul.f32 1.442695, %v1128_v14  ;;  %v1148_v47 = vmul.f32 1.442695, %v1133_v44 }
 0x3e8   :  { %v5768_v37 = vpop.permute.xlu1 %715 }
 0x3ec   :  { %v5770_v57 = vpop.xlane.xlu0 %1115  ;;  %v5773_v63 = vpop.permute.xlu1 %717 }
 0x3ed   :  { %v1130_v49 = vsub.f32 %v5744_v38, %v5770_v57 }
 0x3ef   :  { %v1142_v50 = vmul.f32 1.442695, %v1130_v49 }
 0x3f0   :  { %v679_v61 = vpop.permute.xlu0 %678  ;;  %v5803_v26 = vpop.permute.xlu1 %721 }
 0x3f1   :  { %v681_v62 = vadd.f32 %v679_v61, %v5646_v25  ;;  %v1140_v25 = vmul.f32 1.442695, %v1129_v7  ;;  %v682_v27 = vadd.f32 %v679_v61, %v5649_v28 }
 0x3f3   :  { %v728_v0 = vmul.f32 %v5773_v63, %v681_v62  ;;  %v727_v52 = vmul.f32 %v5768_v37, %v681_v62  ;;  %5278 = vpow2.f32 %v1140_v25  ;;  %v730_v29 = vmul.f32 %v5803_v26, %v681_v62 }
 0x3f4   :  { %5280 = vpow2.f32 %v1136_v10  ;;  %v732_v32 = vmul.f32 %v5773_v63, %v682_v27  ;;  %v731_v41 = vmul.f32 %v5768_v37, %v682_v27 }
 0x3f5   :  { %v1199_v3 = vpack.c.bf16 %v728_v0, %v728_v0  ;;  %v1198_v4 = vpack.c.bf16 %v727_v52, %v727_v52  ;;  %5282 = vpow2.f32 %v1144_v13  ;;  %v1201_v31 = vpack.c.bf16 %v730_v29, %v730_v29 }
 0x3f6   :  { %5284 = vpow2.f32 %v1138_v15  ;;  %v1203_v34 = vpack.c.bf16 %v732_v32, %v732_v32  ;;  %v1202_v28 = vpack.c.bf16 %v731_v41, %v731_v41 }
 0x3f7   :  { %1257 = vrot.lane.b32.xlu1 %v1199_v3, %s5404_s9  ;;  %1207 = vrot.lane.b32.xlu0 %v1198_v4, %s5404_s9  ;;  %5286 = vpow2.f32 %v1148_v47 }
 0x3f8   :  { %5288 = vpow2.f32 %v1142_v50 }
 0x3fd   :  { %v5787_v2 = vpop.eup %5278 }
 0x3fe   :  { %v5789_v11 = vpop.eup %5280  ;;  %v1159_v12 = vsel %vm1101_vm2, %v5787_v2, 0.0 }
 0x3ff   :  { %v5793_v17 = vpop.eup %5282  ;;  %v1153_v18 = vsel %vm1101_vm2, %v5789_v11, 0.0 }
 0x400   :  { %v1165_v19 = vsel %vm1101_vm2, %v5793_v17, 0.0  ;;  %v5799_v21 = vpop.eup %5284 }
 0x401   :  { %v1156_v23 = vsel %vm1101_vm2, %v5799_v21, 0.0  ;;  %v5823_v51 = vpop.eup %5286 }
 0x402   :  { %v1171_v53 = vsel %vm1101_vm2, %v5823_v51, 0.0  ;;  %v5827_v24 = vpop.eup %5288 }
 0x403   :  { %v1162_v54 = vsel %vm1101_vm2, %v5827_v24, 0.0 }
 0x416   :  { %1151 = vadd.xlane.f32.xlu0 %v1150_v1 }
 0x41a   :  { %1160 = vadd.xlane.f32.xlu0 %v1159_v12 }
 0x41b   :  { %1154 = vadd.xlane.f32.xlu1 %v1153_v18 }
 0x41e   :  { %1166 = vadd.xlane.f32.xlu0 %v1165_v19 }
 0x421   :  { %v1122_v30 = vpop.xlane.xlu0 %1121 }
 0x422   :  { %1157 = vadd.xlane.f32.xlu0 %v1156_v23  ;;  %v1132_v36 = vsub.f32 %v5748_v43, %v1122_v30  ;;  %v734_v43 = vmul.f32 %v5803_v26, %v682_v27 }
 0x424   :  { %v1146_v46 = vmul.f32 1.442695, %v1132_v36  ;;  %v1205_v52 = vpack.c.bf16 %v734_v43, %v734_v43  ;;  %v5255_v43 = vld [vmem:[%s6567_s5 + $0x8] sm:$0xff]  }
 0x425   :  { %v5809_v35 = vpop.permute.xlu0 %719 }
 0x426   :  { %v729_v39 = vmul.f32 %v5809_v35, %v681_v62  ;;  %v733_v42 = vmul.f32 %v5809_v35, %v682_v27  ;;  %5290 = vpow2.f32 %v1146_v46 }
 0x428   :  { %v1200_v40 = vpack.c.bf16 %v729_v39, %v729_v39  ;;  %v1204_v45 = vpack.c.bf16 %v733_v42, %v733_v42 }
 0x42c   :  { %1355 = vrot.lane.b32.xlu1 %v1201_v31, %s5404_s9 }
 0x430   :  { %1453 = vrot.lane.b32.xlu1 %v1203_v34, %s5404_s9  ;;  %v5831_v56 = vpop.eup %5290 }
 0x431   :  { %v1168_v38 = vsel %vm1101_vm2, %v5831_v56, 0.0 }
 0x438   :  { %1306 = vrot.lane.b32.xlu0 %v1200_v40, %s5404_s9 }
 0x43c   :  { %1404 = vrot.lane.b32.xlu0 %v1202_v28, %s5404_s9 }
 0x440   :  { %1502 = vrot.lane.b32.xlu0 %v1204_v45, %s5404_s9 }
 0x454   :  { %1172 = vadd.xlane.f32.xlu1 %v1171_v53 }
 0x458   :  { %1163 = vadd.xlane.f32.xlu1 %v1162_v54 }
 0x45c   :  { %1169 = vadd.xlane.f32.xlu1 %v1168_v38  ;;  %v5254_v38 = vld [vmem:[%s6567_s5] sm:$0xff]  }
 0x469   :  { %v1258_v57 = vpop.permute.xlu1 %1257  ;;  %v1208_v61 = vpop.permute.xlu0 %1207 }
 0x46a   :  { %v1263_v62 = vsel %vm1212_vm3, %v1258_v57, 0  ;;  %v1214_v0 = vsel %vm1212_vm3, %v1208_v61, 0 }
 0x46b   :  { %4863 = vmatpush3.bf16.msra.mxu1 %v1214_v0  ;;  %4869 = vmatpush3.bf16.msra.mxu0 %v1263_v62 }
 0x46c   :  { %4874 = vmatprep.subr.bf16.mxu1 %v5400_v55  ;;  %4880 = vmatprep.subr.bf16.mxu0 %v5400_v55 }
 0x46d   :  { %1551 = vrot.lane.b32.xlu1 %v1205_v52, %s5404_s9 }
 0x4a3   :  { %v1152_v3 = vpop.xlane.xlu0 %1151 }
 0x4a4   :  { %5292 = vrcp.f32 %v1152_v3 }
 0x4a7   :  { %v1161_v4 = vpop.xlane.xlu0 %1160 }
 0x4a8   :  { %v1155_v5 = vpop.xlane.xlu1 %1154 }
 0x4a9   :  { %5294 = vrcp.f32 %v1155_v5 }
 0x4aa   :  { %5296 = vrcp.f32 %v1161_v4 }
 0x4ab   :  { %v1167_v6 = vpop.xlane.xlu0 %1166 }
 0x4ac   :  { %v1356_v1 = vpop.permute.xlu1 %1355 }
 0x4ad   :  { %v1361_v18 = vsel %vm1212_vm3, %v1356_v1, 0 }
 0x4ae   :  { %v5293_v7 = vpop.eup %5292 }
 0x4af   :  { %v1182_v8 = vmul.f32 %v5293_v7, %v5783_v16  ;;  %v1158_v25 = vpop.xlane.xlu0 %1157 }
 0x4b0   :  { %5298 = vrcp.f32 %v1158_v25  ;;  %v1454_v29 = vpop.permute.xlu1 %1453 }
 0x4b1   :  { %v1190_v9 = vpack.c.bf16 %v1182_v8, %v1182_v8  ;;  %5300 = vrcp.f32 %v1167_v6  ;;  %v1459_v39 = vsel %vm1212_vm3, %v1454_v29, 0 }
 0x4b3   :  { %v5295_v10 = vpop.eup %5294  ;;  %4865 = vmatmul.mubr.msk.bf16.vlgmr.msra.gmra.mrb[28].mxu1 %vm1101_vm2, %v1190_v9  ;;  %v1307_v13 = vpop.permute.xlu0 %1306 }
 0x4b4   :  { %v1183_v14 = vmul.f32 %v5295_v10, %v5789_v11  ;;  %v1312_v15 = vsel %vm1212_vm3, %v1307_v13, 0  ;;  %4876 = vmatprep.mubr.msk.bf16.mxu1 %vm5401_vm0, %v5400_v55  ;;  %v5297_v16 = vpop.eup %5296 }
 0x4b5   :  { %4875 = vmatpush3.bf16.msra.mxu1 %v1312_v15  ;;  %v1185_v19 = vmul.f32 %v5297_v16, %v5787_v2 }
 0x4b6   :  { %v1191_v12 = vpack.c.bf16 %v1183_v14, %v1183_v14  ;;  %4886 = vmatprep.subr.bf16.mxu1 %v5400_v55 }
 0x4b7   :  { %v1405_v27 = vpop.permute.xlu0 %1404  ;;  %v1193_v31 = vpack.c.bf16 %v1185_v19, %v1185_v19 }
 0x4b8   :  { %4871 = vmatmul.mubr.msk.bf16.vlgmr.msra.gmra.mrb[20].mxu0 %vm1101_vm2, %v1191_v12  ;;  %v1410_v34 = vsel %vm1212_vm3, %v1405_v27, 0 }
 0x4b9   :  { %4881 = vmatpush3.bf16.msra.mxu0 %v1361_v18  ;;  %4882 = vmatprep.mubr.msk.bf16.mxu0 %vm5401_vm0, %v5400_v55 }
 0x4ba   :  { %v5299_v11 = vpop.eup %5298  ;;  %4892 = vmatprep.subr.bf16.mxu0 %v5400_v55 }
 0x4bb   :  { %v1184_v23 = vmul.f32 %v5299_v11, %v5799_v21  ;;  %v5301_v32 = vpop.eup %5300  ;;  %v1503_v36 = vpop.permute.xlu0 %1502 }
 0x4bc   :  { %v1187_v2 = vmul.f32 %v5301_v32, %v5793_v17 }
 0x4bd   :  { %v1192_v30 = vpack.c.bf16 %v1184_v23, %v1184_v23 }
 0x4be   :  { %v1195_v21 = vpack.c.bf16 %v1187_v2, %v1187_v2 }
 0x4bf   :  { %4877 = vmatmul.mubr.msk.bf16.vlgmr.msra.gmra.mrb[32].mxu1 %vm1101_vm2, %v1192_v30 }
 0x4c0   :  { %4887 = vmatpush3.bf16.msra.mxu1 %v1410_v34  ;;  %4883 = vmatmul.mubr.msk.bf16.vlgmr.msra.gmra.mrb[24].mxu0 %vm1101_vm2, %v1193_v31 }
 0x4c1   :  { %4893 = vmatpush3.bf16.msra.mxu0 %v1459_v39  ;;  %4894 = vmatprep.mubr.msk.bf16.mxu0 %vm5401_vm0, %v5400_v55 }
 0x4c2   :  { %4904 = vmatprep.subr.bf16.mxu0 %v5400_v55  ;;  %4888 = vmatprep.mubr.msk.bf16.mxu1 %vm5401_vm0, %v5400_v55 }
 0x4c3   :  { %4898 = vmatprep.subr.bf16.mxu1 %v5400_v55 }
 0x4c8   :  { %4895 = vmatmul.mubr.msk.bf16.vlgmr.msra.gmra.mrb[28].mxu0 %vm1101_vm2, %v1195_v21 }
 0x4c9   :  { %4906 = vmatprep.mubr.msk.bf16.mxu0 %vm5401_vm0, %v5400_v55 }
 0x4e1   :  { %v1173_v40 = vpop.xlane.xlu1 %1172 }
 0x4e2   :  { %5302 = vrcp.f32 %v1173_v40 }
 0x4e5   :  { %v1164_v41 = vpop.xlane.xlu1 %1163 }
 0x4e6   :  { %5304 = vrcp.f32 %v1164_v41 }
 0x4e9   :  { %v1170_v28 = vpop.xlane.xlu1 %1169 }
 0x4ea   :  { %5306 = vrcp.f32 %v1170_v28 }
 0x4ec   :  { %v5303_v17 = vpop.eup %5302 }
 0x4ed   :  { %v1189_v42 = vmul.f32 %v5303_v17, %v5823_v51  ;;  %v1552_v44 = vpop.permute.xlu1 %1551  ;;  %v1508_v51 = vsel %vm1212_vm3, %v1503_v36, 0 }
 0x4ee   :  { %v1557_v45 = vsel %vm1212_vm3, %v1552_v44, 0 }
 0x4ef   :  { %4905 = vmatpush3.bf16.msra.mxu0 %v1557_v45  ;;  %v1197_v47 = vpack.c.bf16 %v1189_v42, %v1189_v42 }
 0x4f0   :  { %v5305_v49 = vpop.eup %5304  ;;  %4918 = vmatprep.subr.bf16.mxu0 %v5400_v55 }
 0x4f1   :  { %v1186_v50 = vmul.f32 %v5305_v49, %v5827_v24 }
 0x4f2   :  { %4907 = vmatmul.mubr.msk.bf16.vlgmr.msra.gmra.mrb[32].mxu0 %vm1101_vm2, %v1197_v47 }
 0x4f3   :  { %v1194_v46 = vpack.c.bf16 %v1186_v50, %v1186_v50  ;;  %4922 = vmatprep.mubr.msk.bf16.mxu0 %vm5401_vm0, %v5400_v55 }
 0x4f4   :  { %v5307_v53 = vpop.eup %5306 }
 0x4f5   :  { %4889 = vmatmul.mubr.msk.bf16.vlgmr.msra.gmra.mrb[36].mxu1 %vm1101_vm2, %v1194_v46  ;;  %v1188_v54 = vmul.f32 %v5307_v53, %v5831_v56 }
 0x4f6   :  { %4899 = vmatpush3.bf16.msra.mxu1 %v1508_v51  ;;  %4900 = vmatprep.mubr.msk.bf16.mxu1 %vm5401_vm0, %v5400_v55  ;;  %v5905_v51 = vsub.s32 3, %v5621_v58 }
 0x4f7   :  { %4910 = vmatprep.subr.bf16.mxu1 %v5400_v55  ;;  %v1196_v24 = vpack.c.bf16 %v1188_v54, %v1188_v54 }
 0x4f8   :  { %v1617_v54 = vrot.slane %v5626_v59, %v5905_v51 }
 0x4fd   :  { %4901 = vmatmul.mubr.msk.bf16.vlgmr.msra.gmra.mrb[40].mxu1 %vm1101_vm2, %v1196_v24 }
 0x4fe   :  { %4914 = vmatprep.mubr.msk.bf16.mxu1 %vm5401_vm0, %v5400_v55  ;;  %4911 = vmatpush3.bf16.msra.mxu1 %v5254_v38 }
 0x4ff   :  { %4912 = vmatprep.subr.bf16.mxu1 %v5400_v55 }
 0x502   :  { %4913 = vmatpush3.bf16.msra.mxu1 %v5255_v43 }
 0x503   :  { %4926 = vmatprep.subr.bf16.mxu1 %v5400_v55 }
 0x586   :  { %v1250_v56 = vpop.f32.mrb[28].mxu1 }
 0x587   :  { %v4866_v57 = vpop.f32.mrb[29].mxu1  ;;  %v1599_v52 = vsel %vm612_vm1, %v1250_v56, 0.0 }
 0x588   :  { %v1253_v61 = vpop.f32.mrb[30].mxu1 }
 0x589   :  { %v4867_v62 = vpop.f32.mrb[31].mxu1 }
 0x58b   :  { %v1299_v0 = vpop.f32.mrb[20].mxu0 }
 0x58c   :  { %v1600_v3 = vsel %vm612_vm1, %v1299_v0, 0.0  ;;  %v4872_v4 = vpop.f32.mrb[21].mxu0 }
 0x58d   :  { %v1601_v5 = vadd.f32 %v1600_v3, %v1599_v52  ;;  %v1302_v6 = vpop.f32.mrb[22].mxu0 }
 0x58e   :  { %v4873_v7 = vpop.f32.mrb[23].mxu0 }
 0x592   :  { %v1348_v8 = vpop.f32.mrb[32].mxu1 }
 0x593   :  { %v1602_v25 = vsel %vm612_vm1, %v1348_v8, 0.0  ;;  %v4878_v9 = vpop.f32.mrb[33].mxu1  ;;  %v1397_v10 = vpop.f32.mrb[24].mxu0 }
 0x594   :  { %v1603_v13 = vadd.f32 %v1602_v25, %v1601_v5  ;;  %v1604_v14 = vsel %vm612_vm1, %v1397_v10, 0.0  ;;  %v1351_v15 = vpop.f32.mrb[34].mxu1  ;;  %v4884_v1 = vpop.f32.mrb[25].mxu0 }
 0x595   :  { %v4879_v12 = vpop.f32.mrb[35].mxu1  ;;  %v1400_v16 = vpop.f32.mrb[26].mxu0 }
 0x596   :  { %v1605_v18 = vadd.f32 %v1604_v14, %v1603_v13  ;;  %v4885_v11 = vpop.f32.mrb[27].mxu0  ;;  %v5257_v14 = vld [vmem:[%s6567_s5 + $0x18] sm:$0xff]  }
 0x59b   :  { %v1495_v19 = vpop.f32.mrb[28].mxu0 }
 0x59c   :  { %v4896_v23 = vpop.f32.mrb[29].mxu0  ;;  %v1607_v2 = vsel %vm612_vm1, %v1495_v19, 0.0  ;;  %v5924_v19 = vsub.s32 6, %v5621_v58 }
 0x59d   :  { %v1498_v27 = vpop.f32.mrb[30].mxu0 }
 0x59e   :  { %v4897_v29 = vpop.f32.mrb[31].mxu0  ;;  %v1706_v27 = vrot.slane %v5626_v59, %v5924_v19 }
 0x5c5   :  { %v1593_v30 = vpop.f32.mrb[32].mxu0 }
 0x5c6   :  { %v4908_v31 = vpop.f32.mrb[33].mxu0  ;;  %v1611_v50 = vsel %vm612_vm1, %v1593_v30, 0.0  ;;  %v5929_v30 = vsub.s32 7, %v5621_v58 }
 0x5c7   :  { %v1596_v32 = vpop.f32.mrb[34].mxu0 }
 0x5c8   :  { %v1446_v34 = vpop.f32.mrb[36].mxu1  ;;  %v4909_v39 = vpop.f32.mrb[35].mxu0 }
 0x5c9   :  { %v1606_v21 = vsel %vm612_vm1, %v1446_v34, 0.0  ;;  %v4890_v40 = vpop.f32.mrb[37].mxu1  ;;  %v1712_v39 = vrot.slane %v5626_v59, %v5929_v30 }
 0x5ca   :  { %v1608_v41 = vadd.f32 %v1607_v2, %v1606_v21  ;;  %v1449_v28 = vpop.f32.mrb[38].mxu1 }
 0x5cb   :  { %v4891_v17 = vpop.f32.mrb[39].mxu1  ;;  %v5258_v28 = vld [vmem:[%s6567_s5 + $0x20] sm:$0xff]  }
 0x5cc   :  { %v5259_v17 = vld [vmem:[%s6567_s5 + $0x28] sm:$0xff]  }
 0x5d0   :  { %v1544_v42 = vpop.f32.mrb[40].mxu1 }
 0x5d1   :  { %v1609_v44 = vsel %vm612_vm1, %v1544_v42, 0.0  ;;  %v4902_v45 = vpop.f32.mrb[41].mxu1  ;;  %v5945_v42 = vsub.s32 4, %v5621_v58 }
 0x5d2   :  { %v1610_v47 = vadd.f32 %v1609_v44, %v1608_v41  ;;  %v1547_v49 = vpop.f32.mrb[42].mxu1 }
 0x5d3   :  { %v4903_v36 = vpop.f32.mrb[43].mxu1  ;;  %v1719_v44 = vrot.slane %v5626_v59, %v5945_v42 }
 0x5d4   :  { %v1612_v46 = vadd.f32 %v1611_v50, %v1610_v47 }
 0x5d6   :  { %v1613_v53 = vpack.c.bf16 %v1612_v46, %v1605_v18 }
 0x5d8   :  { %4915 = vmatmul.mubr.msk.bf16.vlgmr.msra.gmra.mrb[44].mxu1 %vm612_vm1, %v1613_v53 }
 0x5d9   :  { %4930 = vmatprep.mubr.msk.bf16.mxu1 %vm5401_vm0, %v5400_v55  ;;  %4927 = vmatpush3.bf16.msra.mxu1 %v5258_v28 }
 0x5da   :  { %4928 = vmatprep.subr.bf16.mxu1 %v5400_v55 }
 0x5dd   :  { %4929 = vmatpush3.bf16.msra.mxu1 %v5259_v17 }
 0x5de   :  { %4942 = vmatprep.subr.bf16.mxu1 %v5400_v55 }
 0x6ab   :  { %v1667_v24 = vpop.f32.mrb[44].mxu1 }
 0x6ac   :  { %v1668_v38 = vadd.f32 %v1667_v24, %v1617_v54  ;;  %v4916_v43 = vpop.f32.mrb[45].mxu1 }
 0x6ad   :  { %v1670_v56 = vpop.f32.mrb[46].mxu1 }
 0x6ae   :  { %v1671_v57 = vadd.f32 %v1670_v56, %v1617_v54  ;;  %v4917_v61 = vpop.f32.mrb[47].mxu1  ;;  %v1674_v62 = vadd.f32 %v1668_v38, %v5637_v20  ;;  %v5953_v38 = vsub.s32 5, %v5621_v58 }
 0x6b0   :  { %v1676_v0 = vsel %vm612_vm1, %v1674_v62, 0.0  ;;  %v1675_v52 = vadd.f32 %v1671_v57, %v5639_v22  ;;  %v5256_v22 = vld [vmem:[%s6567_s5 + $0x10] sm:$0xff]   ;;  %v1782_v43 = vrot.slane %v5626_v59, %v5953_v38 }
 0x6b1   :  { %1677 = vadd.xlane.f32.xlu0 %v1676_v0  ;;  %4919 = vmatpush3.bf16.msra.mxu0 %v5256_v22 }
 0x6b2   :  { %v1679_v3 = vsel %vm612_vm1, %v1675_v52, 0.0  ;;  %4920 = vmatprep.subr.bf16.mxu0 %v5400_v55 }
 0x6b3   :  { %1680 = vadd.xlane.f32.xlu1 %v1679_v3 }
 0x6b5   :  { %4921 = vmatpush3.bf16.msra.mxu0 %v5257_v14  ;;  %v5260_v14 = vld [vmem:[%s6563_s4 + $0x10] sm:$0xff]  }
 0x6b6   :  { %4934 = vmatprep.subr.bf16.mxu0 %v5400_v55 }
 0x73e   :  { %v1678_v4 = vpop.xlane.xlu0 %1677 }
 0x73f   :  { %v1683_v5 = vmul.f32 0.03125, %v1678_v4 }
 0x740   :  { %v1681_v6 = vpop.xlane.xlu1 %1680 }
 0x741   :  { %v1685_v7 = vsub.f32 %v1674_v62, %v1683_v5  ;;  %v1684_v8 = vmul.f32 0.03125, %v1681_v6 }
 0x743   :  { %v1686_v25 = vsub.f32 %v1675_v52, %v1684_v8  ;;  %v1687_v9 = vmul.f32 %v1685_v7, %v1685_v7 }
 0x745   :  { %v1689_v10 = vsel %vm612_vm1, %v1687_v9, 0.0  ;;  %v1688_v13 = vmul.f32 %v1686_v25, %v1686_v25 }
 0x746   :  { %1690 = vadd.xlane.f32.xlu0 %v1689_v10 }
 0x747   :  { %v1692_v20 = vsel %vm612_vm1, %v1688_v13, 0.0 }
 0x74a   :  { %1693 = vadd.xlane.f32.xlu0 %v1692_v20 }
 0x7d3   :  { %v1691_v15 = vpop.xlane.xlu0 %1690 }
 0x7d4   :  { %v1695_v1 = vmul.f32 0.03125, %v1691_v15  ;;  %v5261_v15 = vld [vmem:[%s6563_s4 + $0x18] sm:$0xff]  }
 0x7d6   :  { %v1697_v12 = vadd.f32 1e-05, %v1695_v1  ;;  %v5972_v1 = vld [vmem:[%s6564_s6 + $0x10] sm:$0xff] }
 0x7d7   :  { %v1694_v16 = vpop.xlane.xlu0 %1693 }
 0x7d8   :  { %5308 = vrsqrt.f32 %v1697_v12  ;;  %v1696_v18 = vmul.f32 0.03125, %v1694_v16  ;;  %v1966_v12 = vrot.slane %v5972_v1, %v5629_v60 }
 0x7da   :  { %v1698_v11 = vadd.f32 1e-05, %v1696_v18 }
 0x7dc   :  { %5310 = vrsqrt.f32 %v1698_v11 }
 0x7e2   :  { %v5309_v23 = vpop.eup %5308 }
 0x7e3   :  { %v1701_v29 = vmul.f32 %v5309_v23, %v1685_v7 }
 0x7e5   :  { %v1707_v32 = vmul.f32 %v1706_v27, %v1701_v29 }
 0x7e6   :  { %v5311_v31 = vpop.eup %5310 }
 0x7e7   :  { %v1702_v34 = vmul.f32 %v5311_v31, %v1686_v25  ;;  %v1713_v21 = vadd.f32 %v1712_v39, %v1707_v32  ;;  %v598_v31 = vld [vmem:[%s6564_s6 + $0x8] sm:$0x3] }
 0x7e8   :  { %v1870_v32 = vrot.slane %v598_v31, %v5655_v33 }
 0x7e9   :  { %v1708_v2 = vmul.f32 %v1706_v27, %v1702_v34 }
 0x7eb   :  { %v1714_v40 = vadd.f32 %v1712_v39, %v1708_v2 }
 0x7ed   :  { %v1715_v41 = vpack.c.bf16 %v1714_v40, %v1713_v21 }
 0x7ef   :  { %4923 = vmatmul.mubr.msk.bf16.vlgmr.msra.gmra.mrb[36].mxu0 %vm612_vm1, %v1715_v41  ;;  %v1876_v41 = vrot.slane %v598_v31, %v5629_v60 }
 0x7f0   :  { %4938 = vmatprep.mubr.msk.bf16.mxu0 %vm5401_vm0, %v5400_v55  ;;  %4935 = vmatpush3.bf16.msra.mxu0 %v5260_v14 }
 0x7f1   :  { %4936 = vmatprep.subr.bf16.mxu0 %v5400_v55 }
 0x7f4   :  { %4937 = vmatpush3.bf16.msra.mxu0 %v5261_v15 }
 0x7f5   :  { %4948 = vmatprep.subr.bf16.mxu0 %v5400_v55 }
 0x8c2   :  { %v1769_v45 = vpop.f32.mrb[36].mxu0 }
 0x8c3   :  { %v1770_v47 = vadd.f32 %v1769_v45, %v1719_v44  ;;  %v4924_v49 = vpop.f32.mrb[37].mxu0 }
 0x8c4   :  { %v1772_v50 = vpop.f32.mrb[38].mxu0 }
 0x8c5   :  { %v1773_v36 = vadd.f32 %v1772_v50, %v1719_v44  ;;  %v4925_v46 = vpop.f32.mrb[39].mxu0  ;;  %v1776_v53 = vmax.f32 %v1770_v47, 0.0 }
 0x8c7   :  { %v1777_v54 = vmax.f32 %v1773_v36, 0.0 }
 0x8c9   :  { %v1778_v24 = vpack.c.bf16 %v1777_v54, %v1776_v53 }
 0x8cb   :  { %4931 = vmatmul.mubr.msk.bf16.vlgmr.msra.gmra.mrb[48].mxu1 %vm612_vm1, %v1778_v24 }
 0x8cc   :  { %4944 = vmatprep.mubr.msk.bf16.mxu1 %vm5401_vm0, %v5400_v55 }
 0x99e   :  { %v1832_v56 = vpop.f32.mrb[48].mxu1 }
 0x99f   :  { %v1833_v57 = vadd.f32 %v1832_v56, %v1782_v43  ;;  %v4932_v61 = vpop.f32.mrb[49].mxu1  ;;  %v1960_v56 = vrot.slane %v5972_v1, %v5655_v33 }
 0x9a0   :  { %v1835_v62 = vpop.f32.mrb[50].mxu1 }
 0x9a1   :  { %v1836_v0 = vadd.f32 %v1835_v62, %v1782_v43  ;;  %v4933_v52 = vpop.f32.mrb[51].mxu1  ;;  %v1839_v3 = vadd.f32 %v1833_v57, %v1713_v21 }
 0x9a3   :  { %v1841_v4 = vsel %vm612_vm1, %v1839_v3, 0.0  ;;  %v1840_v5 = vadd.f32 %v1836_v0, %v1714_v40  ;;  %v6006_v0 = vld [vmem:[%s6566_s3] ss:$0 sm:$0xff] }
 0x9a4   :  { %1842 = vadd.xlane.f32.xlu1 %v1841_v4 }
 0x9a5   :  { %v1844_v6 = vsel %vm612_vm1, %v1840_v5, 0.0 }
 0x9a6   :  { %1845 = vadd.xlane.f32.xlu0 %v1844_v6 }
 0xa31   :  { %v1843_v7 = vpop.xlane.xlu1 %1842 }
 0xa32   :  { %v1847_v58 = vmul.f32 0.03125, %v1843_v7  ;;  %v6022_v7 = vld [vmem:[%s6566_s3 + $0x2] ss:$0 sm:$0xff] }
 0xa33   :  { %v1846_v8 = vpop.xlane.xlu0 %1845 }
 0xa34   :  { %v1849_v25 = vsub.f32 %v1839_v3, %v1847_v58  ;;  %v1848_v9 = vmul.f32 0.03125, %v1846_v8  ;;  %v6012_v3 = vld [vmem:[%s6566_s3 + $0x1] ss:$0 sm:$0xff]  ;;  %v6028_v8 = vld [vmem:[%s6566_s3 + $0x3] ss:$0 sm:$0xff] }
 0xa36   :  { %v1850_v59 = vsub.f32 %v1840_v5, %v1848_v9  ;;  %v1851_v10 = vmul.f32 %v1849_v25, %v1849_v25 }
 0xa38   :  { %v1853_v13 = vsel %vm612_vm1, %v1851_v10, 0.0  ;;  %v1852_v20 = vmul.f32 %v1850_v59, %v1850_v59 }
 0xa39   :  { %1854 = vadd.xlane.f32.xlu1 %v1853_v13 }
 0xa3a   :  { %v1856_v22 = vsel %vm612_vm1, %v1852_v20, 0.0 }
 0xa3b   :  { %1857 = vadd.xlane.f32.xlu0 %v1856_v22 }
 0xa4a   :  { %1968 = vrot.lane.b32.xlu1 %v1966_v12, %s5402_s21 }
 0xac6   :  { %v1855_v16 = vpop.xlane.xlu1 %1854 }
 0xac7   :  { %v1859_v18 = vmul.f32 0.03125, %v1855_v16 }
 0xac8   :  { %v1858_v11 = vpop.xlane.xlu0 %1857 }
 0xac9   :  { %v1861_v23 = vadd.f32 1e-05, %v1859_v18  ;;  %v1860_v27 = vmul.f32 0.03125, %v1858_v11 }
 0xaca   :  { %v1969_v47 = vpop.permute.xlu1 %1968 }
 0xacb   :  { %5312 = vrsqrt.f32 %v1861_v23  ;;  %v1862_v29 = vadd.f32 1e-05, %v1860_v27 }
 0xacd   :  { %5314 = vrsqrt.f32 %v1862_v29 }
 0xad5   :  { %v5313_v34 = vpop.eup %5312 }
 0xad6   :  { %v1865_v39 = vmul.f32 %v5313_v34, %v1849_v25 }
 0xad7   :  { %v5315_v2 = vpop.eup %5314 }
 0xad8   :  { %v1871_v21 = vmul.f32 %v1870_v32, %v1865_v39  ;;  %v1866_v40 = vmul.f32 %v5315_v2, %v1850_v59 }
 0xada   :  { %v1872_v28 = vmul.f32 %v1870_v32, %v1866_v40  ;;  %v5982_v17 = vadd.f32 %v1876_v41, %v1871_v21 }
 0xadc   :  { %v5984_v44 = vadd.f32 %v1876_v41, %v1872_v28 }
 0xade   :  { %v1900_v45 = vpack.c.bf16 %v5984_v44, %v5982_v17 }
 0xae0   :  { %4939 = vmatmul.mubr.msk.bf16.vlgmr.msra.gmra.mrb[40].mxu0 %vm612_vm1, %v1900_v45 }
 0xae1   :  { %4950 = vmatprep.mubr.msk.bf16.mxu0 %vm5401_vm0, %v5400_v55 }
 0xbb3   :  { %v5991_v49 = vpop.f32.mrb[40].mxu0 }
 0xbb4   :  { %v1971_v50 = vadd.f32 %v1969_v47, %v5991_v49  ;;  %v4940_v36 = vpop.f32.mrb[41].mxu0  ;;  %v1961_v57 = vadd.f32 %v1960_v56, %v5991_v49 }
 0xbb5   :  { %v5994_v46 = vpop.f32.mrb[42].mxu0 }
 0xbb6   :  { %v4941_v53 = vpop.f32.mrb[43].mxu0  ;;  %v1972_v54 = vadd.f32 %v1969_v47, %v5994_v46  ;;  %v2007_v24 = vpack.c.bf16 %v1971_v50, %v1971_v50  ;;  %v1983_v52 = vmul.f32 %v6006_v0, %v1961_v57  ;;  %v1984_v4 = vmul.f32 %v6012_v3, %v1961_v57 }
 0xbb7   :  { %v1985_v58 = vmul.f32 %v6022_v7, %v1961_v57  ;;  %v1986_v25 = vmul.f32 %v6028_v8, %v1961_v57  ;;  %v1962_v59 = vadd.f32 %v1960_v56, %v5994_v46 }
 0xbb8   :  { %2010 = vrot.lane.b32.xlu0 %v2007_v24, %s5403_s2  ;;  %v2008_v43 = vpack.c.bf16 %v1972_v54, %v1972_v54  ;;  %v1999_v5 = vpack.c.bf16 %v1983_v52, %v1983_v52  ;;  %v2000_v6 = vpack.c.bf16 %v1984_v4, %v1984_v4 }
 0xbb9   :  { %v2001_v10 = vpack.c.bf16 %v1985_v58, %v1985_v58  ;;  %v2002_v13 = vpack.c.bf16 %v1986_v25, %v1986_v25  ;;  %v1987_v22 = vmul.f32 %v6006_v0, %v1962_v59  ;;  %v1988_v14 = vmul.f32 %v6012_v3, %v1962_v59 }
 0xbba   :  { %2188 = vrot.lane.b32.xlu1 %v2008_v43, %s5403_s2  ;;  %v1989_v16 = vmul.f32 %v6022_v7, %v1962_v59  ;;  %v1990_v18 = vmul.f32 %v6028_v8, %v1962_v59 }
 0xbbb   :  { %v2003_v15 = vpack.c.bf16 %v1987_v22, %v1987_v22  ;;  %v2004_v12 = vpack.c.bf16 %v1988_v14, %v1988_v14 }
 0xbbc   :  { %v2005_v11 = vpack.c.bf16 %v1989_v16, %v1989_v16  ;;  %v2006_v23 = vpack.c.bf16 %v1990_v18, %v1990_v18 }
 0xc2a   :  { %v2011_v61 = vpop.permute.xlu0 %2010 }
 0xc2b   :  { %v2016_v62 = vsel %vm612_vm1, %v2011_v61, 0 }
 0xc2c   :  { %4943 = vmatpush3.bf16.xpose.msra.mxu1 %v2016_v62  ;;  %4949 = vmatpush3.bf16.xpose.msra.mxu0 %v2016_v62  ;;  %v2189_v9 = vpop.permute.xlu1 %2188 }
 0xc2d   :  { %4954 = vmatprep.subr.bf16.mxu1 %v5400_v55  ;;  %4960 = vmatprep.subr.bf16.mxu0 %v5400_v55  ;;  %v2194_v20 = vsel %vm612_vm1, %v2189_v9, 0 }
 0xc33   :  { %4945 = vmatmul.mubr.msk.bf16.vlgmr.msra.gmra.mrb[52].mxu1 %vm612_vm1, %v1999_v5  ;;  %4951 = vmatmul.mubr.msk.bf16.vlgmr.msra.gmra.mrb[44].mxu0 %vm612_vm1, %v2000_v6 }
 0xc34   :  { %4955 = vmatpush3.bf16.xpose.msra.mxu1 %v2016_v62  ;;  %4961 = vmatpush3.bf16.xpose.msra.mxu0 %v2016_v62 }
 0xc35   :  { %4956 = vmatprep.mubr.msk.bf16.mxu1 %vm5401_vm0, %v5400_v55  ;;  %4962 = vmatprep.mubr.msk.bf16.mxu0 %vm5401_vm0, %v5400_v55 }
 0xc36   :  { %4966 = vmatprep.subr.bf16.mxu1 %v5400_v55  ;;  %4972 = vmatprep.subr.bf16.mxu0 %v5400_v55 }
 0xc3b   :  { %4957 = vmatmul.mubr.msk.bf16.vlgmr.msra.gmra.mrb[56].mxu1 %vm612_vm1, %v2001_v10  ;;  %4963 = vmatmul.mubr.msk.bf16.vlgmr.msra.gmra.mrb[48].mxu0 %vm612_vm1, %v2002_v13 }
 0xc3c   :  { %4967 = vmatpush3.bf16.xpose.msra.mxu1 %v2194_v20  ;;  %4973 = vmatpush3.bf16.xpose.msra.mxu0 %v2194_v20 }
 0xc3d   :  { %4968 = vmatprep.mubr.msk.bf16.mxu1 %vm5401_vm0, %v5400_v55  ;;  %4974 = vmatprep.mubr.msk.bf16.mxu0 %vm5401_vm0, %v5400_v55 }
 0xc3e   :  { %4978 = vmatprep.subr.bf16.mxu1 %v5400_v55  ;;  %4984 = vmatprep.subr.bf16.mxu0 %v5400_v55 }
 0xc43   :  { %4969 = vmatmul.mubr.msk.bf16.vlgmr.msra.gmra.mrb[60].mxu1 %vm612_vm1, %v2003_v15  ;;  %4975 = vmatmul.mubr.msk.bf16.vlgmr.msra.gmra.mrb[52].mxu0 %vm612_vm1, %v2004_v12 }
 0xc44   :  { %4979 = vmatpush3.bf16.xpose.msra.mxu1 %v2194_v20  ;;  %4985 = vmatpush3.bf16.xpose.msra.mxu0 %v2194_v20 }
 0xc45   :  { %4980 = vmatprep.mubr.msk.bf16.mxu1 %vm5401_vm0, %v5400_v55  ;;  %4986 = vmatprep.mubr.msk.bf16.mxu0 %vm5401_vm0, %v5400_v55 }
 0xc46   :  { %4990 = vmatprep.subr.bf16.mxu1 %v5400_v55  ;;  %4996 = vmatprep.subr.bf16.mxu0 %v5400_v55 }
 0xc4b   :  { %4981 = vmatmul.mubr.msk.bf16.vlgmr.msra.gmra.mrb[64].mxu1 %vm612_vm1, %v2005_v11  ;;  %4987 = vmatmul.mubr.msk.bf16.vlgmr.msra.gmra.mrb[56].mxu0 %vm612_vm1, %v2006_v23  ;;  %v1976_v11 = vrot.slane %v5972_v1, %v5755_v48 }
 0xc4c   :  { %4992 = vmatprep.mubr.msk.bf16.mxu1 %vm5401_vm0, %v5400_v55  ;;  %4998 = vmatprep.mubr.msk.bf16.mxu0 %vm5401_vm0, %v5400_v55 }
 0xd06   :  { %v6065_v27 = vpop.f32.mrb[52].mxu1  ;;  %v6067_v29 = vpop.f32.mrb[44].mxu0 }
 0xd07   :  { %v4946_v31 = vpop.f32.mrb[53].mxu1  ;;  %v4952_v32 = vpop.f32.mrb[45].mxu0  ;;  %v2368_v34 = vsel %vm1101_vm2, %v6067_v29, -inf  ;;  %v2365_v39 = vsel %vm1101_vm2, %v6065_v27, -inf }
 0xd08   :  { %2369 = vmax.xlane.f32.xlu0 %v2368_v34  ;;  %v2098_v2 = vpop.f32.mrb[46].mxu0  ;;  %2366 = vmax.xlane.f32.xlu1 %v2365_v39  ;;  %v2055_v21 = vpop.f32.mrb[54].mxu1 }
 0xd09   :  { %v4947_v40 = vpop.f32.mrb[55].mxu1  ;;  %v4953_v41 = vpop.f32.mrb[47].mxu0 }
 0xd0e   :  { %v6073_v28 = vpop.f32.mrb[56].mxu1  ;;  %v6075_v45 = vpop.f32.mrb[48].mxu0 }
 0xd0f   :  { %v4958_v47 = vpop.f32.mrb[57].mxu1  ;;  %v4964_v50 = vpop.f32.mrb[49].mxu0  ;;  %v2374_v36 = vsel %vm1101_vm2, %v6075_v45, -inf  ;;  %v2371_v53 = vsel %vm1101_vm2, %v6073_v28, -inf }
 0xd10   :  { %v2184_v54 = vpop.f32.mrb[50].mxu0  ;;  %2375 = vmax.xlane.f32.xlu1 %v2374_v36  ;;  %2372 = vmax.xlane.f32.xlu0 %v2371_v53  ;;  %v2141_v24 = vpop.f32.mrb[58].mxu1 }
 0xd11   :  { %v4959_v43 = vpop.f32.mrb[59].mxu1  ;;  %v4965_v56 = vpop.f32.mrb[51].mxu0 }
 0xd16   :  { %v6081_v57 = vpop.f32.mrb[60].mxu1  ;;  %v6083_v61 = vpop.f32.mrb[52].mxu0 }
 0xd17   :  { %v4970_v62 = vpop.f32.mrb[61].mxu1  ;;  %v4976_v52 = vpop.f32.mrb[53].mxu0  ;;  %v2380_v4 = vsel %vm1101_vm2, %v6083_v61, -inf  ;;  %v2377_v5 = vsel %vm1101_vm2, %v6081_v57, -inf }
 0xd18   :  { %v2276_v6 = vpop.f32.mrb[54].mxu0  ;;  %2381 = vmax.xlane.f32.xlu1 %v2380_v4  ;;  %2378 = vmax.xlane.f32.xlu0 %v2377_v5  ;;  %v2233_v58 = vpop.f32.mrb[62].mxu1 }
 0xd19   :  { %v4971_v25 = vpop.f32.mrb[63].mxu1  ;;  %v4977_v9 = vpop.f32.mrb[55].mxu0 }
 0xd1e   :  { %v2316_v59 = vpop.f32.mrb[64].mxu1  ;;  %v6089_v10 = vpop.f32.mrb[56].mxu0 }
 0xd1f   :  { %v4982_v13 = vpop.f32.mrb[65].mxu1  ;;  %v4988_v20 = vpop.f32.mrb[57].mxu0  ;;  %v2386_v22 = vsel %vm1101_vm2, %v6089_v10, -inf  ;;  %v2383_v14 = vsel %vm1101_vm2, %v2316_v59, -inf }
 0xd20   :  { %v2362_v15 = vpop.f32.mrb[58].mxu0  ;;  %2387 = vmax.xlane.f32.xlu1 %v2386_v22  ;;  %2384 = vmax.xlane.f32.xlu0 %v2383_v14  ;;  %v2319_v12 = vpop.f32.mrb[66].mxu1 }
 0xd21   :  { %v4983_v16 = vpop.f32.mrb[67].mxu1  ;;  %v4989_v18 = vpop.f32.mrb[59].mxu0 }
 0xd36   :  { %1978 = vrot.lane.b32.xlu0 %v1976_v11, %s5404_s9 }
 0xd95   :  { %v2370_v23 = vpop.xlane.xlu0 %2369 }
 0xd96   :  { %v2390_v43 = vsub.f32 %v6067_v29, %v2370_v23 }
 0xd98   :  { %v2399_v62 = vmul.f32 1.442695, %v2390_v43 }
 0xd9d   :  { %v2373_v31 = vpop.xlane.xlu0 %2372 }
 0xd9e   :  { %v2391_v52 = vsub.f32 %v6073_v28, %v2373_v31 }
 0xda0   :  { %v2401_v6 = vmul.f32 1.442695, %v2391_v52 }
 0xda5   :  { %v2379_v32 = vpop.xlane.xlu0 %2378 }
 0xda6   :  { %v2393_v25 = vsub.f32 %v6081_v57, %v2379_v32 }
 0xda8   :  { %v2405_v13 = vmul.f32 1.442695, %v2393_v25 }
 0xdad   :  { %v2385_v34 = vpop.xlane.xlu0 %2384 }
 0xdae   :  { %v2395_v53 = vsub.f32 %v2316_v59, %v2385_v34 }
 0xdb0   :  { %v2409_v24 = vmul.f32 1.442695, %v2395_v53 }
 0xdb1   :  { %v1979_v39 = vpop.permute.xlu0 %1978 }
 0xdb2   :  { %v6098_v2 = vadd.f32 %v1979_v39, %v5991_v49  ;;  %v2367_v49 = vpop.xlane.xlu1 %2366  ;;  %5316 = vpow2.f32 %v2409_v24  ;;  %v1982_v11 = vadd.f32 %v1979_v39, %v5994_v46 }
 0xdb3   :  { %v2389_v54 = vsub.f32 %v6065_v27, %v2367_v49 }
 0xdb4   :  { %v1992_v21 = vmul.f32 %v6098_v2, %v5773_v63  ;;  %v1991_v40 = vmul.f32 %v6098_v2, %v5768_v37  ;;  %v1993_v50 = vmul.f32 %v6098_v2, %v5809_v35  ;;  %v1995_v32 = vmul.f32 %v1982_v11, %v5768_v37 }
 0xdb5   :  { %v2397_v56 = vmul.f32 1.442695, %v2389_v54  ;;  %v1996_v46 = vmul.f32 %v1982_v11, %v5773_v63  ;;  %v1998_v49 = vmul.f32 %v1982_v11, %v5803_v26  ;;  %v1994_v54 = vmul.f32 %v6098_v2, %v5803_v26 }
 0xdb6   :  { %v2462_v41 = vpack.c.bf16 %v1992_v21, %v1992_v21  ;;  %v2461_v47 = vpack.c.bf16 %v1991_v40, %v1991_v40  ;;  %v2463_v36 = vpack.c.bf16 %v1993_v50, %v1993_v50  ;;  %v2376_v4 = vpop.xlane.xlu1 %2375  ;;  %v2465_v40 = vpack.c.bf16 %v1995_v32, %v1995_v32 }
 0xdb7   :  { %5318 = vpow2.f32 %v2397_v56  ;;  %v2392_v5 = vsub.f32 %v6075_v45, %v2376_v4  ;;  %v1997_v50 = vmul.f32 %v1982_v11, %v5809_v35  ;;  %v2468_v53 = vpack.c.bf16 %v1998_v49, %v1998_v49 }
 0xdb8   :  { %2519 = vrot.lane.b32.xlu0 %v2462_v41, %s5404_s9  ;;  %2470 = vrot.lane.b32.xlu1 %v2461_v47, %s5404_s9  ;;  %5320 = vpow2.f32 %v2399_v62  ;;  %v2466_v47 = vpack.c.bf16 %v1996_v46, %v1996_v46  ;;  %v2464_v24 = vpack.c.bf16 %v1994_v54, %v1994_v54 }
 0xdb9   :  { %v2403_v58 = vmul.f32 1.442695, %v2392_v5  ;;  %5322 = vpow2.f32 %v2401_v6 }
 0xdba   :  { %v2382_v27 = vpop.xlane.xlu1 %2381 }
 0xdbb   :  { %5324 = vpow2.f32 %v2403_v58  ;;  %v2394_v29 = vsub.f32 %v6083_v61, %v2382_v27 }
 0xdbc   :  { %2568 = vrot.lane.b32.xlu0 %v2463_v36, %s5404_s9  ;;  %v6114_v9 = vpop.eup %5316  ;;  %5326 = vpow2.f32 %v2405_v13  ;;  %v2467_v36 = vpack.c.bf16 %v1997_v50, %v1997_v50 }
 0xdbd   :  { %v2431_v28 = vsel %vm1101_vm2, %v6114_v9, 0.0  ;;  %v2407_v57 = vmul.f32 1.442695, %v2394_v29 }
 0xdbe   :  { %v2388_v20 = vpop.xlane.xlu1 %2387 }
 0xdbf   :  { %v2396_v14 = vsub.f32 %v6089_v10, %v2388_v20  ;;  %5328 = vpow2.f32 %v2407_v57 }
 0xdc1   :  { %v6116_v59 = vpop.eup %5318  ;;  %v2411_v12 = vmul.f32 1.442695, %v2396_v14 }
 0xdc2   :  { %v2413_v45 = vsel %vm1101_vm2, %v6116_v59, 0.0  ;;  %v6123_v22 = vpop.eup %5320 }
 0xdc3   :  { %v2416_v15 = vsel %vm1101_vm2, %v6123_v22, 0.0  ;;  %v6128_v61 = vpop.eup %5322  ;;  %5330 = vpow2.f32 %v2411_v12 }
 0xdc4   :  { %v2419_v16 = vsel %vm1101_vm2, %v6128_v61, 0.0 }
 0xdc5   :  { %v6132_v18 = vpop.eup %5324 }
 0xdc6   :  { %v2422_v10 = vsel %vm1101_vm2, %v6132_v18, 0.0  ;;  %v6137_v23 = vpop.eup %5326 }
 0xdc7   :  { %v2425_v31 = vsel %vm1101_vm2, %v6137_v23, 0.0 }
 0xdc9   :  { %v6142_v34 = vpop.eup %5328 }
 0xdca   :  { %v2428_v21 = vsel %vm1101_vm2, %v6142_v34, 0.0 }
 0xdcd   :  { %v6147_v39 = vpop.eup %5330 }
 0xdce   :  { %v2434_v41 = vsel %vm1101_vm2, %v6147_v39, 0.0 }
 0xddb   :  { %2432 = vadd.xlane.f32.xlu0 %v2431_v28 }
 0xddc   :  { %2414 = vadd.xlane.f32.xlu1 %v2413_v45 }
 0xde0   :  { %2417 = vadd.xlane.f32.xlu1 %v2416_v15 }
 0xde4   :  { %2420 = vadd.xlane.f32.xlu1 %v2419_v16 }
 0xde8   :  { %2423 = vadd.xlane.f32.xlu1 %v2422_v10 }
 0xdec   :  { %2426 = vadd.xlane.f32.xlu1 %v2425_v31 }
 0xdf0   :  { %2429 = vadd.xlane.f32.xlu1 %v2428_v21 }
 0xdf1   :  { %2666 = vrot.lane.b32.xlu0 %v2465_v40, %s5404_s9 }
 0xdf4   :  { %2435 = vadd.xlane.f32.xlu1 %v2434_v41 }
 0xdf5   :  { %2715 = vrot.lane.b32.xlu0 %v2466_v47, %s5404_s9 }
 0xdf9   :  { %2764 = vrot.lane.b32.xlu0 %v2467_v36, %s5404_s9 }
 0xdfd   :  { %2813 = vrot.lane.b32.xlu0 %v2468_v53, %s5404_s9 }
 0xe05   :  { %2617 = vrot.lane.b32.xlu1 %v2464_v24, %s5404_s9 }
 0xe2a   :  { %v2520_v43 = vpop.permute.xlu0 %2519  ;;  %v2471_v56 = vpop.permute.xlu1 %2470 }
 0xe2b   :  { %v2525_v62 = vsel %vm1212_vm3, %v2520_v43, 0  ;;  %v2476_v52 = vsel %vm1212_vm3, %v2471_v56, 0 }
 0xe2c   :  { %4991 = vmatpush3.bf16.msra.mxu1 %v2476_v52  ;;  %4997 = vmatpush3.bf16.msra.mxu0 %v2525_v62 }
 0xe2d   :  { %5002 = vmatprep.subr.bf16.mxu1 %v5400_v55  ;;  %5008 = vmatprep.subr.bf16.mxu0 %v5400_v55 }
 0xe2e   :  { %v2569_v2 = vpop.permute.xlu0 %2568 }
 0xe2f   :  { %v2574_v20 = vsel %vm1212_vm3, %v2569_v2, 0  ;;  %v5263_v2 = vld [vmem:[%s6567_s5 + $0x38] sm:$0xff]  }
 0xe68   :  { %v2433_v25 = vpop.xlane.xlu0 %2432 }
 0xe69   :  { %v2415_v4 = vpop.xlane.xlu1 %2414 }
 0xe6a   :  { %5332 = vrcp.f32 %v2415_v4 }
 0xe6c   :  { %v2667_v14 = vpop.permute.xlu0 %2666 }
 0xe6d   :  { %v2418_v5 = vpop.xlane.xlu1 %2417  ;;  %v2672_v31 = vsel %vm1212_vm3, %v2667_v14, 0 }
 0xe6e   :  { %5334 = vrcp.f32 %v2418_v5  ;;  %v5262_v5 = vld [vmem:[%s6567_s5 + $0x30] sm:$0xff]  }
 0xe70   :  { %v2716_v11 = vpop.permute.xlu0 %2715 }
 0xe71   :  { %v2421_v6 = vpop.xlane.xlu1 %2420 }
 0xe72   :  { %5336 = vrcp.f32 %v2421_v6 }
 0xe74   :  { %v5333_v58 = vpop.eup %5332  ;;  %v2765_v41 = vpop.permute.xlu0 %2764 }
 0xe75   :  { %v2445_v27 = vmul.f32 %v5333_v58, %v6116_v59  ;;  %v2424_v29 = vpop.xlane.xlu1 %2423  ;;  %v2770_v54 = vsel %vm1212_vm3, %v2765_v41, 0 }
 0xe76   :  { %5338 = vrcp.f32 %v2424_v29 }
 0xe77   :  { %v2453_v13 = vpack.c.bf16 %v2445_v27, %v2445_v27 }
 0xe78   :  { %v5335_v28 = vpop.eup %5334  ;;  %v2814_v43 = vpop.permute.xlu0 %2813 }
 0xe79   :  { %v2446_v45 = vmul.f32 %v5335_v28, %v6123_v22  ;;  %4993 = vmatmul.mubr.msk.bf16.vlgmr.msra.gmra.mrb[68].mxu1 %vm1101_vm2, %v2453_v13  ;;  %v2427_v57 = vpop.xlane.xlu1 %2426 }
 0xe7a   :  { %5003 = vmatpush3.bf16.msra.mxu1 %v2574_v20  ;;  %5340 = vrcp.f32 %v2427_v57  ;;  %5004 = vmatprep.mubr.msk.bf16.mxu1 %vm5401_vm0, %v5400_v55 }
 0xe7b   :  { %v2454_v15 = vpack.c.bf16 %v2446_v45, %v2446_v45  ;;  %5014 = vmatprep.subr.bf16.mxu1 %v5400_v55  ;;  %5342 = vrcp.f32 %v2433_v25 }
 0xe7c   :  { %v5337_v59 = vpop.eup %5336 }
 0xe7d   :  { %v2447_v12 = vmul.f32 %v5337_v59, %v6128_v61  ;;  %4999 = vmatmul.mubr.msk.bf16.vlgmr.msra.gmra.mrb[60].mxu0 %vm1101_vm2, %v2454_v15  ;;  %v2430_v16 = vpop.xlane.xlu1 %2429 }
 0xe7e   :  { %5010 = vmatprep.mubr.msk.bf16.mxu0 %vm5401_vm0, %v5400_v55  ;;  %5344 = vrcp.f32 %v2430_v16 }
 0xe7f   :  { %v2455_v22 = vpack.c.bf16 %v2447_v12, %v2447_v12 }
 0xe80   :  { %v5339_v10 = vpop.eup %5338 }
 0xe81   :  { %5005 = vmatmul.mubr.msk.bf16.vlgmr.msra.gmra.mrb[72].mxu1 %vm1101_vm2, %v2455_v22  ;;  %v2436_v32 = vpop.xlane.xlu1 %2435  ;;  %v2448_v21 = vmul.f32 %v5339_v10, %v6132_v18  ;;  %v2721_v18 = vsel %vm1212_vm3, %v2716_v11, 0 }
 0xe82   :  { %5015 = vmatpush3.bf16.msra.mxu1 %v2672_v31  ;;  %5016 = vmatprep.mubr.msk.bf16.mxu1 %vm5401_vm0, %v5400_v55  ;;  %5346 = vrcp.f32 %v2436_v32 }
 0xe83   :  { %5026 = vmatprep.subr.bf16.mxu1 %v5400_v55  ;;  %v2456_v49 = vpack.c.bf16 %v2448_v21, %v2448_v21 }
 0xe84   :  { %v5341_v61 = vpop.eup %5340 }
 0xe85   :  { %v2449_v40 = vmul.f32 %v5341_v61, %v6137_v23  ;;  %v2618_v46 = vpop.permute.xlu1 %2617  ;;  %v5343_v36 = vpop.eup %5342 }
 0xe86   :  { %v2623_v47 = vsel %vm1212_vm3, %v2618_v46, 0  ;;  %v2451_v23 = vmul.f32 %v5343_v36, %v6114_v9  ;;  %v2819_v9 = vsel %vm1212_vm3, %v2814_v43, 0 }
 0xe87   :  { %5009 = vmatpush3.bf16.msra.mxu0 %v2623_v47  ;;  %v2457_v50 = vpack.c.bf16 %v2449_v40, %v2449_v40 }
 0xe88   :  { %5020 = vmatprep.subr.bf16.mxu0 %v5400_v55  ;;  %v5345_v53 = vpop.eup %5344  ;;  %v2459_v56 = vpack.c.bf16 %v2451_v23, %v2451_v23 }
 0xe89   :  { %5017 = vmatmul.mubr.msk.bf16.vlgmr.msra.gmra.mrb[76].mxu1 %vm1101_vm2, %v2457_v50  ;;  %v2450_v24 = vmul.f32 %v5345_v53, %v6142_v34 }
 0xe8a   :  { %5027 = vmatpush3.bf16.msra.mxu1 %v2770_v54  ;;  %5011 = vmatmul.mubr.msk.bf16.vlgmr.msra.gmra.mrb[64].mxu0 %vm1101_vm2, %v2456_v49 }
 0xe8b   :  { %5021 = vmatpush3.bf16.msra.mxu0 %v2721_v18  ;;  %5028 = vmatprep.mubr.msk.bf16.mxu1 %vm5401_vm0, %v5400_v55  ;;  %v2458_v62 = vpack.c.bf16 %v2450_v24, %v2450_v24 }
 0xe8c   :  { %5022 = vmatprep.mubr.msk.bf16.mxu0 %vm5401_vm0, %v5400_v55  ;;  %5032 = vmatprep.subr.bf16.mxu0 %v5400_v55  ;;  %v5347_v52 = vpop.eup %5346 }
 0xe8d   :  { %5038 = vmatprep.subr.bf16.mxu1 %v5400_v55  ;;  %v2452_v34 = vmul.f32 %v5347_v52, %v6147_v39 }
 0xe8f   :  { %v2460_v4 = vpack.c.bf16 %v2452_v34, %v2452_v34 }
 0xe91   :  { %5029 = vmatmul.mubr.msk.bf16.vlgmr.msra.gmra.mrb[80].mxu1 %vm1101_vm2, %v2459_v56 }
 0xe92   :  { %5023 = vmatmul.mubr.msk.bf16.vlgmr.msra.gmra.mrb[68].mxu0 %vm1101_vm2, %v2458_v62  ;;  %5042 = vmatprep.mubr.msk.bf16.mxu1 %vm5401_vm0, %v5400_v55 }
 0xe93   :  { %5033 = vmatpush3.bf16.msra.mxu0 %v2819_v9  ;;  %5034 = vmatprep.mubr.msk.bf16.mxu0 %vm5401_vm0, %v5400_v55 }
 0xe94   :  { %5046 = vmatprep.subr.bf16.mxu0 %v5400_v55  ;;  %5039 = vmatpush3.bf16.msra.mxu1 %v5262_v5 }
 0xe95   :  { %5040 = vmatprep.subr.bf16.mxu1 %v5400_v55 }
 0xe98   :  { %5041 = vmatpush3.bf16.msra.mxu1 %v5263_v2 }
 0xe99   :  { %5054 = vmatprep.subr.bf16.mxu1 %v5400_v55 }
 0xe9a   :  { %5035 = vmatmul.mubr.msk.bf16.vlgmr.msra.gmra.mrb[72].mxu0 %vm1101_vm2, %v2460_v4 }
 0xe9b   :  { %5050 = vmatprep.mubr.msk.bf16.mxu0 %vm5401_vm0, %v5400_v55 }
 0xf4c   :  { %v2512_v39 = vpop.f32.mrb[68].mxu1 }
 0xf4d   :  { %v4994_v6 = vpop.f32.mrb[69].mxu1  ;;  %v2861_v29 = vsel %vm612_vm1, %v2512_v39, 0.0 }
 0xf4e   :  { %v2515_v58 = vpop.f32.mrb[70].mxu1 }
 0xf4f   :  { %v4995_v25 = vpop.f32.mrb[71].mxu1 }
 0xf50   :  { %v2561_v27 = vpop.f32.mrb[60].mxu0  ;;  %v2879_v25 = vrot.slane %v5972_v1, %v5905_v51 }
 0xf51   :  { %v2862_v13 = vsel %vm612_vm1, %v2561_v27, 0.0  ;;  %v5000_v28 = vpop.f32.mrb[61].mxu0 }
 0xf52   :  { %v2863_v20 = vadd.f32 %v2862_v13, %v2861_v29  ;;  %v2564_v45 = vpop.f32.mrb[62].mxu0 }
 0xf53   :  { %v5001_v57 = vpop.f32.mrb[63].mxu0 }
 0xf54   :  { %v2610_v14 = vpop.f32.mrb[72].mxu1 }
 0xf55   :  { %v2864_v15 = vsel %vm612_vm1, %v2610_v14, 0.0  ;;  %v5006_v59 = vpop.f32.mrb[73].mxu1 }
 0xf56   :  { %v2865_v12 = vadd.f32 %v2864_v15, %v2863_v20  ;;  %v2613_v16 = vpop.f32.mrb[74].mxu1 }
 0xf57   :  { %v5007_v22 = vpop.f32.mrb[75].mxu1 }
 0xf5c   :  { %v2708_v11 = vpop.f32.mrb[76].mxu1 }
 0xf5d   :  { %v2659_v10 = vpop.f32.mrb[64].mxu0  ;;  %v5018_v31 = vpop.f32.mrb[77].mxu1  ;;  %v2868_v53 = vsel %vm612_vm1, %v2708_v11, 0.0 }
 0xf5e   :  { %v2866_v32 = vsel %vm612_vm1, %v2659_v10, 0.0  ;;  %v5012_v61 = vpop.f32.mrb[65].mxu0  ;;  %v2711_v21 = vpop.f32.mrb[78].mxu1 }
 0xf5f   :  { %v2867_v40 = vadd.f32 %v2866_v32, %v2865_v12  ;;  %v2662_v46 = vpop.f32.mrb[66].mxu0  ;;  %v5019_v41 = vpop.f32.mrb[79].mxu1 }
 0xf60   :  { %v5013_v47 = vpop.f32.mrb[67].mxu0 }
 0xf64   :  { %v2806_v50 = vpop.f32.mrb[80].mxu1 }
 0xf65   :  { %v2757_v36 = vpop.f32.mrb[68].mxu0  ;;  %v5030_v49 = vpop.f32.mrb[81].mxu1  ;;  %v2871_v62 = vsel %vm612_vm1, %v2806_v50, 0.0 }
 0xf66   :  { %v2869_v54 = vsel %vm612_vm1, %v2757_v36, 0.0  ;;  %v5024_v18 = vpop.f32.mrb[69].mxu0  ;;  %v2809_v23 = vpop.f32.mrb[82].mxu1 }
 0xf67   :  { %v2870_v24 = vadd.f32 %v2869_v54, %v2868_v53  ;;  %v2760_v43 = vpop.f32.mrb[70].mxu0  ;;  %v5031_v56 = vpop.f32.mrb[83].mxu1  ;;  %v2967_v54 = vrot.slane %v5972_v1, %v5924_v19 }
 0xf68   :  { %v5025_v52 = vpop.f32.mrb[71].mxu0  ;;  %v2973_v56 = vrot.slane %v5972_v1, %v5929_v30 }
 0xf69   :  { %v2872_v9 = vadd.f32 %v2871_v62, %v2870_v24 }
 0xf6d   :  { %v2855_v34 = vpop.f32.mrb[72].mxu0 }
 0xf6e   :  { %v2873_v4 = vsel %vm612_vm1, %v2855_v34, 0.0  ;;  %v5036_v5 = vpop.f32.mrb[73].mxu0 }
 0xf6f   :  { %v2874_v2 = vadd.f32 %v2873_v4, %v2872_v9  ;;  %v2858_v39 = vpop.f32.mrb[74].mxu0  ;;  %v5266_v4 = vld [vmem:[%s6567_s5 + $0x50] sm:$0xff]   ;;  %v5267_v5 = vld [vmem:[%s6567_s5 + $0x58] sm:$0xff]  }
 0xf70   :  { %v5037_v6 = vpop.f32.mrb[75].mxu0 }
 0xf71   :  { %v2875_v58 = vpack.c.bf16 %v2874_v2, %v2867_v40  ;;  %v5265_v40 = vld [vmem:[%s6567_s5 + $0x48] sm:$0xff]   ;;  %v2980_v2 = vrot.slane %v5972_v1, %v5945_v42 }
 0xf73   :  { %5043 = vmatmul.mubr.msk.bf16.vlgmr.msra.gmra.mrb[84].mxu1 %vm612_vm1, %v2875_v58 }
 0xf74   :  { %5058 = vmatprep.mubr.msk.bf16.mxu1 %vm5401_vm0, %v5400_v55  ;;  %5055 = vmatpush3.bf16.msra.mxu1 %v5266_v4 }
 0xf75   :  { %5056 = vmatprep.subr.bf16.mxu1 %v5400_v55 }
 0xf78   :  { %5057 = vmatpush3.bf16.msra.mxu1 %v5267_v5 }
 0xf79   :  { %5070 = vmatprep.subr.bf16.mxu1 %v5400_v55 }
0x1046   :  { %v2929_v27 = vpop.f32.mrb[84].mxu1 }
0x1047   :  { %v2930_v29 = vadd.f32 %v2929_v27, %v2879_v25  ;;  %v5044_v13 = vpop.f32.mrb[85].mxu1 }
0x1048   :  { %v2932_v28 = vpop.f32.mrb[86].mxu1 }
0x1049   :  { %v2933_v20 = vadd.f32 %v2932_v28, %v2879_v25  ;;  %v5045_v45 = vpop.f32.mrb[87].mxu1  ;;  %v2936_v57 = vadd.f32 %v2930_v29, %v5982_v17 }
0x104a   :  { %v3043_v45 = vrot.slane %v5972_v1, %v5953_v38 }
0x104b   :  { %v2938_v14 = vsel %vm612_vm1, %v2936_v57, 0.0  ;;  %v2937_v15 = vadd.f32 %v2933_v20, %v5984_v44  ;;  %v5264_v44 = vld [vmem:[%s6567_s5 + $0x40] sm:$0xff]  }
0x104c   :  { %2939 = vadd.xlane.f32.xlu0 %v2938_v14  ;;  %5047 = vmatpush3.bf16.msra.mxu0 %v5264_v44 }
0x104d   :  { %v2941_v59 = vsel %vm612_vm1, %v2937_v15, 0.0  ;;  %5048 = vmatprep.subr.bf16.mxu0 %v5400_v55 }
0x104e   :  { %2942 = vadd.xlane.f32.xlu1 %v2941_v59 }
0x1050   :  { %5049 = vmatpush3.bf16.msra.mxu0 %v5265_v40 }
0x1051   :  { %5062 = vmatprep.subr.bf16.mxu0 %v5400_v55 }
0x10d9   :  { %v2940_v12 = vpop.xlane.xlu0 %2939 }
0x10da   :  { %v2944_v16 = vmul.f32 0.03125, %v2940_v12 }
0x10db   :  { %v2943_v22 = vpop.xlane.xlu1 %2942 }
0x10dc   :  { %v2946_v11 = vsub.f32 %v2936_v57, %v2944_v16  ;;  %v2945_v10 = vmul.f32 0.03125, %v2943_v22 }
0x10de   :  { %v2947_v31 = vsub.f32 %v2937_v15, %v2945_v10  ;;  %v2948_v32 = vmul.f32 %v2946_v11, %v2946_v11 }
0x10e0   :  { %v2950_v61 = vsel %vm612_vm1, %v2948_v32, 0.0  ;;  %v2949_v21 = vmul.f32 %v2947_v31, %v2947_v31 }
0x10e1   :  { %2951 = vadd.xlane.f32.xlu0 %v2950_v61 }
0x10e2   :  { %v2953_v17 = vsel %vm612_vm1, %v2949_v21, 0.0 }
0x10e5   :  { %2954 = vadd.xlane.f32.xlu0 %v2953_v17 }
0x116e   :  { %v2952_v46 = vpop.xlane.xlu0 %2951 }
0x116f   :  { %v2956_v41 = vmul.f32 0.03125, %v2952_v46 }
0x1171   :  { %v2958_v47 = vadd.f32 1e-05, %v2956_v41 }
0x1172   :  { %v2955_v50 = vpop.xlane.xlu0 %2954 }
0x1173   :  { %5348 = vrsqrt.f32 %v2958_v47  ;;  %v2957_v36 = vmul.f32 0.03125, %v2955_v50  ;;  %v5268_v50 = vld [vmem:[%s6563_s4 + $0x20] sm:$0xff]  }
0x1175   :  { %v2959_v49 = vadd.f32 1e-05, %v2957_v36  ;;  %v5269_v36 = vld [vmem:[%s6563_s4 + $0x28] sm:$0xff]  }
0x1177   :  { %5350 = vrsqrt.f32 %v2959_v49  ;;  %v6279_v49 = vld [vmem:[%s6564_s6 + $0x20] sm:$0xff] }
0x117d   :  { %v5349_v53 = vpop.eup %5348 }
0x117e   :  { %v2962_v18 = vmul.f32 %v5349_v53, %v2946_v11  ;;  %v3227_v53 = vrot.slane %v6279_v49, %v5629_v60 }
0x1180   :  { %v2968_v24 = vmul.f32 %v2967_v54, %v2962_v18 }
0x1181   :  { %v5351_v23 = vpop.eup %5350 }
0x1182   :  { %v2963_v43 = vmul.f32 %v5351_v23, %v2947_v31  ;;  %v2974_v52 = vadd.f32 %v2973_v56, %v2968_v24 }
0x1184   :  { %v2969_v62 = vmul.f32 %v2967_v54, %v2963_v43 }
0x1186   :  { %v2975_v9 = vadd.f32 %v2973_v56, %v2969_v62  ;;  %v4533_v62 = vld [vmem:[%s6564_s6 + $0x18] sm:$0x3] }
0x1188   :  { %v2976_v34 = vpack.c.bf16 %v2975_v9, %v2974_v52 }
0x118a   :  { %5051 = vmatmul.mubr.msk.bf16.vlgmr.msra.gmra.mrb[76].mxu0 %vm612_vm1, %v2976_v34 }
0x118b   :  { %5066 = vmatprep.mubr.msk.bf16.mxu0 %vm5401_vm0, %v5400_v55  ;;  %5063 = vmatpush3.bf16.msra.mxu0 %v5268_v50 }
0x118c   :  { %5064 = vmatprep.subr.bf16.mxu0 %v5400_v55 }
0x118f   :  { %5065 = vmatpush3.bf16.msra.mxu0 %v5269_v36 }
0x1190   :  { %5076 = vmatprep.subr.bf16.mxu0 %v5400_v55 }
0x125d   :  { %v3030_v39 = vpop.f32.mrb[76].mxu0 }
0x125e   :  { %v3031_v6 = vadd.f32 %v3030_v39, %v2980_v2  ;;  %v5052_v58 = vpop.f32.mrb[77].mxu0  ;;  %v3137_v39 = vrot.slane %v4533_v62, %v5629_v60 }
0x125f   :  { %v3033_v25 = vpop.f32.mrb[78].mxu0 }
0x1260   :  { %v3034_v27 = vadd.f32 %v3033_v25, %v2980_v2  ;;  %v5053_v29 = vpop.f32.mrb[79].mxu0  ;;  %v3037_v13 = vmax.f32 %v3031_v6, 0.0 }
0x1262   :  { %v3038_v28 = vmax.f32 %v3034_v27, 0.0 }
0x1264   :  { %v3039_v20 = vpack.c.bf16 %v3038_v28, %v3037_v13 }
0x1266   :  { %5059 = vmatmul.mubr.msk.bf16.vlgmr.msra.gmra.mrb[88].mxu1 %vm612_vm1, %v3039_v20 }
0x1267   :  { %5072 = vmatprep.mubr.msk.bf16.mxu1 %vm5401_vm0, %v5400_v55 }
0x1339   :  { %v3093_v57 = vpop.f32.mrb[88].mxu1 }
0x133a   :  { %v3094_v14 = vadd.f32 %v3093_v57, %v3043_v45  ;;  %v5060_v15 = vpop.f32.mrb[89].mxu1 }
0x133b   :  { %v3096_v59 = vpop.f32.mrb[90].mxu1 }
0x133c   :  { %v3097_v12 = vadd.f32 %v3096_v59, %v3043_v45  ;;  %v5061_v16 = vpop.f32.mrb[91].mxu1  ;;  %v3100_v22 = vadd.f32 %v3094_v14, %v2974_v52  ;;  %v3131_v52 = vrot.slane %v4533_v62, %v5655_v33 }
0x133e   :  { %v3102_v11 = vsel %vm612_vm1, %v3100_v22, 0.0  ;;  %v3101_v10 = vadd.f32 %v3097_v12, %v2975_v9  ;;  %v3221_v12 = vrot.slane %v6279_v49, %v5655_v33 }
0x133f   :  { %3103 = vadd.xlane.f32.xlu1 %v3102_v11 }
0x1340   :  { %v3105_v31 = vsel %vm612_vm1, %v3101_v10, 0.0 }
0x1341   :  { %3106 = vadd.xlane.f32.xlu0 %v3105_v31 }
0x13cc   :  { %v3104_v32 = vpop.xlane.xlu1 %3103 }
0x13cd   :  { %v3108_v61 = vmul.f32 0.03125, %v3104_v32 }
0x13ce   :  { %v3107_v21 = vpop.xlane.xlu0 %3106 }
0x13cf   :  { %v3110_v17 = vsub.f32 %v3100_v22, %v3108_v61  ;;  %v3109_v44 = vmul.f32 0.03125, %v3107_v21 }
0x13d1   :  { %v3111_v1 = vsub.f32 %v3101_v10, %v3109_v44  ;;  %v3112_v40 = vmul.f32 %v3110_v17, %v3110_v17 }
0x13d3   :  { %v3114_v46 = vsel %vm612_vm1, %v3112_v40, 0.0  ;;  %v3113_v41 = vmul.f32 %v3111_v1, %v3111_v1 }
0x13d4   :  { %3115 = vadd.xlane.f32.xlu1 %v3114_v46 }
0x13d5   :  { %v3117_v47 = vsel %vm612_vm1, %v3113_v41, 0.0 }
0x13d6   :  { %3118 = vadd.xlane.f32.xlu0 %v3117_v47 }
0x13e5   :  { %3229 = vrot.lane.b32.xlu1 %v3227_v53, %s5402_s21 }
0x1461   :  { %v3116_v54 = vpop.xlane.xlu1 %3115 }
0x1462   :  { %v3120_v18 = vmul.f32 0.03125, %v3116_v54 }
0x1463   :  { %v3119_v23 = vpop.xlane.xlu0 %3118 }
0x1464   :  { %v3122_v24 = vadd.f32 1e-05, %v3120_v18  ;;  %v3121_v43 = vmul.f32 0.03125, %v3119_v23 }
0x1465   :  { %v3230_v29 = vpop.permute.xlu1 %3229 }
0x1466   :  { %5352 = vrsqrt.f32 %v3122_v24  ;;  %v3123_v56 = vadd.f32 1e-05, %v3121_v43 }
0x1468   :  { %5354 = vrsqrt.f32 %v3123_v56 }
0x1470   :  { %v5353_v9 = vpop.eup %5352 }
0x1471   :  { %v3126_v34 = vmul.f32 %v5353_v9, %v3110_v17 }
0x1472   :  { %v5355_v4 = vpop.eup %5354 }
0x1473   :  { %v3132_v5 = vmul.f32 %v3131_v52, %v3126_v34  ;;  %v3127_v2 = vmul.f32 %v5355_v4, %v3111_v1 }
0x1475   :  { %v3133_v6 = vmul.f32 %v3131_v52, %v3127_v2  ;;  %v6290_v58 = vadd.f32 %v3137_v39, %v3132_v5 }
0x1477   :  { %v6292_v25 = vadd.f32 %v3137_v39, %v3133_v6 }
0x1479   :  { %v3161_v27 = vpack.c.bf16 %v6292_v25, %v6290_v58 }
0x147b   :  { %5067 = vmatmul.mubr.msk.bf16.vlgmr.msra.gmra.mrb[80].mxu0 %vm612_vm1, %v3161_v27 }
0x147c   :  { %5078 = vmatprep.mubr.msk.bf16.mxu0 %vm5401_vm0, %v5400_v55 }
0x154e   :  { %v6299_v13 = vpop.f32.mrb[80].mxu0 }
0x154f   :  { %v3232_v28 = vadd.f32 %v3230_v29, %v6299_v13  ;;  %v5068_v20 = vpop.f32.mrb[81].mxu0  ;;  %v3222_v16 = vadd.f32 %v3221_v12, %v6299_v13 }
0x1550   :  { %v6302_v45 = vpop.f32.mrb[82].mxu0 }
0x1551   :  { %v5069_v57 = vpop.f32.mrb[83].mxu0  ;;  %v3233_v14 = vadd.f32 %v3230_v29, %v6302_v45  ;;  %v3268_v15 = vpack.c.bf16 %v3232_v28, %v3232_v28  ;;  %v3244_v10 = vmul.f32 %v6006_v0, %v3222_v16  ;;  %v3245_v31 = vmul.f32 %v6012_v3, %v3222_v16 }
0x1552   :  { %v3246_v21 = vmul.f32 %v6022_v7, %v3222_v16  ;;  %v3247_v17 = vmul.f32 %v6028_v8, %v3222_v16  ;;  %v3223_v1 = vadd.f32 %v3221_v12, %v6302_v45 }
0x1553   :  { %3271 = vrot.lane.b32.xlu0 %v3268_v15, %s5403_s2  ;;  %v3269_v59 = vpack.c.bf16 %v3233_v14, %v3233_v14  ;;  %v3260_v32 = vpack.c.bf16 %v3244_v10, %v3244_v10  ;;  %v3261_v61 = vpack.c.bf16 %v3245_v31, %v3245_v31 }
0x1554   :  { %v3262_v40 = vpack.c.bf16 %v3246_v21, %v3246_v21  ;;  %v3263_v46 = vpack.c.bf16 %v3247_v17, %v3247_v17  ;;  %v3248_v47 = vmul.f32 %v6006_v0, %v3223_v1  ;;  %v3249_v50 = vmul.f32 %v6012_v3, %v3223_v1 }
0x1555   :  { %3449 = vrot.lane.b32.xlu1 %v3269_v59, %s5403_s2  ;;  %v3250_v0 = vmul.f32 %v6022_v7, %v3223_v1  ;;  %v3251_v3 = vmul.f32 %v6028_v8, %v3223_v1 }
0x1556   :  { %v3264_v36 = vpack.c.bf16 %v3248_v47, %v3248_v47  ;;  %v3265_v53 = vpack.c.bf16 %v3249_v50, %v3249_v50 }
0x1557   :  { %v3266_v54 = vpack.c.bf16 %v3250_v0, %v3250_v0  ;;  %v3267_v18 = vpack.c.bf16 %v3251_v3, %v3251_v3 }
0x15c5   :  { %v3272_v22 = vpop.permute.xlu0 %3271 }
0x15c6   :  { %v3277_v11 = vsel %vm612_vm1, %v3272_v22, 0 }
0x15c7   :  { %5071 = vmatpush3.bf16.xpose.msra.mxu1 %v3277_v11  ;;  %5077 = vmatpush3.bf16.xpose.msra.mxu0 %v3277_v11  ;;  %v3450_v44 = vpop.permute.xlu1 %3449 }
0x15c8   :  { %5082 = vmatprep.subr.bf16.mxu1 %v5400_v55  ;;  %5088 = vmatprep.subr.bf16.mxu0 %v5400_v55  ;;  %v3455_v41 = vsel %vm612_vm1, %v3450_v44, 0 }
0x15ce   :  { %5073 = vmatmul.mubr.msk.bf16.vlgmr.msra.gmra.mrb[92].mxu1 %vm612_vm1, %v3260_v32  ;;  %5079 = vmatmul.mubr.msk.bf16.vlgmr.msra.gmra.mrb[84].mxu0 %vm612_vm1, %v3261_v61 }
0x15cf   :  { %5083 = vmatpush3.bf16.xpose.msra.mxu1 %v3277_v11  ;;  %5089 = vmatpush3.bf16.xpose.msra.mxu0 %v3277_v11 }
0x15d0   :  { %5084 = vmatprep.mubr.msk.bf16.mxu1 %vm5401_vm0, %v5400_v55  ;;  %5090 = vmatprep.mubr.msk.bf16.mxu0 %vm5401_vm0, %v5400_v55 }
0x15d1   :  { %5094 = vmatprep.subr.bf16.mxu1 %v5400_v55  ;;  %5100 = vmatprep.subr.bf16.mxu0 %v5400_v55 }
0x15d6   :  { %5085 = vmatmul.mubr.msk.bf16.vlgmr.msra.gmra.mrb[96].mxu1 %vm612_vm1, %v3262_v40  ;;  %5091 = vmatmul.mubr.msk.bf16.vlgmr.msra.gmra.mrb[88].mxu0 %vm612_vm1, %v3263_v46 }
0x15d7   :  { %5095 = vmatpush3.bf16.xpose.msra.mxu1 %v3455_v41  ;;  %5101 = vmatpush3.bf16.xpose.msra.mxu0 %v3455_v41 }
0x15d8   :  { %5096 = vmatprep.mubr.msk.bf16.mxu1 %vm5401_vm0, %v5400_v55  ;;  %5102 = vmatprep.mubr.msk.bf16.mxu0 %vm5401_vm0, %v5400_v55 }
0x15d9   :  { %5106 = vmatprep.subr.bf16.mxu1 %v5400_v55  ;;  %5112 = vmatprep.subr.bf16.mxu0 %v5400_v55 }
0x15de   :  { %5097 = vmatmul.mubr.msk.bf16.vlgmr.msra.gmra.mrb[100].mxu1 %vm612_vm1, %v3264_v36  ;;  %5103 = vmatmul.mubr.msk.bf16.vlgmr.msra.gmra.mrb[92].mxu0 %vm612_vm1, %v3265_v53  ;;  %v3237_v36 = vrot.slane %v6279_v49, %v5755_v48 }
0x15df   :  { %5107 = vmatpush3.bf16.xpose.msra.mxu1 %v3455_v41  ;;  %5113 = vmatpush3.bf16.xpose.msra.mxu0 %v3455_v41 }
0x15e0   :  { %5108 = vmatprep.mubr.msk.bf16.mxu1 %vm5401_vm0, %v5400_v55  ;;  %5114 = vmatprep.mubr.msk.bf16.mxu0 %vm5401_vm0, %v5400_v55 }
0x15e1   :  { %5118 = vmatprep.subr.bf16.mxu1 %v5400_v55  ;;  %5124 = vmatprep.subr.bf16.mxu0 %v5400_v55 }
0x15e6   :  { %5109 = vmatmul.mubr.msk.bf16.vlgmr.msra.gmra.mrb[104].mxu1 %vm612_vm1, %v3266_v54  ;;  %5115 = vmatmul.mubr.msk.bf16.vlgmr.msra.gmra.mrb[96].mxu0 %vm612_vm1, %v3267_v18 }
0x15e7   :  { %5120 = vmatprep.mubr.msk.bf16.mxu1 %vm5401_vm0, %v5400_v55  ;;  %5126 = vmatprep.mubr.msk.bf16.mxu0 %vm5401_vm0, %v5400_v55 }
0x16a1   :  { %v6353_v7 = vpop.f32.mrb[92].mxu1  ;;  %v6355_v8 = vpop.f32.mrb[84].mxu0 }
0x16a2   :  { %v5074_v23 = vpop.f32.mrb[93].mxu1  ;;  %v5080_v24 = vpop.f32.mrb[85].mxu0  ;;  %v3629_v43 = vsel %vm1101_vm2, %v6355_v8, -inf  ;;  %v3626_v56 = vsel %vm1101_vm2, %v6353_v7, -inf }
0x16a3   :  { %3630 = vmax.xlane.f32.xlu0 %v3629_v43  ;;  %v3359_v62 = vpop.f32.mrb[86].mxu0  ;;  %3627 = vmax.xlane.f32.xlu1 %v3626_v56  ;;  %v3316_v52 = vpop.f32.mrb[94].mxu1 }
0x16a4   :  { %v5075_v9 = vpop.f32.mrb[95].mxu1  ;;  %v5081_v34 = vpop.f32.mrb[87].mxu0 }
0x16a9   :  { %v6361_v4 = vpop.f32.mrb[96].mxu1  ;;  %v6363_v5 = vpop.f32.mrb[88].mxu0 }
0x16aa   :  { %v5086_v2 = vpop.f32.mrb[97].mxu1  ;;  %v5092_v39 = vpop.f32.mrb[89].mxu0  ;;  %v3635_v6 = vsel %vm1101_vm2, %v6363_v5, -inf  ;;  %v3632_v27 = vsel %vm1101_vm2, %v6361_v4, -inf }
0x16ab   :  { %v3445_v29 = vpop.f32.mrb[90].mxu0  ;;  %3636 = vmax.xlane.f32.xlu1 %v3635_v6  ;;  %3633 = vmax.xlane.f32.xlu0 %v3632_v27  ;;  %v3402_v28 = vpop.f32.mrb[98].mxu1 }
0x16ac   :  { %v5087_v20 = vpop.f32.mrb[99].mxu1  ;;  %v5093_v57 = vpop.f32.mrb[91].mxu0 }
0x16b1   :  { %v6369_v14 = vpop.f32.mrb[100].mxu1  ;;  %v6371_v15 = vpop.f32.mrb[92].mxu0 }
0x16b2   :  { %v5098_v59 = vpop.f32.mrb[101].mxu1  ;;  %v5104_v12 = vpop.f32.mrb[93].mxu0  ;;  %v3641_v16 = vsel %vm1101_vm2, %v6371_v15, -inf  ;;  %v3638_v22 = vsel %vm1101_vm2, %v6369_v14, -inf }
0x16b3   :  { %v3537_v11 = vpop.f32.mrb[94].mxu0  ;;  %3642 = vmax.xlane.f32.xlu1 %v3641_v16  ;;  %3639 = vmax.xlane.f32.xlu0 %v3638_v22  ;;  %v3494_v10 = vpop.f32.mrb[102].mxu1 }
0x16b4   :  { %v5099_v31 = vpop.f32.mrb[103].mxu1  ;;  %v5105_v32 = vpop.f32.mrb[95].mxu0 }
0x16b9   :  { %v3577_v61 = vpop.f32.mrb[104].mxu1  ;;  %v6377_v21 = vpop.f32.mrb[96].mxu0 }
0x16ba   :  { %v5110_v17 = vpop.f32.mrb[105].mxu1  ;;  %v5116_v44 = vpop.f32.mrb[97].mxu0  ;;  %v3647_v1 = vsel %vm1101_vm2, %v6377_v21, -inf  ;;  %v3644_v40 = vsel %vm1101_vm2, %v3577_v61, -inf }
0x16bb   :  { %v3623_v46 = vpop.f32.mrb[98].mxu0  ;;  %3648 = vmax.xlane.f32.xlu1 %v3647_v1  ;;  %3645 = vmax.xlane.f32.xlu0 %v3644_v40  ;;  %v3580_v41 = vpop.f32.mrb[106].mxu1 }
0x16bc   :  { %v5111_v47 = vpop.f32.mrb[107].mxu1  ;;  %v5117_v50 = vpop.f32.mrb[99].mxu0 }
0x16d1   :  { %3239 = vrot.lane.b32.xlu0 %v3237_v36, %s5404_s9 }
0x1730   :  { %v3631_v53 = vpop.xlane.xlu0 %3630 }
0x1731   :  { %v3651_v39 = vsub.f32 %v6355_v8, %v3631_v53 }
0x1733   :  { %v3660_v27 = vmul.f32 1.442695, %v3651_v39 }
0x1738   :  { %v3634_v0 = vpop.xlane.xlu0 %3633 }
0x1739   :  { %v3652_v29 = vsub.f32 %v6361_v4, %v3634_v0 }
0x173b   :  { %v3662_v57 = vmul.f32 1.442695, %v3652_v29 }
0x1740   :  { %v3640_v3 = vpop.xlane.xlu0 %3639 }
0x1741   :  { %v3654_v12 = vsub.f32 %v6369_v14, %v3640_v3 }
0x1743   :  { %v3666_v11 = vmul.f32 1.442695, %v3654_v12 }
0x1748   :  { %v3646_v54 = vpop.xlane.xlu0 %3645 }
0x1749   :  { %v3656_v9 = vsub.f32 %v3577_v61, %v3646_v54 }
0x174b   :  { %v3670_v2 = vmul.f32 1.442695, %v3656_v9 }
0x174c   :  { %v3240_v18 = vpop.permute.xlu0 %3239 }
0x174d   :  { %v6386_v23 = vadd.f32 %v3240_v18, %v6299_v13  ;;  %v3628_v13 = vpop.xlane.xlu1 %3627  ;;  %5356 = vpow2.f32 %v3670_v2  ;;  %v3243_v40 = vadd.f32 %v3240_v18, %v6302_v45 }
0x174e   :  { %v3650_v34 = vsub.f32 %v6353_v7, %v3628_v13 }
0x174f   :  { %v3253_v24 = vmul.f32 %v6386_v23, %v5773_v63  ;;  %v3252_v43 = vmul.f32 %v6386_v23, %v5768_v37  ;;  %v3254_v48 = vmul.f32 %v6386_v23, %v5809_v35  ;;  %v3256_v47 = vmul.f32 %v3243_v40, %v5768_v37 }
0x1750   :  { %v3658_v6 = vmul.f32 1.442695, %v3650_v34  ;;  %v3257_v45 = vmul.f32 %v3243_v40, %v5773_v63  ;;  %v3258_v37 = vmul.f32 %v3243_v40, %v5809_v35 }
0x1751   :  { %v3723_v56 = vpack.c.bf16 %v3253_v24, %v3253_v24  ;;  %v3722_v62 = vpack.c.bf16 %v3252_v43, %v3252_v43  ;;  %v3724_v52 = vpack.c.bf16 %v3254_v48, %v3254_v48  ;;  %v3637_v28 = vpop.xlane.xlu1 %3636  ;;  %v3726_v53 = vpack.c.bf16 %v3256_v47, %v3256_v47 }
0x1752   :  { %5358 = vpow2.f32 %v3658_v6  ;;  %v3653_v20 = vsub.f32 %v6363_v5, %v3637_v28  ;;  %v3727_v54 = vpack.c.bf16 %v3257_v45, %v3257_v45  ;;  %v3728_v18 = vpack.c.bf16 %v3258_v37, %v3258_v37 }
0x1753   :  { %3780 = vrot.lane.b32.xlu0 %v3723_v56, %s5404_s9  ;;  %3731 = vrot.lane.b32.xlu1 %v3722_v62, %s5404_s9  ;;  %5360 = vpow2.f32 %v3660_v27  ;;  %v3259_v24 = vmul.f32 %v3243_v40, %v5803_v26  ;;  %v3255_v43 = vmul.f32 %v6386_v23, %v5803_v26 }
0x1754   :  { %v3664_v59 = vmul.f32 1.442695, %v3653_v20  ;;  %5362 = vpow2.f32 %v3662_v57 }
0x1755   :  { %v3643_v7 = vpop.xlane.xlu1 %3642  ;;  %v3729_v63 = vpack.c.bf16 %v3259_v24, %v3259_v24  ;;  %v3725_v56 = vpack.c.bf16 %v3255_v43, %v3255_v43  ;;  %v5270_v24 = vld [vmem:[%s6567_s5 + $0x60] sm:$0xff]  }
0x1756   :  { %5364 = vpow2.f32 %v3664_v59  ;;  %v3655_v8 = vsub.f32 %v6371_v15, %v3643_v7 }
0x1757   :  { %3829 = vrot.lane.b32.xlu0 %v3724_v52, %s5404_s9  ;;  %v6402_v16 = vpop.eup %5356  ;;  %5366 = vpow2.f32 %v3666_v11 }
0x1758   :  { %v3692_v4 = vsel %vm1101_vm2, %v6402_v16, 0.0  ;;  %v3668_v14 = vmul.f32 1.442695, %v3655_v8 }
0x1759   :  { %v3649_v10 = vpop.xlane.xlu1 %3648 }
0x175a   :  { %v3657_v32 = vsub.f32 %v6377_v21, %v3649_v10  ;;  %5368 = vpow2.f32 %v3668_v14 }
0x175c   :  { %v6404_v22 = vpop.eup %5358  ;;  %v3672_v17 = vmul.f32 1.442695, %v3657_v32 }
0x175d   :  { %v3674_v5 = vsel %vm1101_vm2, %v6404_v22, 0.0  ;;  %v6411_v31 = vpop.eup %5360 }
0x175e   :  { %v3677_v61 = vsel %vm1101_vm2, %v6411_v31, 0.0  ;;  %v6416_v15 = vpop.eup %5362  ;;  %5370 = vpow2.f32 %v3672_v17 }
0x175f   :  { %v3680_v44 = vsel %vm1101_vm2, %v6416_v15, 0.0 }
0x1760   :  { %v6420_v1 = vpop.eup %5364 }
0x1761   :  { %v3683_v21 = vsel %vm1101_vm2, %v6420_v1, 0.0  ;;  %v6425_v46 = vpop.eup %5366 }
0x1762   :  { %v3686_v41 = vsel %vm1101_vm2, %v6425_v46, 0.0 }
0x1764   :  { %v6430_v50 = vpop.eup %5368 }
0x1765   :  { %v3689_v36 = vsel %vm1101_vm2, %v6430_v50, 0.0 }
0x1768   :  { %v6435_v0 = vpop.eup %5370 }
0x1769   :  { %v3695_v3 = vsel %vm1101_vm2, %v6435_v0, 0.0 }
0x1776   :  { %3693 = vadd.xlane.f32.xlu0 %v3692_v4 }
0x1777   :  { %3675 = vadd.xlane.f32.xlu1 %v3674_v5 }
0x177b   :  { %3678 = vadd.xlane.f32.xlu1 %v3677_v61 }
0x177f   :  { %3681 = vadd.xlane.f32.xlu1 %v3680_v44 }
0x1783   :  { %3684 = vadd.xlane.f32.xlu1 %v3683_v21 }
0x1787   :  { %3687 = vadd.xlane.f32.xlu1 %v3686_v41 }
0x178b   :  { %3690 = vadd.xlane.f32.xlu1 %v3689_v36 }
0x178c   :  { %3927 = vrot.lane.b32.xlu0 %v3726_v53, %s5404_s9 }
0x178f   :  { %3696 = vadd.xlane.f32.xlu1 %v3695_v3 }
0x1790   :  { %3976 = vrot.lane.b32.xlu0 %v3727_v54, %s5404_s9 }
0x1794   :  { %4025 = vrot.lane.b32.xlu0 %v3728_v18, %s5404_s9 }
0x1798   :  { %4074 = vrot.lane.b32.xlu0 %v3729_v63, %s5404_s9  ;;  %v5271_v63 = vld [vmem:[%s6567_s5 + $0x68] sm:$0xff]  }
0x17a0   :  { %3878 = vrot.lane.b32.xlu1 %v3725_v56, %s5404_s9 }
0x17c5   :  { %v3781_v62 = vpop.permute.xlu0 %3780  ;;  %v3732_v48 = vpop.permute.xlu1 %3731 }
0x17c6   :  { %v3786_v35 = vsel %vm1212_vm3, %v3781_v62, 0  ;;  %v3737_v52 = vsel %vm1212_vm3, %v3732_v48, 0 }
0x17c7   :  { %5119 = vmatpush3.bf16.msra.mxu1 %v3737_v52  ;;  %5125 = vmatpush3.bf16.msra.mxu0 %v3786_v35 }
0x17c8   :  { %5130 = vmatprep.subr.bf16.mxu1 %v5400_v55  ;;  %5136 = vmatprep.subr.bf16.mxu0 %v5400_v55 }
0x17c9   :  { %v3830_v26 = vpop.permute.xlu0 %3829 }
0x17ca   :  { %v3835_v28 = vsel %vm1212_vm3, %v3830_v26, 0 }
0x1803   :  { %v3694_v2 = vpop.xlane.xlu0 %3693 }
0x1804   :  { %v3676_v13 = vpop.xlane.xlu1 %3675 }
0x1805   :  { %5372 = vrcp.f32 %v3676_v13 }
0x1807   :  { %v3928_v59 = vpop.permute.xlu0 %3927 }
0x1808   :  { %v3679_v9 = vpop.xlane.xlu1 %3678  ;;  %v3933_v5 = vsel %vm1212_vm3, %v3928_v59, 0 }
0x1809   :  { %5374 = vrcp.f32 %v3679_v9 }
0x180b   :  { %v3977_v4 = vpop.permute.xlu0 %3976 }
0x180c   :  { %v3682_v23 = vpop.xlane.xlu1 %3681 }
0x180d   :  { %5376 = vrcp.f32 %v3682_v23 }
0x180f   :  { %v5373_v34 = vpop.eup %5372  ;;  %v4026_v17 = vpop.permute.xlu0 %4025 }
0x1810   :  { %v3706_v39 = vmul.f32 %v5373_v34, %v6404_v22  ;;  %v3685_v6 = vpop.xlane.xlu1 %3684  ;;  %v4031_v36 = vsel %vm1212_vm3, %v4026_v17, 0 }
0x1811   :  { %5378 = vrcp.f32 %v3685_v6 }
0x1812   :  { %v3714_v27 = vpack.c.bf16 %v3706_v39, %v3706_v39 }
0x1813   :  { %v5375_v29 = vpop.eup %5374  ;;  %v4075_v45 = vpop.permute.xlu0 %4074 }
0x1814   :  { %v3707_v20 = vmul.f32 %v5375_v29, %v6411_v31  ;;  %5121 = vmatmul.mubr.msk.bf16.vlgmr.msra.gmra.mrb[108].mxu1 %vm1101_vm2, %v3714_v27  ;;  %v3688_v57 = vpop.xlane.xlu1 %3687 }
0x1815   :  { %5131 = vmatpush3.bf16.msra.mxu1 %v3835_v28  ;;  %5380 = vrcp.f32 %v3688_v57  ;;  %5132 = vmatprep.mubr.msk.bf16.mxu1 %vm5401_vm0, %v5400_v55 }
0x1816   :  { %v3715_v12 = vpack.c.bf16 %v3707_v20, %v3707_v20  ;;  %5142 = vmatprep.subr.bf16.mxu1 %v5400_v55  ;;  %5382 = vrcp.f32 %v3694_v2 }
0x1817   :  { %v5377_v7 = vpop.eup %5376 }
0x1818   :  { %v3708_v22 = vmul.f32 %v5377_v7, %v6416_v15  ;;  %5127 = vmatmul.mubr.msk.bf16.vlgmr.msra.gmra.mrb[100].mxu0 %vm1101_vm2, %v3715_v12  ;;  %v3691_v8 = vpop.xlane.xlu1 %3690 }
0x1819   :  { %5138 = vmatprep.mubr.msk.bf16.mxu0 %vm5401_vm0, %v5400_v55  ;;  %5384 = vrcp.f32 %v3691_v8 }
0x181a   :  { %v3716_v11 = vpack.c.bf16 %v3708_v22, %v3708_v22 }
0x181b   :  { %v5379_v10 = vpop.eup %5378 }
0x181c   :  { %5133 = vmatmul.mubr.msk.bf16.vlgmr.msra.gmra.mrb[112].mxu1 %vm1101_vm2, %v3716_v11  ;;  %v3697_v31 = vpop.xlane.xlu1 %3696  ;;  %v3709_v32 = vmul.f32 %v5379_v10, %v6420_v1  ;;  %v3982_v1 = vsel %vm1212_vm3, %v3977_v4, 0 }
0x181d   :  { %5143 = vmatpush3.bf16.msra.mxu1 %v3933_v5  ;;  %5144 = vmatprep.mubr.msk.bf16.mxu1 %vm5401_vm0, %v5400_v55  ;;  %5386 = vrcp.f32 %v3697_v31 }
0x181e   :  { %5154 = vmatprep.subr.bf16.mxu1 %v5400_v55  ;;  %v3717_v41 = vpack.c.bf16 %v3709_v32, %v3709_v32 }
0x181f   :  { %v5381_v14 = vpop.eup %5380 }
0x1820   :  { %v3710_v61 = vmul.f32 %v5381_v14, %v6425_v46  ;;  %v3879_v15 = vpop.permute.xlu1 %3878  ;;  %v5383_v21 = vpop.eup %5382 }
0x1821   :  { %v3884_v44 = vsel %vm1212_vm3, %v3879_v15, 0  ;;  %v3712_v46 = vmul.f32 %v5383_v21, %v6402_v16  ;;  %v4080_v16 = vsel %vm1212_vm3, %v4075_v45, 0 }
0x1822   :  { %5137 = vmatpush3.bf16.msra.mxu0 %v3884_v44  ;;  %v3718_v40 = vpack.c.bf16 %v3710_v61, %v3710_v61 }
0x1823   :  { %5148 = vmatprep.subr.bf16.mxu0 %v5400_v55  ;;  %v5385_v47 = vpop.eup %5384  ;;  %v3720_v3 = vpack.c.bf16 %v3712_v46, %v3712_v46 }
0x1824   :  { %5145 = vmatmul.mubr.msk.bf16.vlgmr.msra.gmra.mrb[116].mxu1 %vm1101_vm2, %v3718_v40  ;;  %v3711_v53 = vmul.f32 %v5385_v47, %v6430_v50 }
0x1825   :  { %5155 = vmatpush3.bf16.msra.mxu1 %v4031_v36  ;;  %5139 = vmatmul.mubr.msk.bf16.vlgmr.msra.gmra.mrb[104].mxu0 %vm1101_vm2, %v3717_v41 }
0x1826   :  { %5149 = vmatpush3.bf16.msra.mxu0 %v3982_v1  ;;  %5156 = vmatprep.mubr.msk.bf16.mxu1 %vm5401_vm0, %v5400_v55  ;;  %v3719_v54 = vpack.c.bf16 %v3711_v53, %v3711_v53 }
0x1827   :  { %5150 = vmatprep.mubr.msk.bf16.mxu0 %vm5401_vm0, %v5400_v55  ;;  %5160 = vmatprep.subr.bf16.mxu0 %v5400_v55  ;;  %v5387_v37 = vpop.eup %5386 }
0x1828   :  { %5166 = vmatprep.subr.bf16.mxu1 %v5400_v55  ;;  %v3713_v50 = vmul.f32 %v5387_v37, %v6435_v0  ;;  %v4140_v37 = vrot.slane %v6279_v49, %v5905_v51 }
0x182a   :  { %v3721_v18 = vpack.c.bf16 %v3713_v50, %v3713_v50 }
0x182c   :  { %5157 = vmatmul.mubr.msk.bf16.vlgmr.msra.gmra.mrb[120].mxu1 %vm1101_vm2, %v3720_v3 }
0x182d   :  { %5151 = vmatmul.mubr.msk.bf16.vlgmr.msra.gmra.mrb[108].mxu0 %vm1101_vm2, %v3719_v54  ;;  %5170 = vmatprep.mubr.msk.bf16.mxu1 %vm5401_vm0, %v5400_v55 }
0x182e   :  { %5161 = vmatpush3.bf16.msra.mxu0 %v4080_v16  ;;  %5162 = vmatprep.mubr.msk.bf16.mxu0 %vm5401_vm0, %v5400_v55 }
0x182f   :  { %5174 = vmatprep.subr.bf16.mxu0 %v5400_v55  ;;  %5167 = vmatpush3.bf16.msra.mxu1 %v5270_v24 }
0x1830   :  { %5168 = vmatprep.subr.bf16.mxu1 %v5400_v55 }
0x1833   :  { %5169 = vmatpush3.bf16.msra.mxu1 %v5271_v63 }
0x1834   :  { %5182 = vmatprep.subr.bf16.mxu1 %v5400_v55 }
0x1835   :  { %5163 = vmatmul.mubr.msk.bf16.vlgmr.msra.gmra.mrb[112].mxu0 %vm1101_vm2, %v3721_v18 }
0x1836   :  { %5178 = vmatprep.mubr.msk.bf16.mxu0 %vm5401_vm0, %v5400_v55 }
0x18e7   :  { %v3773_v0 = vpop.f32.mrb[108].mxu1 }
0x18e8   :  { %v5122_v43 = vpop.f32.mrb[109].mxu1  ;;  %v4122_v35 = vsel %vm612_vm1, %v3773_v0, 0.0 }
0x18e9   :  { %v3776_v56 = vpop.f32.mrb[110].mxu1 }
0x18ea   :  { %v5123_v62 = vpop.f32.mrb[111].mxu1 }
0x18eb   :  { %v3822_v48 = vpop.f32.mrb[100].mxu0 }
0x18ec   :  { %v4123_v52 = vsel %vm612_vm1, %v3822_v48, 0.0  ;;  %v5128_v13 = vpop.f32.mrb[101].mxu0 }
0x18ed   :  { %v4124_v9 = vadd.f32 %v4123_v52, %v4122_v35  ;;  %v3825_v26 = vpop.f32.mrb[102].mxu0 }
0x18ee   :  { %v5129_v23 = vpop.f32.mrb[103].mxu0 }
0x18ef   :  { %v3871_v34 = vpop.f32.mrb[112].mxu1 }
0x18f0   :  { %v4125_v2 = vsel %vm612_vm1, %v3871_v34, 0.0  ;;  %v5134_v39 = vpop.f32.mrb[113].mxu1 }
0x18f1   :  { %v4126_v6 = vadd.f32 %v4125_v2, %v4124_v9  ;;  %v3874_v27 = vpop.f32.mrb[114].mxu1  ;;  %v5273_v39 = vld [vmem:[%s6567_s5 + $0x78] sm:$0xff]  }
0x18f2   :  { %v5135_v29 = vpop.f32.mrb[115].mxu1 }
0x18f7   :  { %v3969_v28 = vpop.f32.mrb[116].mxu1 }
0x18f8   :  { %v3920_v20 = vpop.f32.mrb[104].mxu0  ;;  %v5146_v57 = vpop.f32.mrb[117].mxu1  ;;  %v4129_v14 = vsel %vm612_vm1, %v3969_v28, 0.0 }
0x18f9   :  { %v4127_v59 = vsel %vm612_vm1, %v3920_v20, 0.0  ;;  %v5140_v12 = vpop.f32.mrb[105].mxu0  ;;  %v3972_v7 = vpop.f32.mrb[118].mxu1 }
0x18fa   :  { %v4128_v22 = vadd.f32 %v4127_v59, %v4126_v6  ;;  %v3923_v8 = vpop.f32.mrb[106].mxu0  ;;  %v5147_v11 = vpop.f32.mrb[119].mxu1  ;;  %v4228_v12 = vrot.slane %v6279_v49, %v5924_v19  ;;  %v5275_v19 = vld [vmem:[%s6567_s5 + $0x88] sm:$0xff]  }
0x18fb   :  { %v5141_v4 = vpop.f32.mrb[107].mxu0 }
0x18fc   :  { %v4234_v4 = vrot.slane %v6279_v49, %v5929_v30  ;;  %v4241_v30 = vrot.slane %v6279_v49, %v5945_v42 }
0x18ff   :  { %v4067_v10 = vpop.f32.mrb[120].mxu1 }
0x1900   :  { %v4018_v5 = vpop.f32.mrb[108].mxu0  ;;  %v5158_v31 = vpop.f32.mrb[121].mxu1  ;;  %v4132_v21 = vsel %vm612_vm1, %v4067_v10, 0.0 }
0x1901   :  { %v4130_v32 = vsel %vm612_vm1, %v4018_v5, 0.0  ;;  %v5152_v61 = vpop.f32.mrb[109].mxu0  ;;  %v4070_v15 = vpop.f32.mrb[122].mxu1 }
0x1902   :  { %v4131_v17 = vadd.f32 %v4130_v32, %v4129_v14  ;;  %v4021_v44 = vpop.f32.mrb[110].mxu0  ;;  %v5159_v40 = vpop.f32.mrb[123].mxu1  ;;  %v5274_v32 = vld [vmem:[%s6567_s5 + $0x80] sm:$0xff]  }
0x1903   :  { %v5153_v41 = vpop.f32.mrb[111].mxu0 }
0x1904   :  { %v4133_v47 = vadd.f32 %v4132_v21, %v4131_v17 }
0x1908   :  { %v4116_v36 = vpop.f32.mrb[112].mxu0 }
0x1909   :  { %v4134_v1 = vsel %vm612_vm1, %v4116_v36, 0.0  ;;  %v5164_v46 = vpop.f32.mrb[113].mxu0 }
0x190a   :  { %v4135_v53 = vadd.f32 %v4134_v1, %v4133_v47  ;;  %v4119_v45 = vpop.f32.mrb[114].mxu0 }
0x190b   :  { %v5165_v3 = vpop.f32.mrb[115].mxu0 }
0x190c   :  { %v4136_v54 = vpack.c.bf16 %v4135_v53, %v4128_v22 }
0x190e   :  { %5171 = vmatmul.mubr.msk.bf16.vlgmr.msra.gmra.mrb[124].mxu1 %vm612_vm1, %v4136_v54 }
0x190f   :  { %5186 = vmatprep.mubr.msk.bf16.mxu1 %vm5401_vm0, %v5400_v55  ;;  %5183 = vmatpush3.bf16.msra.mxu1 %v5274_v32 }
0x1910   :  { %5184 = vmatprep.subr.bf16.mxu1 %v5400_v55 }
0x1913   :  { %5185 = vmatpush3.bf16.msra.mxu1 %v5275_v19 }
0x19e1   :  { %v4190_v16 = vpop.f32.mrb[124].mxu1 }
0x19e2   :  { %v4191_v50 = vadd.f32 %v4190_v16, %v4140_v37  ;;  %v5172_v18 = vpop.f32.mrb[125].mxu1 }
0x19e3   :  { %v4193_v24 = vpop.f32.mrb[126].mxu1 }
0x19e4   :  { %v4197_v63 = vadd.f32 %v4191_v50, %v6290_v58  ;;  %v4194_v0 = vadd.f32 %v4193_v24, %v4140_v37  ;;  %v5173_v43 = vpop.f32.mrb[127].mxu1 }
0x19e6   :  { %v4198_v56 = vadd.f32 %v4194_v0, %v6292_v25  ;;  %v4199_v62 = vsel %vm612_vm1, %v4197_v63, 0.0  ;;  %v5272_v25 = vld [vmem:[%s6567_s5 + $0x70] sm:$0xff]  }
0x19e7   :  { %4200 = vadd.xlane.f32.xlu0 %v4199_v62  ;;  %5175 = vmatpush3.bf16.msra.mxu0 %v5272_v25 }
0x19e8   :  { %v4202_v48 = vsel %vm612_vm1, %v4198_v56, 0.0  ;;  %5176 = vmatprep.subr.bf16.mxu0 %v5400_v55  ;;  %v4304_v55 = vrot.slane %v6279_v49, %v5953_v38 }
0x19e9   :  { %4203 = vadd.xlane.f32.xlu1 %v4202_v48 }
0x19eb   :  { %5177 = vmatpush3.bf16.msra.mxu0 %v5273_v39 }
0x1a74   :  { %v4201_v35 = vpop.xlane.xlu0 %4200 }
0x1a75   :  { %v4205_v52 = vmul.f32 0.03125, %v4201_v35 }
0x1a76   :  { %v4204_v13 = vpop.xlane.xlu1 %4203 }
0x1a77   :  { %v4207_v51 = vsub.f32 %v4197_v63, %v4205_v52  ;;  %v4206_v9 = vmul.f32 0.03125, %v4204_v13 }
0x1a79   :  { %v4208_v26 = vsub.f32 %v4198_v56, %v4206_v9  ;;  %v4209_v23 = vmul.f32 %v4207_v51, %v4207_v51 }
0x1a7b   :  { %v4211_v34 = vsel %vm612_vm1, %v4209_v23, 0.0  ;;  %v4210_v58 = vmul.f32 %v4208_v26, %v4208_v26  ;;  %v4579_v23 = vld [vmem:[%s6564_s6 + $0x28] sm:$0x3] }
0x1a7c   :  { %4212 = vadd.xlane.f32.xlu0 %v4211_v34  ;;  %v4392_v34 = vrot.slane %v4579_v23, %v5655_v33 }
0x1a7d   :  { %v4214_v2 = vsel %vm612_vm1, %v4210_v58, 0.0 }
0x1a80   :  { %4215 = vadd.xlane.f32.xlu0 %v4214_v2  ;;  %v4398_v2 = vrot.slane %v4579_v23, %v5629_v60 }
0x1b09   :  { %v4213_v6 = vpop.xlane.xlu0 %4212 }
0x1b0a   :  { %v4217_v27 = vmul.f32 0.03125, %v4213_v6 }
0x1b0c   :  { %v4219_v29 = vadd.f32 1e-05, %v4217_v27 }
0x1b0d   :  { %v4216_v28 = vpop.xlane.xlu0 %4215 }
0x1b0e   :  { %5388 = vrsqrt.f32 %v4219_v29  ;;  %v4218_v20 = vmul.f32 0.03125, %v4216_v28 }
0x1b10   :  { %v4220_v57 = vadd.f32 1e-05, %v4218_v20 }
0x1b12   :  { %5390 = vrsqrt.f32 %v4220_v57 }
0x1b18   :  { %v5389_v59 = vpop.eup %5388 }
0x1b19   :  { %v4223_v7 = vmul.f32 %v5389_v59, %v4207_v51 }
0x1b1b   :  { %v4229_v8 = vmul.f32 %v4228_v12, %v4223_v7 }
0x1b1c   :  { %v5391_v22 = vpop.eup %5390 }
0x1b1d   :  { %v4224_v11 = vmul.f32 %v5391_v22, %v4208_v26  ;;  %v4235_v5 = vadd.f32 %v4234_v4, %v4229_v8 }
0x1b1f   :  { %v4230_v10 = vmul.f32 %v4228_v12, %v4224_v11 }
0x1b21   :  { %v4236_v31 = vadd.f32 %v4234_v4, %v4230_v10 }
0x1b23   :  { %v4237_v14 = vpack.c.bf16 %v4236_v31, %v4235_v5 }
0x1b25   :  { %5179 = vmatmul.mubr.msk.bf16.vlgmr.msra.gmra.mrb[116].mxu0 %vm612_vm1, %v4237_v14 }
0x1bf8   :  { %v4291_v61 = vpop.f32.mrb[116].mxu0 }
0x1bf9   :  { %v4292_v15 = vadd.f32 %v4291_v61, %v4241_v30  ;;  %v5180_v17 = vpop.f32.mrb[117].mxu0 }
0x1bfa   :  { %v4294_v44 = vpop.f32.mrb[118].mxu0 }
0x1bfb   :  { %v4295_v40 = vadd.f32 %v4294_v44, %v4241_v30  ;;  %v5181_v21 = vpop.f32.mrb[119].mxu0  ;;  %v4298_v41 = vmax.f32 %v4292_v15, 0.0 }
0x1bfd   :  { %v4299_v47 = vmax.f32 %v4295_v40, 0.0 }
0x1bff   :  { %v4300_v36 = vpack.c.bf16 %v4299_v47, %v4298_v41 }
0x1c01   :  { %5187 = vmatmul.mubr.msk.bf16.vlgmr.msra.gmra.mrb[128].mxu1 %vm612_vm1, %v4300_v36 }
0x1cd4   :  { %v4354_v1 = vpop.f32.mrb[128].mxu1 }
0x1cd5   :  { %v4355_v46 = vadd.f32 %v4354_v1, %v4304_v55  ;;  %v5188_v53 = vpop.f32.mrb[129].mxu1 }
0x1cd6   :  { %v4357_v45 = vpop.f32.mrb[130].mxu1 }
0x1cd7   :  { %v4361_v3 = vadd.f32 %v4355_v46, %v4235_v5  ;;  %v4358_v42 = vadd.f32 %v4357_v45, %v4304_v55  ;;  %v5189_v54 = vpop.f32.mrb[131].mxu1 }
0x1cd9   :  { %v4362_v37 = vadd.f32 %v4358_v42, %v4236_v31  ;;  %v4363_v16 = vsel %vm612_vm1, %v4361_v3, 0.0 }
0x1cda   :  { %4364 = vadd.xlane.f32.xlu1 %v4363_v16 }
0x1cdb   :  { %v4366_v50 = vsel %vm612_vm1, %v4362_v37, 0.0 }
0x1cdc   :  { %4367 = vadd.xlane.f32.xlu0 %v4366_v50 }
0x1d67   :  { %v4365_v18 = vpop.xlane.xlu1 %4364 }
0x1d68   :  { %v4369_v24 = vmul.f32 0.03125, %v4365_v18 }
0x1d69   :  { %v4368_v63 = vpop.xlane.xlu0 %4367 }
0x1d6a   :  { %v4371_v0 = vsub.f32 %v4361_v3, %v4369_v24  ;;  %v4370_v43 = vmul.f32 0.03125, %v4368_v63 }
0x1d6c   :  { %v4372_v38 = vsub.f32 %v4362_v37, %v4370_v43  ;;  %v4373_v49 = vmul.f32 %v4371_v0, %v4371_v0 }
0x1d6e   :  { %v4375_v56 = vsel %vm612_vm1, %v4373_v49, 0.0  ;;  %v4374_v62 = vmul.f32 %v4372_v38, %v4372_v38 }
0x1d6f   :  { %4376 = vadd.xlane.f32.xlu1 %v4375_v56 }
0x1d70   :  { %v4378_v48 = vsel %vm612_vm1, %v4374_v62, 0.0 }
0x1d71   :  { %4379 = vadd.xlane.f32.xlu0 %v4378_v48 }
0x1dfc   :  { %v4377_v35 = vpop.xlane.xlu1 %4376 }
0x1dfd   :  { %v4381_v52 = vmul.f32 0.03125, %v4377_v35 }
0x1dfe   :  { %v4380_v13 = vpop.xlane.xlu0 %4379 }
0x1dff   :  { %v4383_v51 = vadd.f32 1e-05, %v4381_v52  ;;  %v4382_v9 = vmul.f32 0.03125, %v4380_v13 }
0x1e01   :  { %5392 = vrsqrt.f32 %v4383_v51  ;;  %v4384_v26 = vadd.f32 1e-05, %v4382_v9 }
0x1e03   :  { %5394 = vrsqrt.f32 %v4384_v26 }
0x1e0b   :  { %v5393_v58 = vpop.eup %5392 }
0x1e0c   :  { %v4387_v25 = vmul.f32 %v5393_v58, %v4371_v0 }
0x1e0d   :  { %v5395_v39 = vpop.eup %5394 }
0x1e0e   :  { %v4393_v6 = vmul.f32 %v4392_v34, %v4387_v25  ;;  %v4388_v27 = vmul.f32 %v5395_v39, %v4372_v38 }
0x1e10   :  { %v4399_v29 = vadd.f32 %v4398_v2, %v4393_v6  ;;  %v4394_v28 = vmul.f32 %v4392_v34, %v4388_v27 }
0x1e12   :  { %v4401_v20 = vsel %vm612_vm1, %v4399_v29, 0.0  ;;  %v4400_v57 = vadd.f32 %v4398_v2, %v4394_v28 }
0x1e13   :  { %v4402_v59 = vrot.slane %v4401_v20, 4 }
0x1e14   :  { %v4408_v12 = vsel %vm612_vm1, %v4400_v57, 0.0 }
0x1e15   :  { %v4403_v7 = vadd.f32 %v4402_v59, %v4401_v20  ;;  %v4409_v22 = vrot.slane %v4408_v12, 4 }
0x1e17   :  { %v4404_v8 = vrot.slane %v4403_v7, 2  ;;  %v4410_v11 = vadd.f32 %v4409_v22, %v4408_v12 }
0x1e19   :  { %v4405_v33 = vadd.f32 %v4404_v8, %v4403_v7  ;;  %v4411_v4 = vrot.slane %v4410_v11, 2 }
0x1e1b   :  { %v4406_v10 = vrot.slane %v4405_v33, 1  ;;  %v4412_v60 = vadd.f32 %v4411_v4, %v4410_v11 }
0x1e1d   :  { %v4407_v5 = vadd.f32 %v4406_v10, %v4405_v33  ;;  %v4413_v31 = vrot.slane %v4412_v60, 1 }
0x1e1f   :  { %v4414_v14 = vadd.f32 %v4413_v31, %v4412_v60  ;;  %v4416_v32 = vmul.f32 0.125, %v4407_v5 }
0x1e21   :  { %v4417_v19 = vmul.f32 0.125, %v4414_v14 }
0x1e23   :  { %v4421_v30 = vsel %vm4420_vm4, %v4417_v19, %v4416_v32 }
0x1e24   :  { %4424 = vst.msk [vmem:[%s6568_s7] sm:$0x3] %vm4423_vm5, %v4421_v30 }

</bundles_post_ra>
